<compile_context>
chip_gen: v6e
topology: v6e:2x2x1
jax: 0.10.0
libtpu: 0.0.40
codegen_flags: <defaults>
</compile_context>

<pallas_src>
import functools
import math

import numpy as np
import jax
import jax.numpy as jnp
from jax.experimental import pallas as pl
from jax.experimental.pallas import tpu as pltpu


# ----------------------------------------------------------------------------
# In-kernel helpers
# ----------------------------------------------------------------------------
def _leaky_relu(x, alpha):
    return jnp.where(x > 0, x, alpha * x)


def _elu(x):
    # exp only on the non-positive branch (avoids inf on the discarded branch)
    return jnp.where(x > 0, x, jnp.exp(jnp.minimum(x, 0.0)) - 1.0)


def _masked_softmax(e, mask):
    # A fully masked row degrades to uniform attention, which is exactly what
    # the torch module does (softmax over a row of identical -9e15 logits).
    e = jnp.where(mask, e, jnp.float32(-9e15))
    m = jnp.max(e, axis=-1, keepdims=True)
    p = jnp.exp(e - m)
    # approx reciprocal uses the EUP slot (frees VALU); ~1e-3 rel error in the
    # softmax normalization -- flag if exact torch parity is required.
    return p * pl.reciprocal(jnp.sum(p, axis=-1, keepdims=True), approx=True)


def _gat_block(x, adj, w_all, a_all, w_out, a_out, *, nheads, fh, alpha):
    """Batched 2-layer GAT (nheads heads -> out attention layer -> ELU -> residual).

    x: (tb, n, F) f32, adj: (tb, n, n) f32.  Stacked weights (bf16 or f32):
      w_all: (F, nheads*fh)          per-head W concatenated along lanes
      a_all: (nheads*fh, 2*nheads)   block structured: cols (2k, 2k+1) = a1_k, a2_k
      w_out: (nheads*fh, F)
      a_out: (F, 2)                  out-layer (a1 | a2)
    MXU operands are cast to the weights' dtype; accumulation and all
    elementwise math stay f32 (VPU-safe on v5e).
    """
    tb, n, f_in = x.shape
    cdt = w_all.dtype
    mask = adj > 0

    # Shared-weight matmuls on the stacked (tb*n) rows.
    x2 = x.reshape(tb * n, f_in)
    h_all = jnp.dot(x2.astype(cdt), w_all, preferred_element_type=jnp.float32)     # (tb*n, nh*fh)
    f_all = jnp.dot(h_all.astype(cdt), a_all, preferred_element_type=jnp.float32)  # (tb*n, 2*nh)

    h_all3 = h_all.reshape(tb, n, nheads * fh)
    h_all_c = h_all3.astype(cdt)
    f_all3 = f_all.reshape(tb, n, 2 * nheads)
    f_t = jnp.swapaxes(f_all3, -1, -2)            # ONE transpose shared by all heads

    heads = []
    for k in range(nheads):                       # static unroll, nheads = 4
        f1 = f_all3[:, :, 2 * k:2 * k + 1]        # (tb, n, 1)
        f2t = f_t[:, 2 * k + 1:2 * k + 2, :]      # (tb, 1, n)
        att = _masked_softmax(_leaky_relu(f1 + f2t, alpha), mask)
        hk = h_all_c[:, :, k * fh:(k + 1) * fh]   # (tb, n, fh)
        heads.append(_elu(jnp.einsum('bij,bjd->bid', att.astype(cdt), hk,
                                     preferred_element_type=jnp.float32)))

    # Fused out-layer matmul: one K=nheads*fh push instead of 4 K=fh pushes.
    xcat = jnp.concatenate(heads, axis=-1).reshape(tb * n, nheads * fh)
    h_out = jnp.dot(xcat.astype(cdt), w_out, preferred_element_type=jnp.float32)   # (tb*n, F)
    f = jnp.dot(h_out.astype(cdt), a_out, preferred_element_type=jnp.float32)      # (tb*n, 2)

    # Output attention layer (concat=False), then GAT.forward's ELU + residual.
    f3 = f.reshape(tb, n, 2)
    f_t2 = jnp.swapaxes(f3, -1, -2)               # second (and last) transpose
    att = _masked_softmax(_leaky_relu(f3[:, :, 0:1] + f_t2[:, 1:2, :], alpha), mask)
    h_out3 = h_out.reshape(tb, n, f_in)
    hp = jnp.einsum('bij,bjd->bid', att.astype(cdt), h_out3.astype(cdt),
                    preferred_element_type=jnp.float32)
    return _elu(hp) + x                           # residual needs GAT out dim == F


# ----------------------------------------------------------------------------
# Fully fused decoder kernel (one grid step == TB batch elements)
# ----------------------------------------------------------------------------
def _decoder_kernel(x_ref, sadj_ref, gadj_ref, intent_ref,
                    w_all_ref, a_all_ref, w_out_ref, a_out_ref,
                    w1_ref, b1_ref, w2_ref, b2_ref,
                    o_ref, *, nheads, fh, alpha, n_slot):
    x = x_ref[...]                                # (TB, n_slot, H) f32
    tb = x.shape[0]

    # ---- slot graph GAT ----
    slot_out = _gat_block(x, sadj_ref[...],
                          w_all_ref[0], a_all_ref[0], w_out_ref[0], a_out_ref[0],
                          nheads=nheads, fh=fh, alpha=alpha)        # (TB, n_slot, H)

    # ---- global-graph input [slot_out ; intent] built as a register concat ----
    intent = intent_ref[...]                      # (n_intent_pad, H) f32
    g_in = jnp.concatenate(
        [slot_out, jnp.broadcast_to(intent[None], (tb,) + intent.shape)], axis=1)

    # ---- global graph GAT ----
    g_out = _gat_block(g_in, gadj_ref[...],
                       w_all_ref[1], a_all_ref[1], w_out_ref[1], a_out_ref[1],
                       nheads=nheads, fh=fh, alpha=alpha)           # (TB, n_gp, H)

    # ---- 2-layer MLP head, only on slot rows; output lane-padded to 128 ----
    cdt = w1_ref.dtype
    g_slot = g_out[:, :n_slot, :].reshape(tb * n_slot, g_out.shape[-1])
    h = jnp.dot(g_slot.astype(cdt), w1_ref[...],
                preferred_element_type=jnp.float32) + b1_ref[...]
    h = _leaky_relu(h, alpha)
    out = jnp.dot(h.astype(cdt), w2_ref[...],
                  preferred_element_type=jnp.float32) + b2_ref[...]
    o_ref[...] = out.reshape(tb, n_slot, out.shape[-1])


# ----------------------------------------------------------------------------
# Wrapper (padded, seq_lens-independent part)
# ----------------------------------------------------------------------------
def _decoder_padded(params, encoded_hiddens, global_adj, slot_adj, intent_embedding,
                    *, alpha, batch_tile=None, compute_dtype=jnp.bfloat16):
    B, n_slot, H = encoded_hiddens.shape
    num_intent = intent_embedding.shape[0]
    n_global = num_intent + n_slot
    out_dim = params["lin_w2"].shape[1]
    nheads, fh = params["nheads"], params["fh"]
    sg, gg = params["slot_graph"], params["global_graph"]

    # GAT residual (elu(out_att) + x) requires GAT output dim == hidden dim.
    assert sg["W_out"].shape[1] == H and gg["W_out"].shape[1] == H, \
        "GAT out dim must equal hidden dim for the residual connection"

    # Batch tile: default keeps >=2 grid steps (v7x has 2 TCs); use batch_tile=B
    # on v5e/v6e to run the whole batch in a single grid step.
    if batch_tile is None:
        batch_tile = max(1, (B + 1) // 2)
    TB = max(1, min(int(batch_tile), B))
    n_steps = -(-B // TB)
    Bp = n_steps * TB

    # Permute global nodes to [slot ; intent] (GAT is permutation-equivariant)
    # and pad the node count to a multiple of 8 (pad nodes: zero features,
    # self-loop-only adjacency -> no effect on real rows, tile-aligned layouts).
    perm = np.concatenate([np.arange(num_intent, n_global),
                           np.arange(num_intent)]).astype(np.int32)
    gadj = jnp.take(jnp.take(global_adj, perm, axis=1), perm, axis=2)
    n_gp = -(-n_global // 8) * 8
    pad_n = n_gp - n_global
    if pad_n:
        gadj = jnp.pad(gadj, ((0, 0), (0, pad_n), (0, pad_n)))
        pad_diag = jnp.concatenate([jnp.zeros((n_global,), gadj.dtype),
                                    jnp.ones((pad_n,), gadj.dtype)])
        gadj = gadj + jnp.diag(pad_diag)[None]
        intent_emb = jnp.pad(intent_embedding, ((0, pad_n), (0, 0)))
    else:
        intent_emb = intent_embedding
    intent_emb = intent_emb.astype(jnp.float32)

    # Pad batch to a multiple of TB (padded examples: zero features, identity
    # adjacency -> finite, discarded outputs).
    if Bp != B:
        pb = Bp - B
        encoded_hiddens = jnp.pad(encoded_hiddens, ((0, pb), (0, 0), (0, 0)))
        slot_adj = jnp.concatenate(
            [slot_adj, jnp.broadcast_to(jnp.eye(n_slot, dtype=slot_adj.dtype)[None],
                                        (pb, n_slot, n_slot))], axis=0)
        gadj = jnp.concatenate(
            [gadj, jnp.broadcast_to(jnp.eye(n_gp, dtype=gadj.dtype)[None],
                                    (pb, n_gp, n_gp))], axis=0)

    # Stack the two GATs' weights along a leading axis (fewer operands), cast
    # MXU operands to compute_dtype, pad the MLP output to 128 lanes.
    cdt = compute_dtype
    w_all2 = jnp.stack([sg["W_all"], gg["W_all"]]).astype(cdt)     # (2, H, nh*fh)
    a_all2 = jnp.stack([sg["A_all"], gg["A_all"]]).astype(cdt)     # (2, nh*fh, 2*nh)
    w_out2 = jnp.stack([sg["W_out"], gg["W_out"]]).astype(cdt)     # (2, nh*fh, H)
    a_out2 = jnp.stack([sg["A_out"], gg["A_out"]]).astype(cdt)     # (2, H, 2)
    out_pad = max(128, -(-out_dim // 128) * 128)
    w1 = params["lin_w1"].astype(cdt)
    b1 = params["lin_b1"].astype(jnp.float32)
    w2p = jnp.zeros((H, out_pad), jnp.float32).at[:, :out_dim].set(
        params["lin_w2"]).astype(cdt)
    b2p = jnp.zeros((1, out_pad), jnp.float32).at[:, :out_dim].set(params["lin_b2"])

    kernel = functools.partial(_decoder_kernel, nheads=nheads, fh=fh,
                               alpha=alpha, n_slot=n_slot)

    def _const(arr):                    # full-array block, resident across steps
        nd = arr.ndim
        return pl.BlockSpec(arr.shape, lambda s, nd=nd: (0,) * nd)

    # Working set per step is tens of KB -> default scoped VMEM / default
    # double-buffering is plenty on v5e/v6e/v7x (set vmem_limit_bytes only if
    # TB is pushed into the multi-MB range).
    out = pl.pallas_call(
        kernel,
        out_shape=jax.ShapeDtypeStruct((Bp, n_slot, out_pad), jnp.float32),
        grid=(n_steps,),
        in_specs=[
            pl.BlockSpec((TB, n_slot, H), lambda s: (s, 0, 0)),        # hiddens
            pl.BlockSpec((TB, n_slot, n_slot), lambda s: (s, 0, 0)),   # slot adj
            pl.BlockSpec((TB, n_gp, n_gp), lambda s: (s, 0, 0)),       # global adj (perm+pad)
            _const(intent_emb),
            _const(w_all2), _const(a_all2), _const(w_out2), _const(a_out2),
            _const(w1), _const(b1), _const(w2p), _const(b2p),
        ],
        out_specs=pl.BlockSpec((TB, n_slot, out_pad), lambda s: (s, 0, 0)),
        compiler_params=pltpu.CompilerParams(dimension_semantics=("parallel",)),
    )(encoded_hiddens, slot_adj, gadj, intent_emb,
      w_all2, a_all2, w_out2, a_out2, w1, b1, w2p, b2p)

    return out[:B, :, :out_dim]


def lstm_decoder_forward(params, encoded_hiddens, seq_lens, global_adj, slot_adj,
                         intent_embedding, *, alpha, batch_tile=None,
                         compute_dtype=jnp.bfloat16):
    B, n_slot, _ = encoded_hiddens.shape
    out_dim = params["lin_w2"].shape[1]
    padded = _decoder_padded(params, encoded_hiddens, global_adj, slot_adj,
                             intent_embedding, alpha=alpha, batch_tile=batch_tile,
                             compute_dtype=compute_dtype)             # (B, n_slot, out_dim)
    # Ragged per-example selection: rows 0..seq_len-1 per example thanks to the
    # [slot ; intent] node order.  The ragged output length is inherently static
    # in JAX; the pallas_call above has no seq_lens dependence, so new length
    # patterns only rebuild this cheap gather, never the kernel.
    idx = np.concatenate([i * n_slot + np.arange(int(l))
                          for i, l in enumerate(seq_lens)]).astype(np.int32)
    return jnp.take(padded.reshape(B * n_slot, out_dim), jnp.asarray(idx), axis=0)


# ----------------------------------------------------------------------------
# Parameter init (xavier_uniform, gain=1.414 like the module) + packing
# ----------------------------------------------------------------------------
def _xavier(key, shape, gain=1.414):
    fan_in, fan_out = shape[0], shape[1]
    bound = gain * math.sqrt(6.0 / (fan_in + fan_out))
    return jax.random.uniform(key, shape, jnp.float32, -bound, bound)


def init_gat_raw(key, nfeat, nhid, nclass, nheads):
    keys = jax.random.split(key, 2 * nheads + 2)
    heads = []
    for h in range(nheads):
        W = _xavier(keys[2 * h], (nfeat, nhid))
        a = _xavier(keys[2 * h + 1], (2 * nhid, 1))
        heads.append((W, a))
    out_W = _xavier(keys[-2], (nhid * nheads, nclass))
    out_a = _xavier(keys[-1], (2 * nclass, 1))
    return {"heads": heads, "out_W": out_W, "out_a": out_a}


def pack_gat(raw, nhid):
    heads = raw["heads"]
    nheads = len(heads)
    W_all = jnp.concatenate([W for (W, _) in heads], axis=1)       # (nfeat, nheads*nhid)
    A_all = jnp.zeros((nheads * nhid, 2 * nheads), jnp.float32)    # block structured
    for k, (_, a) in enumerate(heads):
        A_all = A_all.at[k * nhid:(k + 1) * nhid, 2 * k].set(a[:nhid, 0])
        A_all = A_all.at[k * nhid:(k + 1) * nhid, 2 * k + 1].set(a[nhid:, 0])
    nclass = raw["out_W"].shape[1]
    A_out = jnp.stack([raw["out_a"][:nclass, 0], raw["out_a"][nclass:, 0]], axis=1)
    return {"W_all": W_all, "A_all": A_all, "W_out": raw["out_W"], "A_out": A_out}


# ----------------------------------------------------------------------------
# Pure-JAX reference (mirrors the torch module, original node order)
# ----------------------------------------------------------------------------
def _gat_layer_ref(x, adj, W, a, alpha, concat):
    h = x @ W
    fo = W.shape[1]
    f1 = h @ a[:fo]
    f2 = h @ a[fo:]
    e = f1 + jnp.swapaxes(f2, -1, -2)
    e = jnp.where(e > 0, e, alpha * e)
    e = jnp.where(adj > 0, e, -9e15)
    att = jax.nn.softmax(e, axis=-1)
    hp = att @ h
    return jax.nn.elu(hp) if concat else hp


def _gat_ref(x, adj, raw, alpha):
    xcat = jnp.concatenate([_gat_layer_ref(x, adj, W, a, alpha, True)
                            for (W, a) in raw["heads"]], axis=-1)
    out = _gat_layer_ref(xcat, adj, raw["out_W"], raw["out_a"], alpha, False)
    return jax.nn.elu(out) + x


def lstm_decoder_ref(raw_slot, raw_global, lin, encoded_hiddens, seq_lens,
                     global_adj, slot_adj, intent_embedding, alpha):
    B = len(seq_lens)
    num_intent = intent_embedding.shape[0]
    slot_out = _gat_ref(encoded_hiddens, slot_adj, raw_slot, alpha)
    intent_in = jnp.broadcast_to(intent_embedding[None], (B,) + intent_embedding.shape)
    g_in = jnp.concatenate([intent_in, slot_out], axis=1)
    g_out = _gat_ref(g_in, global_adj, raw_global, alpha)
    h = g_out @ lin["w1"] + lin["b1"]
    h = jnp.where(h > 0, h, alpha * h)
    out = h @ lin["w2"] + lin["b2"]
    return jnp.concatenate([out[i, num_intent:num_intent + int(seq_lens[i])]
                            for i in range(B)], axis=0)


# ----------------------------------------------------------------------------
if __name__ == "__main__":
    batch = 4
    max_seq_len = 8        # slot-graph nodes
    num_intent = 4
    hidden_dim = 32        # decoder hidden dim (GAT nfeat == nclass)
    gat_hidden = 16        # args.decoder_gat_hidden_dim
    n_heads = 4            # args.n_heads
    output_dim = 8         # number of slot labels
    alpha = 0.2            # args.alpha
    seq_lens = [5, 7, 8, 3]

    key = jax.random.PRNGKey(0)
    k = jax.random.split(key, 10)

    raw_slot = init_gat_raw(k[0], hidden_dim, gat_hidden, hidden_dim, n_heads)
    raw_global = init_gat_raw(k[1], hidden_dim, gat_hidden, hidden_dim, n_heads)
    lin = {
        "w1": jax.random.normal(k[2], (hidden_dim, hidden_dim), jnp.float32) * 0.1,
        "b1": jnp.zeros((1, hidden_dim), jnp.float32),
        "w2": jax.random.normal(k[3], (hidden_dim, output_dim), jnp.float32) * 0.1,
        "b2": jnp.zeros((1, output_dim), jnp.float32),
    }
    params = {
        "slot_graph": pack_gat(raw_slot, gat_hidden),
        "global_graph": pack_gat(raw_global, gat_hidden),
        "lin_w1": lin["w1"], "lin_b1": lin["b1"],
        "lin_w2": lin["w2"], "lin_b2": lin["b2"],
        "nheads": n_heads, "fh": gat_hidden,
    }

    encoded_hiddens = jax.random.normal(k[4], (batch, max_seq_len, hidden_dim), jnp.float32)
    intent_embedding = jax.random.normal(k[5], (num_intent, hidden_dim), jnp.float32)

    n_global = num_intent + max_seq_len
    slot_adj = (jax.random.uniform(k[6], (batch, max_seq_len, max_seq_len)) > 0.5
                ).astype(jnp.float32)
    slot_adj = jnp.maximum(slot_adj, jnp.eye(max_seq_len)[None])        # self loops
    global_adj = (jax.random.uniform(k[7], (batch, n_global, n_global)) > 0.5
                  ).astype(jnp.float32)
    global_adj = jnp.maximum(global_adj, jnp.eye(n_global)[None])       # self loops

    # TODO(synk): LSTMDecoder's optional embedding/LSTM teacher-forcing branch
    # (embedding_dim is not None) is never used by this forward path and is omitted.

    ref = lstm_decoder_ref(raw_slot, raw_global, lin, encoded_hiddens, seq_lens,
                           global_adj, slot_adj, intent_embedding, alpha)

    # --- f32 compute path: tight parity with the torch-equivalent reference ---
    out_f32 = lstm_decoder_forward(params, encoded_hiddens, seq_lens, global_adj,
                                   slot_adj, intent_embedding, alpha=alpha,
                                   compute_dtype=jnp.float32)
    out_f32 = jax.block_until_ready(out_f32)
    assert out_f32.shape == (sum(seq_lens), output_dim), out_f32.shape
    assert bool(jnp.all(jnp.isfinite(out_f32)))
    assert bool(jnp.allclose(out_f32, ref, rtol=5e-2, atol=5e-2)), (
        "f32 max abs diff vs reference: %f" % float(jnp.max(jnp.abs(out_f32 - ref))))

    # --- bf16 MXU operands (default perf config): looser numeric check ---
    out_bf16 = lstm_decoder_forward(params, encoded_hiddens, seq_lens, global_adj,
                                    slot_adj, intent_embedding, alpha=alpha,
                                    compute_dtype=jnp.bfloat16)
    out_bf16 = jax.block_until_ready(out_bf16)
    assert out_bf16.shape == (sum(seq_lens), output_dim), out_bf16.shape
    assert bool(jnp.all(jnp.isfinite(out_bf16)))
    assert bool(jnp.allclose(out_bf16, ref, rtol=2.5e-1, atol=2.5e-1)), (
        "bf16 max abs diff vs reference: %f" % float(jnp.max(jnp.abs(out_bf16 - ref))))

    print("KERNEL_OK")
</pallas_src>

<mosaic_0001>
module attributes {stable_mosaic.version = 11 : i64} {
  func.func @_decoder_kernel(%arg0: i32, %arg1: memref<2x8x32xf32, #tpu.memory_space<vmem>>, %arg2: memref<2x8x8xf32, #tpu.memory_space<vmem>>, %arg3: memref<2x16x16xf32, #tpu.memory_space<vmem>>, %arg4: memref<8x32xf32, #tpu.memory_space<vmem>>, %arg5: memref<2x32x64xf32, #tpu.memory_space<vmem>>, %arg6: memref<2x64x8xf32, #tpu.memory_space<vmem>>, %arg7: memref<2x64x32xf32, #tpu.memory_space<vmem>>, %arg8: memref<2x32x2xf32, #tpu.memory_space<vmem>>, %arg9: memref<32x32xf32, #tpu.memory_space<vmem>>, %arg10: memref<1x32xf32, #tpu.memory_space<vmem>>, %arg11: memref<32x128xf32, #tpu.memory_space<vmem>>, %arg12: memref<1x128xf32, #tpu.memory_space<vmem>>, %arg13: memref<2x8x128xf32, #tpu.memory_space<vmem>>) attributes {dimension_semantics = [#tpu.dimension_semantics<parallel>], iteration_bounds = array<i64: 2>, scalar_prefetch = 0 : i64, scratch_operands = 0 : i64, tpu.core_type = #tpu.core_type<tc>, window_params = [{transform_indices = @transform_0, window_bounds = array<i64: 2, 8, 32>}, {transform_indices = @transform_1, window_bounds = array<i64: 2, 8, 8>}, {transform_indices = @transform_2, window_bounds = array<i64: 2, 16, 16>}, {pipeline_mode = #tpu.pipeline_mode<synchronous>, transform_indices = @transform_3, window_bounds = array<i64: 8, 32>}, {pipeline_mode = #tpu.pipeline_mode<synchronous>, transform_indices = @transform_4, window_bounds = array<i64: 2, 32, 64>}, {pipeline_mode = #tpu.pipeline_mode<synchronous>, transform_indices = @transform_5, window_bounds = array<i64: 2, 64, 8>}, {pipeline_mode = #tpu.pipeline_mode<synchronous>, transform_indices = @transform_6, window_bounds = array<i64: 2, 64, 32>}, {pipeline_mode = #tpu.pipeline_mode<synchronous>, transform_indices = @transform_7, window_bounds = array<i64: 2, 32, 2>}, {pipeline_mode = #tpu.pipeline_mode<synchronous>, transform_indices = @transform_8, window_bounds = array<i64: 32, 32>}, {pipeline_mode = #tpu.pipeline_mode<synchronous>, transform_indices = @transform_9, window_bounds = array<i64: 1, 32>}, {pipeline_mode = #tpu.pipeline_mode<synchronous>, transform_indices = @transform_10, window_bounds = array<i64: 32, 128>}, {pipeline_mode = #tpu.pipeline_mode<synchronous>, transform_indices = @transform_11, window_bounds = array<i64: 1, 128>}, {transform_indices = @transform_12, window_bounds = array<i64: 2, 8, 128>}]} {
    %c0 = arith.constant 0 : index
    %c0_0 = arith.constant 0 : index
    %c0_1 = arith.constant 0 : index
    %0 = vector.load %arg1[%c0, %c0_0, %c0_1] : memref<2x8x32xf32, #tpu.memory_space<vmem>>, vector<2x8x32xf32>
    %c0_2 = arith.constant 0 : index
    %c0_3 = arith.constant 0 : index
    %c0_4 = arith.constant 0 : index
    %1 = vector.load %arg2[%c0_2, %c0_3, %c0_4] : memref<2x8x8xf32, #tpu.memory_space<vmem>>, vector<2x8x8xf32>
    %c0_5 = arith.constant 0 : index
    %c0_6 = arith.constant 0 : index
    %c0_7 = arith.constant 0 : index
    %2 = vector.load %arg5[%c0_5, %c0_6, %c0_7] : memref<2x32x64xf32, #tpu.memory_space<vmem>>, vector<1x32x64xf32>
    %3 = vector.shape_cast %2 : vector<1x32x64xf32> to vector<32x64xf32>
    %c0_8 = arith.constant 0 : index
    %c0_9 = arith.constant 0 : index
    %c0_10 = arith.constant 0 : index
    %4 = vector.load %arg6[%c0_8, %c0_9, %c0_10] : memref<2x64x8xf32, #tpu.memory_space<vmem>>, vector<1x64x8xf32>
    %5 = vector.shape_cast %4 : vector<1x64x8xf32> to vector<64x8xf32>
    %c0_11 = arith.constant 0 : index
    %c0_12 = arith.constant 0 : index
    %c0_13 = arith.constant 0 : index
    %6 = vector.load %arg7[%c0_11, %c0_12, %c0_13] : memref<2x64x32xf32, #tpu.memory_space<vmem>>, vector<1x64x32xf32>
    %7 = vector.shape_cast %6 : vector<1x64x32xf32> to vector<64x32xf32>
    %c0_14 = arith.constant 0 : index
    %c0_15 = arith.constant 0 : index
    %c0_16 = arith.constant 0 : index
    %8 = vector.load %arg8[%c0_14, %c0_15, %c0_16] : memref<2x32x2xf32, #tpu.memory_space<vmem>>, vector<1x32x2xf32>
    %9 = vector.shape_cast %8 : vector<1x32x2xf32> to vector<32x2xf32>
    %cst = arith.constant 0.000000e+00 : f32
    %10 = vector.broadcast %cst : f32 to vector<2x8x8xf32>
    %11 = arith.cmpf ogt, %1, %10 : vector<2x8x8xf32>
    %12 = vector.shape_cast %0 : vector<2x8x32xf32> to vector<16x32xf32>
    %cst_17 = arith.constant dense<0.000000e+00> : vector<16x64xf32>
    %13 = tpu.matmul %12, %3, %cst_17 {dimension_numbers = #tpu.dot_dimension_numbers<[1], [0], [0], [1], [0, 0, 1, 1], [], []>} : vector<16x32xf32>, vector<32x64xf32>, vector<16x64xf32> -> vector<16x64xf32>
    %cst_18 = arith.constant dense<0.000000e+00> : vector<16x8xf32>
    %14 = tpu.matmul %13, %5, %cst_18 {dimension_numbers = #tpu.dot_dimension_numbers<[1], [0], [0], [1], [0, 0, 1, 1], [], []>} : vector<16x64xf32>, vector<64x8xf32>, vector<16x8xf32> -> vector<16x8xf32>
    %15 = vector.shape_cast %13 : vector<16x64xf32> to vector<2x8x64xf32>
    %16 = vector.shape_cast %14 : vector<16x8xf32> to vector<2x8x8xf32>
    %17 = tpu.transpose %16, [0, 2, 1] : vector<2x8x8xf32> -> vector<2x8x8xf32>
    %18 = vector.extract_strided_slice %16 {offsets = [0, 0, 0], sizes = [2, 8, 1], strides = [1, 1, 1]} : vector<2x8x8xf32> to vector<2x8x1xf32>
    %19 = vector.extract_strided_slice %17 {offsets = [0, 1, 0], sizes = [2, 1, 8], strides = [1, 1, 1]} : vector<2x8x8xf32> to vector<2x1x8xf32>
    %20 = vector.broadcast %18 : vector<2x8x1xf32> to vector<2x8x8xf32>
    %21 = vector.broadcast %19 : vector<2x1x8xf32> to vector<2x8x8xf32>
    %22 = arith.addf %20, %21 : vector<2x8x8xf32>
    %cst_19 = arith.constant 0.000000e+00 : f32
    %23 = vector.broadcast %cst_19 : f32 to vector<2x8x8xf32>
    %24 = arith.cmpf ogt, %22, %23 : vector<2x8x8xf32>
    %cst_20 = arith.constant 2.000000e-01 : f32
    %25 = vector.broadcast %cst_20 : f32 to vector<2x8x8xf32>
    %26 = arith.mulf %25, %22 : vector<2x8x8xf32>
    %27 = arith.select %24, %22, %26 : vector<2x8x8xi1>, vector<2x8x8xf32>
    %cst_21 = arith.constant -9.000000e+15 : f32
    %28 = vector.broadcast %cst_21 : f32 to vector<2x8x8xf32>
    %29 = arith.select %11, %27, %28 : vector<2x8x8xi1>, vector<2x8x8xf32>
    %cst_22 = arith.constant dense<0xFF800000> : vector<2x8xf32>
    %30 = vector.multi_reduction <maximumf>, %29, %cst_22 [2] : vector<2x8x8xf32> to vector<2x8xf32>
    %31 = vector.shape_cast %30 : vector<2x8xf32> to vector<2x8x1xf32>
    %32 = vector.broadcast %31 : vector<2x8x1xf32> to vector<2x8x8xf32>
    %33 = arith.subf %29, %32 : vector<2x8x8xf32>
    %34 = math.exp %33 : vector<2x8x8xf32>
    %cst_23 = arith.constant dense<0.000000e+00> : vector<2x8xf32>
    %35 = vector.multi_reduction <add>, %34, %cst_23 [2] : vector<2x8x8xf32> to vector<2x8xf32>
    %36 = vector.shape_cast %35 : vector<2x8xf32> to vector<2x8x1xf32>
    %37 = tpu.reciprocal %36 {approx = true} : vector<2x8x1xf32> -> vector<2x8x1xf32>
    %38 = vector.broadcast %37 : vector<2x8x1xf32> to vector<2x8x8xf32>
    %39 = arith.mulf %34, %38 : vector<2x8x8xf32>
    %40 = vector.extract_strided_slice %15 {offsets = [0, 0, 0], sizes = [2, 8, 16], strides = [1, 1, 1]} : vector<2x8x64xf32> to vector<2x8x16xf32>
    "tpu.trace_start"() <{level = 10 : i32, message = "bij,bjd->bid"}> : () -> ()
    %cst_24 = arith.constant dense<0.000000e+00> : vector<2x8x16xf32>
    %41 = tpu.matmul %39, %40, %cst_24 {dimension_numbers = #tpu.dot_dimension_numbers<[2], [1], [1], [2], [0, 0, 0, 1, 1, 2], [0], [0]>} : vector<2x8x8xf32>, vector<2x8x16xf32>, vector<2x8x16xf32> -> vector<2x8x16xf32>
    %cst_25 = arith.constant 0.000000e+00 : f32
    "tpu.trace_stop"() : () -> ()
    %42 = vector.broadcast %cst_25 : f32 to vector<2x8x16xf32>
    %43 = arith.cmpf ogt, %41, %42 : vector<2x8x16xf32>
    %cst_26 = arith.constant 0.000000e+00 : f32
    %44 = vector.broadcast %cst_26 : f32 to vector<2x8x16xf32>
    %45 = arith.minimumf %41, %44 : vector<2x8x16xf32>
    %46 = math.exp %45 : vector<2x8x16xf32>
    %cst_27 = arith.constant 1.000000e+00 : f32
    %47 = vector.broadcast %cst_27 : f32 to vector<2x8x16xf32>
    %48 = arith.subf %46, %47 : vector<2x8x16xf32>
    %49 = arith.select %43, %41, %48 : vector<2x8x16xi1>, vector<2x8x16xf32>
    %50 = vector.extract_strided_slice %16 {offsets = [0, 0, 2], sizes = [2, 8, 1], strides = [1, 1, 1]} : vector<2x8x8xf32> to vector<2x8x1xf32>
    %51 = vector.extract_strided_slice %17 {offsets = [0, 3, 0], sizes = [2, 1, 8], strides = [1, 1, 1]} : vector<2x8x8xf32> to vector<2x1x8xf32>
    %52 = vector.broadcast %50 : vector<2x8x1xf32> to vector<2x8x8xf32>
    %53 = vector.broadcast %51 : vector<2x1x8xf32> to vector<2x8x8xf32>
    %54 = arith.addf %52, %53 : vector<2x8x8xf32>
    %cst_28 = arith.constant 0.000000e+00 : f32
    %55 = vector.broadcast %cst_28 : f32 to vector<2x8x8xf32>
    %56 = arith.cmpf ogt, %54, %55 : vector<2x8x8xf32>
    %cst_29 = arith.constant 2.000000e-01 : f32
    %57 = vector.broadcast %cst_29 : f32 to vector<2x8x8xf32>
    %58 = arith.mulf %57, %54 : vector<2x8x8xf32>
    %59 = arith.select %56, %54, %58 : vector<2x8x8xi1>, vector<2x8x8xf32>
    %cst_30 = arith.constant -9.000000e+15 : f32
    %60 = vector.broadcast %cst_30 : f32 to vector<2x8x8xf32>
    %61 = arith.select %11, %59, %60 : vector<2x8x8xi1>, vector<2x8x8xf32>
    %cst_31 = arith.constant dense<0xFF800000> : vector<2x8xf32>
    %62 = vector.multi_reduction <maximumf>, %61, %cst_31 [2] : vector<2x8x8xf32> to vector<2x8xf32>
    %63 = vector.shape_cast %62 : vector<2x8xf32> to vector<2x8x1xf32>
    %64 = vector.broadcast %63 : vector<2x8x1xf32> to vector<2x8x8xf32>
    %65 = arith.subf %61, %64 : vector<2x8x8xf32>
    %66 = math.exp %65 : vector<2x8x8xf32>
    %cst_32 = arith.constant dense<0.000000e+00> : vector<2x8xf32>
    %67 = vector.multi_reduction <add>, %66, %cst_32 [2] : vector<2x8x8xf32> to vector<2x8xf32>
    %68 = vector.shape_cast %67 : vector<2x8xf32> to vector<2x8x1xf32>
    %69 = tpu.reciprocal %68 {approx = true} : vector<2x8x1xf32> -> vector<2x8x1xf32>
    %70 = vector.broadcast %69 : vector<2x8x1xf32> to vector<2x8x8xf32>
    %71 = arith.mulf %66, %70 : vector<2x8x8xf32>
    %72 = vector.extract_strided_slice %15 {offsets = [0, 0, 16], sizes = [2, 8, 16], strides = [1, 1, 1]} : vector<2x8x64xf32> to vector<2x8x16xf32>
    "tpu.trace_start"() <{level = 10 : i32, message = "bij,bjd->bid"}> : () -> ()
    %cst_33 = arith.constant dense<0.000000e+00> : vector<2x8x16xf32>
    %73 = tpu.matmul %71, %72, %cst_33 {dimension_numbers = #tpu.dot_dimension_numbers<[2], [1], [1], [2], [0, 0, 0, 1, 1, 2], [0], [0]>} : vector<2x8x8xf32>, vector<2x8x16xf32>, vector<2x8x16xf32> -> vector<2x8x16xf32>
    %cst_34 = arith.constant 0.000000e+00 : f32
    "tpu.trace_stop"() : () -> ()
    %74 = vector.broadcast %cst_34 : f32 to vector<2x8x16xf32>
    %75 = arith.cmpf ogt, %73, %74 : vector<2x8x16xf32>
    %cst_35 = arith.constant 0.000000e+00 : f32
    %76 = vector.broadcast %cst_35 : f32 to vector<2x8x16xf32>
    %77 = arith.minimumf %73, %76 : vector<2x8x16xf32>
    %78 = math.exp %77 : vector<2x8x16xf32>
    %cst_36 = arith.constant 1.000000e+00 : f32
    %79 = vector.broadcast %cst_36 : f32 to vector<2x8x16xf32>
    %80 = arith.subf %78, %79 : vector<2x8x16xf32>
    %81 = arith.select %75, %73, %80 : vector<2x8x16xi1>, vector<2x8x16xf32>
    %82 = vector.extract_strided_slice %16 {offsets = [0, 0, 4], sizes = [2, 8, 1], strides = [1, 1, 1]} : vector<2x8x8xf32> to vector<2x8x1xf32>
    %83 = vector.extract_strided_slice %17 {offsets = [0, 5, 0], sizes = [2, 1, 8], strides = [1, 1, 1]} : vector<2x8x8xf32> to vector<2x1x8xf32>
    %84 = vector.broadcast %82 : vector<2x8x1xf32> to vector<2x8x8xf32>
    %85 = vector.broadcast %83 : vector<2x1x8xf32> to vector<2x8x8xf32>
    %86 = arith.addf %84, %85 : vector<2x8x8xf32>
    %cst_37 = arith.constant 0.000000e+00 : f32
    %87 = vector.broadcast %cst_37 : f32 to vector<2x8x8xf32>
    %88 = arith.cmpf ogt, %86, %87 : vector<2x8x8xf32>
    %cst_38 = arith.constant 2.000000e-01 : f32
    %89 = vector.broadcast %cst_38 : f32 to vector<2x8x8xf32>
    %90 = arith.mulf %89, %86 : vector<2x8x8xf32>
    %91 = arith.select %88, %86, %90 : vector<2x8x8xi1>, vector<2x8x8xf32>
    %cst_39 = arith.constant -9.000000e+15 : f32
    %92 = vector.broadcast %cst_39 : f32 to vector<2x8x8xf32>
    %93 = arith.select %11, %91, %92 : vector<2x8x8xi1>, vector<2x8x8xf32>
    %cst_40 = arith.constant dense<0xFF800000> : vector<2x8xf32>
    %94 = vector.multi_reduction <maximumf>, %93, %cst_40 [2] : vector<2x8x8xf32> to vector<2x8xf32>
    %95 = vector.shape_cast %94 : vector<2x8xf32> to vector<2x8x1xf32>
    %96 = vector.broadcast %95 : vector<2x8x1xf32> to vector<2x8x8xf32>
    %97 = arith.subf %93, %96 : vector<2x8x8xf32>
    %98 = math.exp %97 : vector<2x8x8xf32>
    %cst_41 = arith.constant dense<0.000000e+00> : vector<2x8xf32>
    %99 = vector.multi_reduction <add>, %98, %cst_41 [2] : vector<2x8x8xf32> to vector<2x8xf32>
    %100 = vector.shape_cast %99 : vector<2x8xf32> to vector<2x8x1xf32>
    %101 = tpu.reciprocal %100 {approx = true} : vector<2x8x1xf32> -> vector<2x8x1xf32>
    %102 = vector.broadcast %101 : vector<2x8x1xf32> to vector<2x8x8xf32>
    %103 = arith.mulf %98, %102 : vector<2x8x8xf32>
    %104 = vector.extract_strided_slice %15 {offsets = [0, 0, 32], sizes = [2, 8, 16], strides = [1, 1, 1]} : vector<2x8x64xf32> to vector<2x8x16xf32>
    "tpu.trace_start"() <{level = 10 : i32, message = "bij,bjd->bid"}> : () -> ()
    %cst_42 = arith.constant dense<0.000000e+00> : vector<2x8x16xf32>
    %105 = tpu.matmul %103, %104, %cst_42 {dimension_numbers = #tpu.dot_dimension_numbers<[2], [1], [1], [2], [0, 0, 0, 1, 1, 2], [0], [0]>} : vector<2x8x8xf32>, vector<2x8x16xf32>, vector<2x8x16xf32> -> vector<2x8x16xf32>
    %cst_43 = arith.constant 0.000000e+00 : f32
    "tpu.trace_stop"() : () -> ()
    %106 = vector.broadcast %cst_43 : f32 to vector<2x8x16xf32>
    %107 = arith.cmpf ogt, %105, %106 : vector<2x8x16xf32>
    %cst_44 = arith.constant 0.000000e+00 : f32
    %108 = vector.broadcast %cst_44 : f32 to vector<2x8x16xf32>
    %109 = arith.minimumf %105, %108 : vector<2x8x16xf32>
    %110 = math.exp %109 : vector<2x8x16xf32>
    %cst_45 = arith.constant 1.000000e+00 : f32
    %111 = vector.broadcast %cst_45 : f32 to vector<2x8x16xf32>
    %112 = arith.subf %110, %111 : vector<2x8x16xf32>
    %113 = arith.select %107, %105, %112 : vector<2x8x16xi1>, vector<2x8x16xf32>
    %114 = vector.extract_strided_slice %16 {offsets = [0, 0, 6], sizes = [2, 8, 1], strides = [1, 1, 1]} : vector<2x8x8xf32> to vector<2x8x1xf32>
    %115 = vector.extract_strided_slice %17 {offsets = [0, 7, 0], sizes = [2, 1, 8], strides = [1, 1, 1]} : vector<2x8x8xf32> to vector<2x1x8xf32>
    %116 = vector.broadcast %114 : vector<2x8x1xf32> to vector<2x8x8xf32>
    %117 = vector.broadcast %115 : vector<2x1x8xf32> to vector<2x8x8xf32>
    %118 = arith.addf %116, %117 : vector<2x8x8xf32>
    %cst_46 = arith.constant 0.000000e+00 : f32
    %119 = vector.broadcast %cst_46 : f32 to vector<2x8x8xf32>
    %120 = arith.cmpf ogt, %118, %119 : vector<2x8x8xf32>
    %cst_47 = arith.constant 2.000000e-01 : f32
    %121 = vector.broadcast %cst_47 : f32 to vector<2x8x8xf32>
    %122 = arith.mulf %121, %118 : vector<2x8x8xf32>
    %123 = arith.select %120, %118, %122 : vector<2x8x8xi1>, vector<2x8x8xf32>
    %cst_48 = arith.constant -9.000000e+15 : f32
    %124 = vector.broadcast %cst_48 : f32 to vector<2x8x8xf32>
    %125 = arith.select %11, %123, %124 : vector<2x8x8xi1>, vector<2x8x8xf32>
    %cst_49 = arith.constant dense<0xFF800000> : vector<2x8xf32>
    %126 = vector.multi_reduction <maximumf>, %125, %cst_49 [2] : vector<2x8x8xf32> to vector<2x8xf32>
    %127 = vector.shape_cast %126 : vector<2x8xf32> to vector<2x8x1xf32>
    %128 = vector.broadcast %127 : vector<2x8x1xf32> to vector<2x8x8xf32>
    %129 = arith.subf %125, %128 : vector<2x8x8xf32>
    %130 = math.exp %129 : vector<2x8x8xf32>
    %cst_50 = arith.constant dense<0.000000e+00> : vector<2x8xf32>
    %131 = vector.multi_reduction <add>, %130, %cst_50 [2] : vector<2x8x8xf32> to vector<2x8xf32>
    %132 = vector.shape_cast %131 : vector<2x8xf32> to vector<2x8x1xf32>
    %133 = tpu.reciprocal %132 {approx = true} : vector<2x8x1xf32> -> vector<2x8x1xf32>
    %134 = vector.broadcast %133 : vector<2x8x1xf32> to vector<2x8x8xf32>
    %135 = arith.mulf %130, %134 : vector<2x8x8xf32>
    %136 = vector.extract_strided_slice %15 {offsets = [0, 0, 48], sizes = [2, 8, 16], strides = [1, 1, 1]} : vector<2x8x64xf32> to vector<2x8x16xf32>
    "tpu.trace_start"() <{level = 10 : i32, message = "bij,bjd->bid"}> : () -> ()
    %cst_51 = arith.constant dense<0.000000e+00> : vector<2x8x16xf32>
    %137 = tpu.matmul %135, %136, %cst_51 {dimension_numbers = #tpu.dot_dimension_numbers<[2], [1], [1], [2], [0, 0, 0, 1, 1, 2], [0], [0]>} : vector<2x8x8xf32>, vector<2x8x16xf32>, vector<2x8x16xf32> -> vector<2x8x16xf32>
    %cst_52 = arith.constant 0.000000e+00 : f32
    "tpu.trace_stop"() : () -> ()
    %138 = vector.broadcast %cst_52 : f32 to vector<2x8x16xf32>
    %139 = arith.cmpf ogt, %137, %138 : vector<2x8x16xf32>
    %cst_53 = arith.constant 0.000000e+00 : f32
    %140 = vector.broadcast %cst_53 : f32 to vector<2x8x16xf32>
    %141 = arith.minimumf %137, %140 : vector<2x8x16xf32>
    %142 = math.exp %141 : vector<2x8x16xf32>
    %cst_54 = arith.constant 1.000000e+00 : f32
    %143 = vector.broadcast %cst_54 : f32 to vector<2x8x16xf32>
    %144 = arith.subf %142, %143 : vector<2x8x16xf32>
    %145 = arith.select %139, %137, %144 : vector<2x8x16xi1>, vector<2x8x16xf32>
    %146 = tpu.concatenate %49, %81, %113, %145 in 2 : vector<2x8x16xf32>, vector<2x8x16xf32>, vector<2x8x16xf32>, vector<2x8x16xf32> -> vector<2x8x64xf32>
    %147 = vector.shape_cast %146 : vector<2x8x64xf32> to vector<16x64xf32>
    %cst_55 = arith.constant dense<0.000000e+00> : vector<16x32xf32>
    %148 = tpu.matmul %147, %7, %cst_55 {dimension_numbers = #tpu.dot_dimension_numbers<[1], [0], [0], [1], [0, 0, 1, 1], [], []>} : vector<16x64xf32>, vector<64x32xf32>, vector<16x32xf32> -> vector<16x32xf32>
    %cst_56 = arith.constant dense<0.000000e+00> : vector<16x2xf32>
    %149 = tpu.matmul %148, %9, %cst_56 {dimension_numbers = #tpu.dot_dimension_numbers<[1], [0], [0], [1], [0, 0, 1, 1], [], []>} : vector<16x32xf32>, vector<32x2xf32>, vector<16x2xf32> -> vector<16x2xf32>
    %150 = vector.shape_cast %149 : vector<16x2xf32> to vector<2x8x2xf32>
    %151 = tpu.transpose %150, [0, 2, 1] : vector<2x8x2xf32> -> vector<2x2x8xf32>
    %152 = vector.extract_strided_slice %150 {offsets = [0, 0, 0], sizes = [2, 8, 1], strides = [1, 1, 1]} : vector<2x8x2xf32> to vector<2x8x1xf32>
    %153 = vector.extract_strided_slice %151 {offsets = [0, 1, 0], sizes = [2, 1, 8], strides = [1, 1, 1]} : vector<2x2x8xf32> to vector<2x1x8xf32>
    %154 = vector.broadcast %152 : vector<2x8x1xf32> to vector<2x8x8xf32>
    %155 = vector.broadcast %153 : vector<2x1x8xf32> to vector<2x8x8xf32>
    %156 = arith.addf %154, %155 : vector<2x8x8xf32>
    %cst_57 = arith.constant 0.000000e+00 : f32
    %157 = vector.broadcast %cst_57 : f32 to vector<2x8x8xf32>
    %158 = arith.cmpf ogt, %156, %157 : vector<2x8x8xf32>
    %cst_58 = arith.constant 2.000000e-01 : f32
    %159 = vector.broadcast %cst_58 : f32 to vector<2x8x8xf32>
    %160 = arith.mulf %159, %156 : vector<2x8x8xf32>
    %161 = arith.select %158, %156, %160 : vector<2x8x8xi1>, vector<2x8x8xf32>
    %cst_59 = arith.constant -9.000000e+15 : f32
    %162 = vector.broadcast %cst_59 : f32 to vector<2x8x8xf32>
    %163 = arith.select %11, %161, %162 : vector<2x8x8xi1>, vector<2x8x8xf32>
    %cst_60 = arith.constant dense<0xFF800000> : vector<2x8xf32>
    %164 = vector.multi_reduction <maximumf>, %163, %cst_60 [2] : vector<2x8x8xf32> to vector<2x8xf32>
    %165 = vector.shape_cast %164 : vector<2x8xf32> to vector<2x8x1xf32>
    %166 = vector.broadcast %165 : vector<2x8x1xf32> to vector<2x8x8xf32>
    %167 = arith.subf %163, %166 : vector<2x8x8xf32>
    %168 = math.exp %167 : vector<2x8x8xf32>
    %cst_61 = arith.constant dense<0.000000e+00> : vector<2x8xf32>
    %169 = vector.multi_reduction <add>, %168, %cst_61 [2] : vector<2x8x8xf32> to vector<2x8xf32>
    %170 = vector.shape_cast %169 : vector<2x8xf32> to vector<2x8x1xf32>
    %171 = tpu.reciprocal %170 {approx = true} : vector<2x8x1xf32> -> vector<2x8x1xf32>
    %172 = vector.broadcast %171 : vector<2x8x1xf32> to vector<2x8x8xf32>
    %173 = arith.mulf %168, %172 : vector<2x8x8xf32>
    %174 = vector.shape_cast %148 : vector<16x32xf32> to vector<2x8x32xf32>
    "tpu.trace_start"() <{level = 10 : i32, message = "bij,bjd->bid"}> : () -> ()
    %cst_62 = arith.constant dense<0.000000e+00> : vector<2x8x32xf32>
    %175 = tpu.matmul %173, %174, %cst_62 {dimension_numbers = #tpu.dot_dimension_numbers<[2], [1], [1], [2], [0, 0, 0, 1, 1, 2], [0], [0]>} : vector<2x8x8xf32>, vector<2x8x32xf32>, vector<2x8x32xf32> -> vector<2x8x32xf32>
    %cst_63 = arith.constant 0.000000e+00 : f32
    "tpu.trace_stop"() : () -> ()
    %176 = vector.broadcast %cst_63 : f32 to vector<2x8x32xf32>
    %177 = arith.cmpf ogt, %175, %176 : vector<2x8x32xf32>
    %cst_64 = arith.constant 0.000000e+00 : f32
    %178 = vector.broadcast %cst_64 : f32 to vector<2x8x32xf32>
    %179 = arith.minimumf %175, %178 : vector<2x8x32xf32>
    %180 = math.exp %179 : vector<2x8x32xf32>
    %cst_65 = arith.constant 1.000000e+00 : f32
    %181 = vector.broadcast %cst_65 : f32 to vector<2x8x32xf32>
    %182 = arith.subf %180, %181 : vector<2x8x32xf32>
    %183 = arith.select %177, %175, %182 : vector<2x8x32xi1>, vector<2x8x32xf32>
    %184 = arith.addf %183, %0 : vector<2x8x32xf32>
    %c0_66 = arith.constant 0 : index
    %c0_67 = arith.constant 0 : index
    %185 = vector.load %arg4[%c0_66, %c0_67] : memref<8x32xf32, #tpu.memory_space<vmem>>, vector<8x32xf32>
    %186 = vector.shape_cast %185 : vector<8x32xf32> to vector<1x8x32xf32>
    %187 = vector.shape_cast %186 : vector<1x8x32xf32> to vector<1x8x32xf32>
    %188 = vector.broadcast %187 : vector<1x8x32xf32> to vector<2x8x32xf32>
    %189 = tpu.concatenate %184, %188 in 1 : vector<2x8x32xf32>, vector<2x8x32xf32> -> vector<2x16x32xf32>
    %c0_68 = arith.constant 0 : index
    %c0_69 = arith.constant 0 : index
    %c0_70 = arith.constant 0 : index
    %190 = vector.load %arg3[%c0_68, %c0_69, %c0_70] : memref<2x16x16xf32, #tpu.memory_space<vmem>>, vector<2x16x16xf32>
    %c1 = arith.constant 1 : index
    %c0_71 = arith.constant 0 : index
    %c0_72 = arith.constant 0 : index
    %191 = vector.load %arg5[%c1, %c0_71, %c0_72] : memref<2x32x64xf32, #tpu.memory_space<vmem>>, vector<1x32x64xf32>
    %192 = vector.shape_cast %191 : vector<1x32x64xf32> to vector<32x64xf32>
    %c1_73 = arith.constant 1 : index
    %c0_74 = arith.constant 0 : index
    %c0_75 = arith.constant 0 : index
    %193 = vector.load %arg6[%c1_73, %c0_74, %c0_75] : memref<2x64x8xf32, #tpu.memory_space<vmem>>, vector<1x64x8xf32>
    %194 = vector.shape_cast %193 : vector<1x64x8xf32> to vector<64x8xf32>
    %c1_76 = arith.constant 1 : index
    %c0_77 = arith.constant 0 : index
    %c0_78 = arith.constant 0 : index
    %195 = vector.load %arg7[%c1_76, %c0_77, %c0_78] : memref<2x64x32xf32, #tpu.memory_space<vmem>>, vector<1x64x32xf32>
    %196 = vector.shape_cast %195 : vector<1x64x32xf32> to vector<64x32xf32>
    %c1_79 = arith.constant 1 : index
    %c0_80 = arith.constant 0 : index
    %c0_81 = arith.constant 0 : index
    %197 = vector.load %arg8[%c1_79, %c0_80, %c0_81] : memref<2x32x2xf32, #tpu.memory_space<vmem>>, vector<1x32x2xf32>
    %198 = vector.shape_cast %197 : vector<1x32x2xf32> to vector<32x2xf32>
    %cst_82 = arith.constant 0.000000e+00 : f32
    %199 = vector.broadcast %cst_82 : f32 to vector<2x16x16xf32>
    %200 = arith.cmpf ogt, %190, %199 : vector<2x16x16xf32>
    %201 = vector.shape_cast %189 : vector<2x16x32xf32> to vector<32x32xf32>
    %cst_83 = arith.constant dense<0.000000e+00> : vector<32x64xf32>
    %202 = tpu.matmul %201, %192, %cst_83 {dimension_numbers = #tpu.dot_dimension_numbers<[1], [0], [0], [1], [0, 0, 1, 1], [], []>} : vector<32x32xf32>, vector<32x64xf32>, vector<32x64xf32> -> vector<32x64xf32>
    %cst_84 = arith.constant dense<0.000000e+00> : vector<32x8xf32>
    %203 = tpu.matmul %202, %194, %cst_84 {dimension_numbers = #tpu.dot_dimension_numbers<[1], [0], [0], [1], [0, 0, 1, 1], [], []>} : vector<32x64xf32>, vector<64x8xf32>, vector<32x8xf32> -> vector<32x8xf32>
    %204 = vector.shape_cast %202 : vector<32x64xf32> to vector<2x16x64xf32>
    %205 = vector.shape_cast %203 : vector<32x8xf32> to vector<2x16x8xf32>
    %206 = tpu.transpose %205, [0, 2, 1] : vector<2x16x8xf32> -> vector<2x8x16xf32>
    %207 = vector.extract_strided_slice %205 {offsets = [0, 0, 0], sizes = [2, 16, 1], strides = [1, 1, 1]} : vector<2x16x8xf32> to vector<2x16x1xf32>
    %208 = vector.extract_strided_slice %206 {offsets = [0, 1, 0], sizes = [2, 1, 16], strides = [1, 1, 1]} : vector<2x8x16xf32> to vector<2x1x16xf32>
    %209 = vector.broadcast %207 : vector<2x16x1xf32> to vector<2x16x16xf32>
    %210 = vector.broadcast %208 : vector<2x1x16xf32> to vector<2x16x16xf32>
    %211 = arith.addf %209, %210 : vector<2x16x16xf32>
    %cst_85 = arith.constant 0.000000e+00 : f32
    %212 = vector.broadcast %cst_85 : f32 to vector<2x16x16xf32>
    %213 = arith.cmpf ogt, %211, %212 : vector<2x16x16xf32>
    %cst_86 = arith.constant 2.000000e-01 : f32
    %214 = vector.broadcast %cst_86 : f32 to vector<2x16x16xf32>
    %215 = arith.mulf %214, %211 : vector<2x16x16xf32>
    %216 = arith.select %213, %211, %215 : vector<2x16x16xi1>, vector<2x16x16xf32>
    %cst_87 = arith.constant -9.000000e+15 : f32
    %217 = vector.broadcast %cst_87 : f32 to vector<2x16x16xf32>
    %218 = arith.select %200, %216, %217 : vector<2x16x16xi1>, vector<2x16x16xf32>
    %cst_88 = arith.constant dense<0xFF800000> : vector<2x16xf32>
    %219 = vector.multi_reduction <maximumf>, %218, %cst_88 [2] : vector<2x16x16xf32> to vector<2x16xf32>
    %220 = vector.shape_cast %219 : vector<2x16xf32> to vector<2x16x1xf32>
    %221 = vector.broadcast %220 : vector<2x16x1xf32> to vector<2x16x16xf32>
    %222 = arith.subf %218, %221 : vector<2x16x16xf32>
    %223 = math.exp %222 : vector<2x16x16xf32>
    %cst_89 = arith.constant dense<0.000000e+00> : vector<2x16xf32>
    %224 = vector.multi_reduction <add>, %223, %cst_89 [2] : vector<2x16x16xf32> to vector<2x16xf32>
    %225 = vector.shape_cast %224 : vector<2x16xf32> to vector<2x16x1xf32>
    %226 = tpu.reciprocal %225 {approx = true} : vector<2x16x1xf32> -> vector<2x16x1xf32>
    %227 = vector.broadcast %226 : vector<2x16x1xf32> to vector<2x16x16xf32>
    %228 = arith.mulf %223, %227 : vector<2x16x16xf32>
    %229 = vector.extract_strided_slice %204 {offsets = [0, 0, 0], sizes = [2, 16, 16], strides = [1, 1, 1]} : vector<2x16x64xf32> to vector<2x16x16xf32>
    "tpu.trace_start"() <{level = 10 : i32, message = "bij,bjd->bid"}> : () -> ()
    %cst_90 = arith.constant dense<0.000000e+00> : vector<2x16x16xf32>
    %230 = tpu.matmul %228, %229, %cst_90 {dimension_numbers = #tpu.dot_dimension_numbers<[2], [1], [1], [2], [0, 0, 0, 1, 1, 2], [0], [0]>} : vector<2x16x16xf32>, vector<2x16x16xf32>, vector<2x16x16xf32> -> vector<2x16x16xf32>
    %cst_91 = arith.constant 0.000000e+00 : f32
    "tpu.trace_stop"() : () -> ()
    %231 = vector.broadcast %cst_91 : f32 to vector<2x16x16xf32>
    %232 = arith.cmpf ogt, %230, %231 : vector<2x16x16xf32>
    %cst_92 = arith.constant 0.000000e+00 : f32
    %233 = vector.broadcast %cst_92 : f32 to vector<2x16x16xf32>
    %234 = arith.minimumf %230, %233 : vector<2x16x16xf32>
    %235 = math.exp %234 : vector<2x16x16xf32>
    %cst_93 = arith.constant 1.000000e+00 : f32
    %236 = vector.broadcast %cst_93 : f32 to vector<2x16x16xf32>
    %237 = arith.subf %235, %236 : vector<2x16x16xf32>
    %238 = arith.select %232, %230, %237 : vector<2x16x16xi1>, vector<2x16x16xf32>
    %239 = vector.extract_strided_slice %205 {offsets = [0, 0, 2], sizes = [2, 16, 1], strides = [1, 1, 1]} : vector<2x16x8xf32> to vector<2x16x1xf32>
    %240 = vector.extract_strided_slice %206 {offsets = [0, 3, 0], sizes = [2, 1, 16], strides = [1, 1, 1]} : vector<2x8x16xf32> to vector<2x1x16xf32>
    %241 = vector.broadcast %239 : vector<2x16x1xf32> to vector<2x16x16xf32>
    %242 = vector.broadcast %240 : vector<2x1x16xf32> to vector<2x16x16xf32>
    %243 = arith.addf %241, %242 : vector<2x16x16xf32>
    %cst_94 = arith.constant 0.000000e+00 : f32
    %244 = vector.broadcast %cst_94 : f32 to vector<2x16x16xf32>
    %245 = arith.cmpf ogt, %243, %244 : vector<2x16x16xf32>
    %cst_95 = arith.constant 2.000000e-01 : f32
    %246 = vector.broadcast %cst_95 : f32 to vector<2x16x16xf32>
    %247 = arith.mulf %246, %243 : vector<2x16x16xf32>
    %248 = arith.select %245, %243, %247 : vector<2x16x16xi1>, vector<2x16x16xf32>
    %cst_96 = arith.constant -9.000000e+15 : f32
    %249 = vector.broadcast %cst_96 : f32 to vector<2x16x16xf32>
    %250 = arith.select %200, %248, %249 : vector<2x16x16xi1>, vector<2x16x16xf32>
    %cst_97 = arith.constant dense<0xFF800000> : vector<2x16xf32>
    %251 = vector.multi_reduction <maximumf>, %250, %cst_97 [2] : vector<2x16x16xf32> to vector<2x16xf32>
    %252 = vector.shape_cast %251 : vector<2x16xf32> to vector<2x16x1xf32>
    %253 = vector.broadcast %252 : vector<2x16x1xf32> to vector<2x16x16xf32>
    %254 = arith.subf %250, %253 : vector<2x16x16xf32>
    %255 = math.exp %254 : vector<2x16x16xf32>
    %cst_98 = arith.constant dense<0.000000e+00> : vector<2x16xf32>
    %256 = vector.multi_reduction <add>, %255, %cst_98 [2] : vector<2x16x16xf32> to vector<2x16xf32>
    %257 = vector.shape_cast %256 : vector<2x16xf32> to vector<2x16x1xf32>
    %258 = tpu.reciprocal %257 {approx = true} : vector<2x16x1xf32> -> vector<2x16x1xf32>
    %259 = vector.broadcast %258 : vector<2x16x1xf32> to vector<2x16x16xf32>
    %260 = arith.mulf %255, %259 : vector<2x16x16xf32>
    %261 = vector.extract_strided_slice %204 {offsets = [0, 0, 16], sizes = [2, 16, 16], strides = [1, 1, 1]} : vector<2x16x64xf32> to vector<2x16x16xf32>
    "tpu.trace_start"() <{level = 10 : i32, message = "bij,bjd->bid"}> : () -> ()
    %cst_99 = arith.constant dense<0.000000e+00> : vector<2x16x16xf32>
    %262 = tpu.matmul %260, %261, %cst_99 {dimension_numbers = #tpu.dot_dimension_numbers<[2], [1], [1], [2], [0, 0, 0, 1, 1, 2], [0], [0]>} : vector<2x16x16xf32>, vector<2x16x16xf32>, vector<2x16x16xf32> -> vector<2x16x16xf32>
    %cst_100 = arith.constant 0.000000e+00 : f32
    "tpu.trace_stop"() : () -> ()
    %263 = vector.broadcast %cst_100 : f32 to vector<2x16x16xf32>
    %264 = arith.cmpf ogt, %262, %263 : vector<2x16x16xf32>
    %cst_101 = arith.constant 0.000000e+00 : f32
    %265 = vector.broadcast %cst_101 : f32 to vector<2x16x16xf32>
    %266 = arith.minimumf %262, %265 : vector<2x16x16xf32>
    %267 = math.exp %266 : vector<2x16x16xf32>
    %cst_102 = arith.constant 1.000000e+00 : f32
    %268 = vector.broadcast %cst_102 : f32 to vector<2x16x16xf32>
    %269 = arith.subf %267, %268 : vector<2x16x16xf32>
    %270 = arith.select %264, %262, %269 : vector<2x16x16xi1>, vector<2x16x16xf32>
    %271 = vector.extract_strided_slice %205 {offsets = [0, 0, 4], sizes = [2, 16, 1], strides = [1, 1, 1]} : vector<2x16x8xf32> to vector<2x16x1xf32>
    %272 = vector.extract_strided_slice %206 {offsets = [0, 5, 0], sizes = [2, 1, 16], strides = [1, 1, 1]} : vector<2x8x16xf32> to vector<2x1x16xf32>
    %273 = vector.broadcast %271 : vector<2x16x1xf32> to vector<2x16x16xf32>
    %274 = vector.broadcast %272 : vector<2x1x16xf32> to vector<2x16x16xf32>
    %275 = arith.addf %273, %274 : vector<2x16x16xf32>
    %cst_103 = arith.constant 0.000000e+00 : f32
    %276 = vector.broadcast %cst_103 : f32 to vector<2x16x16xf32>
    %277 = arith.cmpf ogt, %275, %276 : vector<2x16x16xf32>
    %cst_104 = arith.constant 2.000000e-01 : f32
    %278 = vector.broadcast %cst_104 : f32 to vector<2x16x16xf32>
    %279 = arith.mulf %278, %275 : vector<2x16x16xf32>
    %280 = arith.select %277, %275, %279 : vector<2x16x16xi1>, vector<2x16x16xf32>
    %cst_105 = arith.constant -9.000000e+15 : f32
    %281 = vector.broadcast %cst_105 : f32 to vector<2x16x16xf32>
    %282 = arith.select %200, %280, %281 : vector<2x16x16xi1>, vector<2x16x16xf32>
    %cst_106 = arith.constant dense<0xFF800000> : vector<2x16xf32>
    %283 = vector.multi_reduction <maximumf>, %282, %cst_106 [2] : vector<2x16x16xf32> to vector<2x16xf32>
    %284 = vector.shape_cast %283 : vector<2x16xf32> to vector<2x16x1xf32>
    %285 = vector.broadcast %284 : vector<2x16x1xf32> to vector<2x16x16xf32>
    %286 = arith.subf %282, %285 : vector<2x16x16xf32>
    %287 = math.exp %286 : vector<2x16x16xf32>
    %cst_107 = arith.constant dense<0.000000e+00> : vector<2x16xf32>
    %288 = vector.multi_reduction <add>, %287, %cst_107 [2] : vector<2x16x16xf32> to vector<2x16xf32>
    %289 = vector.shape_cast %288 : vector<2x16xf32> to vector<2x16x1xf32>
    %290 = tpu.reciprocal %289 {approx = true} : vector<2x16x1xf32> -> vector<2x16x1xf32>
    %291 = vector.broadcast %290 : vector<2x16x1xf32> to vector<2x16x16xf32>
    %292 = arith.mulf %287, %291 : vector<2x16x16xf32>
    %293 = vector.extract_strided_slice %204 {offsets = [0, 0, 32], sizes = [2, 16, 16], strides = [1, 1, 1]} : vector<2x16x64xf32> to vector<2x16x16xf32>
    "tpu.trace_start"() <{level = 10 : i32, message = "bij,bjd->bid"}> : () -> ()
    %cst_108 = arith.constant dense<0.000000e+00> : vector<2x16x16xf32>
    %294 = tpu.matmul %292, %293, %cst_108 {dimension_numbers = #tpu.dot_dimension_numbers<[2], [1], [1], [2], [0, 0, 0, 1, 1, 2], [0], [0]>} : vector<2x16x16xf32>, vector<2x16x16xf32>, vector<2x16x16xf32> -> vector<2x16x16xf32>
    %cst_109 = arith.constant 0.000000e+00 : f32
    "tpu.trace_stop"() : () -> ()
    %295 = vector.broadcast %cst_109 : f32 to vector<2x16x16xf32>
    %296 = arith.cmpf ogt, %294, %295 : vector<2x16x16xf32>
    %cst_110 = arith.constant 0.000000e+00 : f32
    %297 = vector.broadcast %cst_110 : f32 to vector<2x16x16xf32>
    %298 = arith.minimumf %294, %297 : vector<2x16x16xf32>
    %299 = math.exp %298 : vector<2x16x16xf32>
    %cst_111 = arith.constant 1.000000e+00 : f32
    %300 = vector.broadcast %cst_111 : f32 to vector<2x16x16xf32>
    %301 = arith.subf %299, %300 : vector<2x16x16xf32>
    %302 = arith.select %296, %294, %301 : vector<2x16x16xi1>, vector<2x16x16xf32>
    %303 = vector.extract_strided_slice %205 {offsets = [0, 0, 6], sizes = [2, 16, 1], strides = [1, 1, 1]} : vector<2x16x8xf32> to vector<2x16x1xf32>
    %304 = vector.extract_strided_slice %206 {offsets = [0, 7, 0], sizes = [2, 1, 16], strides = [1, 1, 1]} : vector<2x8x16xf32> to vector<2x1x16xf32>
    %305 = vector.broadcast %303 : vector<2x16x1xf32> to vector<2x16x16xf32>
    %306 = vector.broadcast %304 : vector<2x1x16xf32> to vector<2x16x16xf32>
    %307 = arith.addf %305, %306 : vector<2x16x16xf32>
    %cst_112 = arith.constant 0.000000e+00 : f32
    %308 = vector.broadcast %cst_112 : f32 to vector<2x16x16xf32>
    %309 = arith.cmpf ogt, %307, %308 : vector<2x16x16xf32>
    %cst_113 = arith.constant 2.000000e-01 : f32
    %310 = vector.broadcast %cst_113 : f32 to vector<2x16x16xf32>
    %311 = arith.mulf %310, %307 : vector<2x16x16xf32>
    %312 = arith.select %309, %307, %311 : vector<2x16x16xi1>, vector<2x16x16xf32>
    %cst_114 = arith.constant -9.000000e+15 : f32
    %313 = vector.broadcast %cst_114 : f32 to vector<2x16x16xf32>
    %314 = arith.select %200, %312, %313 : vector<2x16x16xi1>, vector<2x16x16xf32>
    %cst_115 = arith.constant dense<0xFF800000> : vector<2x16xf32>
    %315 = vector.multi_reduction <maximumf>, %314, %cst_115 [2] : vector<2x16x16xf32> to vector<2x16xf32>
    %316 = vector.shape_cast %315 : vector<2x16xf32> to vector<2x16x1xf32>
    %317 = vector.broadcast %316 : vector<2x16x1xf32> to vector<2x16x16xf32>
    %318 = arith.subf %314, %317 : vector<2x16x16xf32>
    %319 = math.exp %318 : vector<2x16x16xf32>
    %cst_116 = arith.constant dense<0.000000e+00> : vector<2x16xf32>
    %320 = vector.multi_reduction <add>, %319, %cst_116 [2] : vector<2x16x16xf32> to vector<2x16xf32>
    %321 = vector.shape_cast %320 : vector<2x16xf32> to vector<2x16x1xf32>
    %322 = tpu.reciprocal %321 {approx = true} : vector<2x16x1xf32> -> vector<2x16x1xf32>
    %323 = vector.broadcast %322 : vector<2x16x1xf32> to vector<2x16x16xf32>
    %324 = arith.mulf %319, %323 : vector<2x16x16xf32>
    %325 = vector.extract_strided_slice %204 {offsets = [0, 0, 48], sizes = [2, 16, 16], strides = [1, 1, 1]} : vector<2x16x64xf32> to vector<2x16x16xf32>
    "tpu.trace_start"() <{level = 10 : i32, message = "bij,bjd->bid"}> : () -> ()
    %cst_117 = arith.constant dense<0.000000e+00> : vector<2x16x16xf32>
    %326 = tpu.matmul %324, %325, %cst_117 {dimension_numbers = #tpu.dot_dimension_numbers<[2], [1], [1], [2], [0, 0, 0, 1, 1, 2], [0], [0]>} : vector<2x16x16xf32>, vector<2x16x16xf32>, vector<2x16x16xf32> -> vector<2x16x16xf32>
    %cst_118 = arith.constant 0.000000e+00 : f32
    "tpu.trace_stop"() : () -> ()
    %327 = vector.broadcast %cst_118 : f32 to vector<2x16x16xf32>
    %328 = arith.cmpf ogt, %326, %327 : vector<2x16x16xf32>
    %cst_119 = arith.constant 0.000000e+00 : f32
    %329 = vector.broadcast %cst_119 : f32 to vector<2x16x16xf32>
    %330 = arith.minimumf %326, %329 : vector<2x16x16xf32>
    %331 = math.exp %330 : vector<2x16x16xf32>
    %cst_120 = arith.constant 1.000000e+00 : f32
    %332 = vector.broadcast %cst_120 : f32 to vector<2x16x16xf32>
    %333 = arith.subf %331, %332 : vector<2x16x16xf32>
    %334 = arith.select %328, %326, %333 : vector<2x16x16xi1>, vector<2x16x16xf32>
    %335 = tpu.concatenate %238, %270, %302, %334 in 2 : vector<2x16x16xf32>, vector<2x16x16xf32>, vector<2x16x16xf32>, vector<2x16x16xf32> -> vector<2x16x64xf32>
    %336 = vector.shape_cast %335 : vector<2x16x64xf32> to vector<32x64xf32>
    %cst_121 = arith.constant dense<0.000000e+00> : vector<32x32xf32>
    %337 = tpu.matmul %336, %196, %cst_121 {dimension_numbers = #tpu.dot_dimension_numbers<[1], [0], [0], [1], [0, 0, 1, 1], [], []>} : vector<32x64xf32>, vector<64x32xf32>, vector<32x32xf32> -> vector<32x32xf32>
    %cst_122 = arith.constant dense<0.000000e+00> : vector<32x2xf32>
    %338 = tpu.matmul %337, %198, %cst_122 {dimension_numbers = #tpu.dot_dimension_numbers<[1], [0], [0], [1], [0, 0, 1, 1], [], []>} : vector<32x32xf32>, vector<32x2xf32>, vector<32x2xf32> -> vector<32x2xf32>
    %339 = vector.shape_cast %338 : vector<32x2xf32> to vector<2x16x2xf32>
    %340 = tpu.transpose %339, [0, 2, 1] : vector<2x16x2xf32> -> vector<2x2x16xf32>
    %341 = vector.extract_strided_slice %339 {offsets = [0, 0, 0], sizes = [2, 16, 1], strides = [1, 1, 1]} : vector<2x16x2xf32> to vector<2x16x1xf32>
    %342 = vector.extract_strided_slice %340 {offsets = [0, 1, 0], sizes = [2, 1, 16], strides = [1, 1, 1]} : vector<2x2x16xf32> to vector<2x1x16xf32>
    %343 = vector.broadcast %341 : vector<2x16x1xf32> to vector<2x16x16xf32>
    %344 = vector.broadcast %342 : vector<2x1x16xf32> to vector<2x16x16xf32>
    %345 = arith.addf %343, %344 : vector<2x16x16xf32>
    %cst_123 = arith.constant 0.000000e+00 : f32
    %346 = vector.broadcast %cst_123 : f32 to vector<2x16x16xf32>
    %347 = arith.cmpf ogt, %345, %346 : vector<2x16x16xf32>
    %cst_124 = arith.constant 2.000000e-01 : f32
    %348 = vector.broadcast %cst_124 : f32 to vector<2x16x16xf32>
    %349 = arith.mulf %348, %345 : vector<2x16x16xf32>
    %350 = arith.select %347, %345, %349 : vector<2x16x16xi1>, vector<2x16x16xf32>
    %cst_125 = arith.constant -9.000000e+15 : f32
    %351 = vector.broadcast %cst_125 : f32 to vector<2x16x16xf32>
    %352 = arith.select %200, %350, %351 : vector<2x16x16xi1>, vector<2x16x16xf32>
    %cst_126 = arith.constant dense<0xFF800000> : vector<2x16xf32>
    %353 = vector.multi_reduction <maximumf>, %352, %cst_126 [2] : vector<2x16x16xf32> to vector<2x16xf32>
    %354 = vector.shape_cast %353 : vector<2x16xf32> to vector<2x16x1xf32>
    %355 = vector.broadcast %354 : vector<2x16x1xf32> to vector<2x16x16xf32>
    %356 = arith.subf %352, %355 : vector<2x16x16xf32>
    %357 = math.exp %356 : vector<2x16x16xf32>
    %cst_127 = arith.constant dense<0.000000e+00> : vector<2x16xf32>
    %358 = vector.multi_reduction <add>, %357, %cst_127 [2] : vector<2x16x16xf32> to vector<2x16xf32>
    %359 = vector.shape_cast %358 : vector<2x16xf32> to vector<2x16x1xf32>
    %360 = tpu.reciprocal %359 {approx = true} : vector<2x16x1xf32> -> vector<2x16x1xf32>
    %361 = vector.broadcast %360 : vector<2x16x1xf32> to vector<2x16x16xf32>
    %362 = arith.mulf %357, %361 : vector<2x16x16xf32>
    %363 = vector.shape_cast %337 : vector<32x32xf32> to vector<2x16x32xf32>
    "tpu.trace_start"() <{level = 10 : i32, message = "bij,bjd->bid"}> : () -> ()
    %cst_128 = arith.constant dense<0.000000e+00> : vector<2x16x32xf32>
    %364 = tpu.matmul %362, %363, %cst_128 {dimension_numbers = #tpu.dot_dimension_numbers<[2], [1], [1], [2], [0, 0, 0, 1, 1, 2], [0], [0]>} : vector<2x16x16xf32>, vector<2x16x32xf32>, vector<2x16x32xf32> -> vector<2x16x32xf32>
    %cst_129 = arith.constant 0.000000e+00 : f32
    "tpu.trace_stop"() : () -> ()
    %365 = vector.broadcast %cst_129 : f32 to vector<2x16x32xf32>
    %366 = arith.cmpf ogt, %364, %365 : vector<2x16x32xf32>
    %cst_130 = arith.constant 0.000000e+00 : f32
    %367 = vector.broadcast %cst_130 : f32 to vector<2x16x32xf32>
    %368 = arith.minimumf %364, %367 : vector<2x16x32xf32>
    %369 = math.exp %368 : vector<2x16x32xf32>
    %cst_131 = arith.constant 1.000000e+00 : f32
    %370 = vector.broadcast %cst_131 : f32 to vector<2x16x32xf32>
    %371 = arith.subf %369, %370 : vector<2x16x32xf32>
    %372 = arith.select %366, %364, %371 : vector<2x16x32xi1>, vector<2x16x32xf32>
    %373 = arith.addf %372, %189 : vector<2x16x32xf32>
    %374 = vector.extract_strided_slice %373 {offsets = [0, 0, 0], sizes = [2, 8, 32], strides = [1, 1, 1]} : vector<2x16x32xf32> to vector<2x8x32xf32>
    %375 = vector.shape_cast %374 : vector<2x8x32xf32> to vector<16x32xf32>
    %c0_132 = arith.constant 0 : index
    %c0_133 = arith.constant 0 : index
    %376 = vector.load %arg9[%c0_132, %c0_133] : memref<32x32xf32, #tpu.memory_space<vmem>>, vector<32x32xf32>
    %cst_134 = arith.constant dense<0.000000e+00> : vector<16x32xf32>
    %377 = tpu.matmul %375, %376, %cst_134 {dimension_numbers = #tpu.dot_dimension_numbers<[1], [0], [0], [1], [0, 0, 1, 1], [], []>} : vector<16x32xf32>, vector<32x32xf32>, vector<16x32xf32> -> vector<16x32xf32>
    %c0_135 = arith.constant 0 : index
    %c0_136 = arith.constant 0 : index
    %378 = vector.load %arg10[%c0_135, %c0_136] : memref<1x32xf32, #tpu.memory_space<vmem>>, vector<1x32xf32>
    %379 = vector.broadcast %378 : vector<1x32xf32> to vector<16x32xf32>
    %380 = arith.addf %377, %379 : vector<16x32xf32>
    %cst_137 = arith.constant 0.000000e+00 : f32
    %381 = vector.broadcast %cst_137 : f32 to vector<16x32xf32>
    %382 = arith.cmpf ogt, %380, %381 : vector<16x32xf32>
    %cst_138 = arith.constant 2.000000e-01 : f32
    %383 = vector.broadcast %cst_138 : f32 to vector<16x32xf32>
    %384 = arith.mulf %383, %380 : vector<16x32xf32>
    %385 = arith.select %382, %380, %384 : vector<16x32xi1>, vector<16x32xf32>
    %c0_139 = arith.constant 0 : index
    %c0_140 = arith.constant 0 : index
    %386 = vector.load %arg11[%c0_139, %c0_140] : memref<32x128xf32, #tpu.memory_space<vmem>>, vector<32x128xf32>
    %cst_141 = arith.constant dense<0.000000e+00> : vector<16x128xf32>
    %387 = tpu.matmul %385, %386, %cst_141 {dimension_numbers = #tpu.dot_dimension_numbers<[1], [0], [0], [1], [0, 0, 1, 1], [], []>} : vector<16x32xf32>, vector<32x128xf32>, vector<16x128xf32> -> vector<16x128xf32>
    %c0_142 = arith.constant 0 : index
    %c0_143 = arith.constant 0 : index
    %388 = vector.load %arg12[%c0_142, %c0_143] : memref<1x128xf32, #tpu.memory_space<vmem>>, vector<1x128xf32>
    %389 = vector.broadcast %388 : vector<1x128xf32> to vector<16x128xf32>
    %390 = arith.addf %387, %389 : vector<16x128xf32>
    %391 = vector.shape_cast %390 : vector<16x128xf32> to vector<2x8x128xf32>
    %c0_144 = arith.constant 0 : index
    %c0_145 = arith.constant 0 : index
    %c0_146 = arith.constant 0 : index
    %392 = vector.load %arg13[%c0_144, %c0_145, %c0_146] : memref<2x8x128xf32, #tpu.memory_space<vmem>>, vector<2x8x128xf32>
    tpu.vector_store %arg13[%c0_144, %c0_145, %c0_146], %391 {strides = array<i32>} : memref<2x8x128xf32, #tpu.memory_space<vmem>>, vector<2x8x128xf32>,
    return
  }
  func.func @transform_0(%arg0: i32) -> (i32, i32, i32) {
    %c0_i32 = arith.constant 0 : i32
    %c0_i32_0 = arith.constant 0 : i32
    %c0_i32_1 = arith.constant 0 : i32
    return %arg0, %c0_i32, %c0_i32_0 : i32, i32, i32
  }
  func.func @transform_1(%arg0: i32) -> (i32, i32, i32) {
    %c0_i32 = arith.constant 0 : i32
    %c0_i32_0 = arith.constant 0 : i32
    %c0_i32_1 = arith.constant 0 : i32
    return %arg0, %c0_i32, %c0_i32_0 : i32, i32, i32
  }
  func.func @transform_2(%arg0: i32) -> (i32, i32, i32) {
    %c0_i32 = arith.constant 0 : i32
    %c0_i32_0 = arith.constant 0 : i32
    %c0_i32_1 = arith.constant 0 : i32
    return %arg0, %c0_i32, %c0_i32_0 : i32, i32, i32
  }
  func.func @transform_3(%arg0: i32) -> (i32, i32) {
    %c0_i32 = arith.constant 0 : i32
    %c0_i32_0 = arith.constant 0 : i32
    %c0_i32_1 = arith.constant 0 : i32
    return %c0_i32, %c0_i32_0 : i32, i32
  }
  func.func @transform_4(%arg0: i32) -> (i32, i32, i32) {
    %c0_i32 = arith.constant 0 : i32
    %c0_i32_0 = arith.constant 0 : i32
    %c0_i32_1 = arith.constant 0 : i32
    %c0_i32_2 = arith.constant 0 : i32
    return %c0_i32, %c0_i32_0, %c0_i32_1 : i32, i32, i32
  }
  func.func @transform_5(%arg0: i32) -> (i32, i32, i32) {
    %c0_i32 = arith.constant 0 : i32
    %c0_i32_0 = arith.constant 0 : i32
    %c0_i32_1 = arith.constant 0 : i32
    %c0_i32_2 = arith.constant 0 : i32
    return %c0_i32, %c0_i32_0, %c0_i32_1 : i32, i32, i32
  }
  func.func @transform_6(%arg0: i32) -> (i32, i32, i32) {
    %c0_i32 = arith.constant 0 : i32
    %c0_i32_0 = arith.constant 0 : i32
    %c0_i32_1 = arith.constant 0 : i32
    %c0_i32_2 = arith.constant 0 : i32
    return %c0_i32, %c0_i32_0, %c0_i32_1 : i32, i32, i32
  }
  func.func @transform_7(%arg0: i32) -> (i32, i32, i32) {
    %c0_i32 = arith.constant 0 : i32
    %c0_i32_0 = arith.constant 0 : i32
    %c0_i32_1 = arith.constant 0 : i32
    %c0_i32_2 = arith.constant 0 : i32
    return %c0_i32, %c0_i32_0, %c0_i32_1 : i32, i32, i32
  }
  func.func @transform_8(%arg0: i32) -> (i32, i32) {
    %c0_i32 = arith.constant 0 : i32
    %c0_i32_0 = arith.constant 0 : i32
    %c0_i32_1 = arith.constant 0 : i32
    return %c0_i32, %c0_i32_0 : i32, i32
  }
  func.func @transform_9(%arg0: i32) -> (i32, i32) {
    %c0_i32 = arith.constant 0 : i32
    %c0_i32_0 = arith.constant 0 : i32
    %c0_i32_1 = arith.constant 0 : i32
    return %c0_i32, %c0_i32_0 : i32, i32
  }
  func.func @transform_10(%arg0: i32) -> (i32, i32) {
    %c0_i32 = arith.constant 0 : i32
    %c0_i32_0 = arith.constant 0 : i32
    %c0_i32_1 = arith.constant 0 : i32
    return %c0_i32, %c0_i32_0 : i32, i32
  }
  func.func @transform_11(%arg0: i32) -> (i32, i32) {
    %c0_i32 = arith.constant 0 : i32
    %c0_i32_0 = arith.constant 0 : i32
    %c0_i32_1 = arith.constant 0 : i32
    return %c0_i32, %c0_i32_0 : i32, i32
  }
  func.func @transform_12(%arg0: i32) -> (i32, i32, i32) {
    %c0_i32 = arith.constant 0 : i32
    %c0_i32_0 = arith.constant 0 : i32
    %c0_i32_1 = arith.constant 0 : i32
    return %arg0, %c0_i32, %c0_i32_0 : i32, i32, i32
  }
}

</mosaic_0001>

<bundles_post_ra>
// kernel: tpu_custom_call.1
= control target key start
LH: loop header
LB: loop body
LE: loop exit
PB: predicated region body
PF: predicated region fallthrough
CT: control target
= control target key end

     0   :  { %s6282_s0 = inlined_call_operand.vmem [shape: f32[4,8,32], index: 0, kind: input, shape index: {}]   ;;  %s6283_s1 = inlined_call_operand.vmem [shape: f32[4,8,8], index: 1, kind: input, shape index: {}]   ;;  %s6284_s2 = inlined_call_operand.vmem [shape: f32[4,16,16], index: 2, kind: input, shape index: {}]   ;;  %s6285_s3 = inlined_call_operand.vmem [shape: f32[8,32], index: 3, kind: input, shape index: {}]   ;;  %s6286_s4 = inlined_call_operand.vmem [shape: f32[2,32,64], index: 4, kind: input, shape index: {}]   ;;  %s6287_s5 = inlined_call_operand.vmem [shape: f32[2,64,8], index: 5, kind: input, shape index: {}]   ;;  %s6288_s6 = inlined_call_operand.vmem [shape: f32[2,64,32], index: 6, kind: input, shape index: {}]   ;;  %s6289_s7 = inlined_call_operand.vmem [shape: f32[2,32,2], index: 7, kind: input, shape index: {}]   ;;  %s6290_s8 = inlined_call_operand.vmem [shape: f32[32,32], index: 8, kind: input, shape index: {}]   ;;  %s6291_s9 = inlined_call_operand.vmem [shape: f32[1,32], index: 9, kind: input, shape index: {}]   ;;  %s6292_s10 = inlined_call_operand.vmem [shape: f32[32,128], index: 10, kind: input, shape index: {}]   ;;  %s6293_s11 = inlined_call_operand.vmem [shape: f32[1,128], index: 11, kind: input, shape index: {}]   ;;  %s6294_s12 = inlined_call_operand.hbm [shape: f32[4,8,128], index: 12, kind: output, shape index: {}]  }
   0x1   :  { %6307 = sst [smem:[#allocation6_spill]] %s6282_s0 }
   0x2   :  { %17 = vsyncpa [#allocation3], 0 }
   0x3   :  { %19 = vsyncpa [#allocation3 + $0x1], 0  ;;  %s5285_s21 = smov 0   ;;  %s5287_s22 = smov 0  }
   0x4   :  { %s5289_s23 = smov 0   ;;  %s5291_s24 = smov 0  }
   0x5 LB: > { %s5306_s25 = sadd.s32 4294967295, %s5203_s24   ;;  %s4337_s26 = sadd.s32 4294967294, %s5203_s24   ;;  %s5203_s24 = sphi %s5291_s24, %s6322_s24   ;;  %s5199_s23 = sphi %s5289_s23, %s6321_s23   ;;  %s5195_s22 = sphi %s5287_s22, %s6320_s22   ;;  %s5191_s21 = sphi %s5285_s21, %s6319_s21  }
   0x6   : > { %s5310_s27 = sadd.s32 1, %s5203_s24   ;;  %s299_s28 = sadd.s32 1, %s5199_s23 }
   0x7   : > { %s296_s29 = ssub.s32 %s5203_s24, %s5310_s27  ;;  %p309_p0 = scmp.ne.s32.totalorder %s5199_s23, %s5195_s22 }
   0x8   : > { %p297_p1 = scmp.eq.s32.totalorder %s296_s29, 0  ;;  %p310_p2 = scmp.eq.s32.totalorder %s5306_s25, 1 }
   0x9   : > { %p315_p3 = scmp.ne.s32.totalorder %s5195_s22, %s5191_s21  ;;  %p316_p4 = scmp.eq.s32.totalorder %s4337_s26, 1 }
   0xa   : > { %s5321_s30 = scalar_select %p297_p1, %s5199_s23, %s299_s28  }
   0xb   : > { %p5323_p5 = por %p310_p2, %p309_p0  ;;  %p5327_p6 = por %p316_p4, %p315_p3 }
   0xc   : > { %6308 = sst [smem:[#allocation5_spill]] %s5321_s30  ;;  %p4340_p7 = scmp.ge.s32.totalorder %s5203_s24, 1 }
   0xd   : > { %p389_p8 = scmp.lt.s32.totalorder %s5203_s24, 3 }
   0xf   : > { %p390_p9 = pnand %p4340_p7, %p389_p8 }
  0x10   : > { %s4342_s19 = sshll.u32 (!%p390_p9), %s5306_s25, 1  ;;  %s6311_s0 = sld [smem:[#allocation6_spill]] (!%p390_p9) }
  0x11   : > { %393 = sbr.rel (%p390_p9) target bundleno = 5204 (0x1454), region = 68  ;;  %p443_p10 = scmp.lt.s32.totalorder (!%p390_p9), %s4342_s19, 3 }
  0x12   : > { %s6297_s28 = smov (!%p390_p9), 96   ;;  %s6295_s15 = smov (!%p390_p9), 80  }
  0x13   : > { %s6303_s18 = smov (!%p390_p9), 32   ;;  %s6313_s17 = smov (!%p390_p9), 96  }
  0x14   : > { %s6316_s20 = smov (!%p390_p9), 32  }
  0x16   : > { %v469_v0 = vld [vmem:[%s6286_s4 + $0x18] sm:$0xff]  ;;  %v468_v1 = vld [vmem:[%s6286_s4 + $0x10] sm:$0xff]  ;;  %v467_v4 = vld [vmem:[%s6286_s4 + $0x8] sm:$0xff]  ;;  %s6324_s19 = smov (!%p443_p10, %s4342_s19), 3  ;;  %vm492_vm0 = vcmask 261120   ;;  %v5205_v14 = vmov 0.0   ;;  %v730_v26 = vlaneseq }
  0x17   : > { %4612 = vmatprep.subr.mxu0 %v469_v0  ;;  %v477_v2 = vld [vmem:[%s6287_s5 + $0x38] sm:$0xff]  ;;  %v476_v3 = vld [vmem:[%s6287_s5 + $0x30] sm:$0xff]  ;;  %v475_v5 = vld [vmem:[%s6287_s5 + $0x28] sm:$0xff]  ;;  %s4343_s30 = sshll.u32 %s6324_s19, 3  ;;  %v5206_v15 = vmov 2   ;;  %v5207_v16 = vmov 0  }
  0x18   : > { %4613 = vmatpush3.msra.mxu0 %v469_v0  ;;  %4623 = vmatprep.subr.mxu1 %v477_v2  ;;  %v466_v6 = vld [vmem:[%s6286_s4] sm:$0xff]  ;;  %s5363_s29 = scalar_lea.vmem %s6311_s0, %s4343_s30  ;;  %v473_v10 = vld [vmem:[%s6287_s5 + $0x18] sm:$0xff]  ;;  %v472_v11 = vld [vmem:[%s6287_s5 + $0x10] sm:$0xff]  ;;  %vm574_vm1 = vcmask 523264   ;;  %v5208_v20 = vmov 4   ;;  %v5209_v21 = vmov 6   ;;  %s452_s26 = scalar_lea.vmem %s6283_s1, %s4343_s30 }
  0x19   : > { %4614 = vmatprep.subr.mxu0 %v468_v1  ;;  %4624 = vmatpush3.msra.mxu1 %v477_v2  ;;  %v474_v7 = vld [vmem:[%s6287_s5 + $0x20] sm:$0xff]  ;;  %v463_v9 = vld [vmem:[%s5363_s29 + $0x8] sm:$0xff]  ;;  %v731_v28 = vshrl.u32 %v730_v26, 7  ;;  %vm748_vm4 = vcmask 64512   ;;  %s6299_s30 = smov 112   ;;  %vm5212_vm13 = vmmov 0  }
  0x1a   : > { %4615 = vmatpush3.msra.mxu0 %v468_v1  ;;  %4625 = vmatprep.subr.mxu1 %v476_v3  ;;  %v462_v8 = vld [vmem:[%s5363_s29] sm:$0xff]  ;;  %v471_v12 = vld [vmem:[%s6287_s5 + $0x8] sm:$0xff] }
  0x1b   : > { %4616 = vmatprep.subr.mxu0 %v467_v4  ;;  %4626 = vmatpush3.msra.mxu1 %v476_v3  ;;  %v470_v13 = vld [vmem:[%s6287_s5] sm:$0xff]  ;;  %v5406_v31 = vsub.s32 1, %v731_v28  ;;  %v5413_v33 = vld [vmem:[%s452_s26 + $0x8] sm:$0xff]  ;;  %v5415_v35 = vsub.s32 3, %v731_v28  ;;  %v5419_v38 = vsub.s32 5, %v731_v28  ;;  %v5422_v42 = vsub.s32 7, %v731_v28 }
  0x1c   : > { %4617 = vmatpush3.msra.mxu0 %v467_v4  ;;  %4627 = vmatprep.subr.mxu1 %v475_v5  ;;  %vm491_vm2 = vcmp.gt.f32.partialorder %v5413_v33, 0.0  ;;  %v5432_v50 = vld [vmem:[%s452_s26] sm:$0xff]  ;;  %s4467_s26 = sshll.u32 %s5306_s25, 8  ;;  %s5217_s25 = smov [#allocation2]  }
  0x1d   : > { %4618 = vmatprep.subr.mxu0 %v466_v6  ;;  %4628 = vmatpush3.msra.mxu1 %v475_v5  ;;  %vm490_vm5 = vcmp.gt.f32.partialorder %v5432_v50, 0.0 }
  0x1e   : > { %4619 = vmatpush3.msra.mxu0 %v466_v6  ;;  %4620 = vmatprep.mubr.msk.f32.mxu0 %vm492_vm0, %v462_v8 }
  0x1f   : > { %4621 = vmatmul.mubr.msk.f32.vlgmr.msra.gmra.mxu0 %vm492_vm0, %v463_v9  ;;  %4629 = vmatprep.subr.mxu1 %v474_v7 }
  0x20   : > { %4630 = vmatpush3.msra.mxu1 %v474_v7  ;;  %4642 = vmatprep.subr.mxu0 %v5205_v14 }
  0x21   : > { %4631 = vmatprep.subr.mxu1 %v473_v10  ;;  %4940 = vset.pattern.permute.xlu1 %v5206_v15 }
  0x22   : > { %4632 = vmatpush3.msra.mxu1 %v473_v10  ;;  %4939 = vset.pattern.permute.xlu0 %v5207_v16 }
  0x23   : > { %4633 = vmatprep.subr.mxu1 %v472_v11  ;;  %4644 = vmatprep.mubr.msk.f32.mxu0 %vm5212_vm13, %v5205_v14 }
  0x24   : > { %4634 = vmatpush3.msra.mxu1 %v472_v11 }
  0x25   : > { %4635 = vmatprep.subr.mxu1 %v471_v12 }
  0x26   : > { %4636 = vmatpush3.msra.mxu1 %v471_v12 }
  0x27   : > { %4637 = vmatprep.subr.mxu1 %v470_v13 }
  0x28   : > { %4638 = vmatpush3.msra.mxu1 %v470_v13 }
  0x29   : > { %4657 = vmatprep.subr.mxu1 %v5205_v14 }
  0xdf   : > { %v5388_v17 = vpop.f32.mrf.mxu0 }
  0xe1   : > { %v5390_v18 = vpop.f32.mrf.mxu0 }
  0xe2   : > { %4639 = vmatprep.mubr.msk.f32.mxu1 %vm574_vm1, %v5390_v18  ;;  %4643 = vmatpush3.msra.mxu0 %v5390_v18 }
  0xe3   : > { %4640 = vmatmul.mubr.msk.f32.vlgmr.msra.gmra.mxu1 %vm574_vm1, %v5388_v17  ;;  %4647 = vmatprep.subr.mxu0 %v5205_v14 }
  0xe4   : > { %4659 = vmatprep.mubr.msk.f32.mxu1 %vm5212_vm13, %v5205_v14 }
 0x1a3   : > { %v4641_v19 = vpop.f32.mrf.mxu1 }
 0x1a4   : > { %934 = vperm.xlu1 %4940, %v4641_v19   ;;  %727 = vperm.xlu0 %4939, %v4641_v19  }
 0x1a5   : > { %v647_v22 = vpop.f32.mrf.mxu1 }
 0x1a8   : > { %4941 = vset.pattern.permute.xlu1 %v5208_v20  ;;  %4942 = vset.pattern.permute.xlu0 %v5209_v21 }
 0x1a9   : > { %1146 = vperm.xlu1 %4941, %v4641_v19   ;;  %1358 = vperm.xlu0 %4942, %v4641_v19  }
 0x1ad   : > { %4944 = vset.pattern.permute.xlu1 %v5206_v15  ;;  %4943 = vset.pattern.permute.xlu0 %v5207_v16 }
 0x1ae   : > { %930 = vperm.xlu1 %4944, %v647_v22   ;;  %722 = vperm.xlu0 %4943, %v647_v22  }
 0x1b2   : > { %4946 = vset.pattern.permute.xlu1 %v5209_v21  ;;  %4945 = vset.pattern.permute.xlu0 %v5208_v20 }
 0x1b3   : > { %1354 = vperm.xlu1 %4946, %v647_v22   ;;  %1142 = vperm.xlu0 %4945, %v647_v22  }
 0x1d1   : > { %688 = vxpose.xlu0.b32.start.end [1/1] (short) (narrow) %v4641_v19, 8 }
 0x1dc   : > { %656 = vxpose.xlu1.b32.start.end [1/1] (short) (narrow) %v647_v22, 8 }
 0x1fa   : > { %4947 = vset.pattern.permute.xlu1 %v5207_v16  ;;  %4948 = vset.pattern.permute.xlu0 %v5207_v16 }
 0x21f   : > { %v728_v23 = vpop.permute.xlu0 %727  ;;  %v935_v25 = vpop.permute.xlu1 %934 }
 0x224   : > { %v1359_v24 = vpop.permute.xlu0 %1358  ;;  %v1147_v29 = vpop.permute.xlu1 %1146 }
 0x229   : > { %v723_v27 = vpop.permute.xlu0 %722  ;;  %v931_v34 = vpop.permute.xlu1 %930 }
 0x22e   : > { %v1143_v30 = vpop.permute.xlu0 %1142  ;;  %v1355_v41 = vpop.permute.xlu1 %1354 }
 0x24d   : > { %v704_v32 = vpop.trf.xlu0 }
 0x24e   : > { %v737_v36 = vrot.slane %v704_v32, %v5406_v31  ;;  %v944_v39 = vrot.slane %v704_v32, %v5415_v35  ;;  %v1156_v45 = vrot.slane %v704_v32, %v5419_v38  ;;  %v1368_v48 = vrot.slane %v704_v32, %v5422_v42 }
 0x250   : > { %v739_v37 = vadd.f32 %v737_v36, %v728_v23  ;;  %v946_v47 = vadd.f32 %v944_v39, %v935_v25  ;;  %v1158_v56 = vadd.f32 %v1156_v45, %v1147_v29  ;;  %v1370_v61 = vadd.f32 %v1368_v48, %v1359_v24 }
 0x252   : > { %vm741_vm3 = vcmp.gt.f32.partialorder %v739_v37, 0.0  ;;  %v743_v40 = vmul.f32 0.2, %v739_v37  ;;  %v950_v55 = vmul.f32 0.2, %v946_v47  ;;  %vm948_vm6 = vcmp.gt.f32.partialorder %v946_v47, 0.0 }
 0x253   : > { %vm1160_vm10 = vcmp.gt.f32.partialorder %v1158_v56, 0.0  ;;  %v1162_v1 = vmul.f32 0.2, %v1158_v56  ;;  %v1374_v22 = vmul.f32 0.2, %v1370_v61  ;;  %vm1372_vm12 = vcmp.gt.f32.partialorder %v1370_v61, 0.0 }
 0x254   : > { %v745_v43 = vsel %vm741_vm3, %v739_v37, %v743_v40  ;;  %v952_v4 = vsel %vm948_vm6, %v946_v47, %v950_v55 }
 0x255   : > { %v5426_v44 = vsel %vm491_vm2, %v745_v43, -9e+15  ;;  %v954_v11 = vsel %vm491_vm2, %v952_v4, -9e+15  ;;  %v1164_v13 = vsel %vm1160_vm10, %v1158_v56, %v1162_v1  ;;  %vm1589_vm10 = vcmask 130048  }
 0x256   : > { %v752_v46 = vsel %vm748_vm4, %v5426_v44, -inf  ;;  %v958_v23 = vsel %vm748_vm4, %v954_v11, -inf  ;;  %v1166_v25 = vsel %vm491_vm2, %v1164_v13, -9e+15 }
 0x257   : > { %753 = vmax.xlane.f32.xlu1 %v752_v46  ;;  %v1170_v28 = vsel %vm748_vm4, %v1166_v25, -inf }
 0x258   : > { %v672_v49 = vpop.trf.xlu1 }
 0x259   : > { %v733_v51 = vrot.slane %v672_v49, %v5406_v31  ;;  %v940_v52 = vrot.slane %v672_v49, %v5415_v35  ;;  %v1152_v53 = vrot.slane %v672_v49, %v5419_v38  ;;  %v1364_v54 = vrot.slane %v672_v49, %v5422_v42 }
 0x25b   : > { %v738_v57 = vadd.f32 %v733_v51, %v723_v27  ;;  %v945_v58 = vadd.f32 %v940_v52, %v931_v34  ;;  %v1157_v59 = vadd.f32 %v1152_v53, %v1143_v30  ;;  %v1369_v60 = vadd.f32 %v1364_v54, %v1355_v41 }
 0x25c   : > { %v1376_v27 = vsel %vm1372_vm12, %v1370_v61, %v1374_v22  ;;  %vm1594_vm12 = vcmask 392192  }
 0x25d   : > { %vm740_vm7 = vcmp.gt.f32.partialorder %v738_v57, 0.0  ;;  %v742_v62 = vmul.f32 0.2, %v738_v57  ;;  %vm947_vm8 = vcmp.gt.f32.partialorder %v945_v58, 0.0  ;;  %v949_v63 = vmul.f32 0.2, %v945_v58 }
 0x25e   : > { %vm1159_vm9 = vcmp.gt.f32.partialorder %v1157_v59, 0.0  ;;  %v1161_v0 = vmul.f32 0.2, %v1157_v59  ;;  %v1373_v5 = vmul.f32 0.2, %v1369_v60  ;;  %vm1371_vm11 = vcmp.gt.f32.partialorder %v1369_v60, 0.0 }
 0x25f   : > { %v744_v2 = vsel %vm740_vm7, %v738_v57, %v742_v62  ;;  %v951_v3 = vsel %vm947_vm8, %v945_v58, %v949_v63  ;;  %v1378_v30 = vsel %vm491_vm2, %v1376_v27, -9e+15 }
 0x260   : > { %v746_v6 = vsel %vm490_vm5, %v744_v2, -9e+15  ;;  %v953_v7 = vsel %vm490_vm5, %v951_v3, -9e+15  ;;  %v1163_v8 = vsel %vm1159_vm9, %v1157_v59, %v1161_v0  ;;  %v1375_v19 = vsel %vm1371_vm11, %v1369_v60, %v1373_v5 }
 0x261   : > { %v749_v9 = vsel %vm748_vm4, %v746_v6, -inf  ;;  %v955_v10 = vsel %vm748_vm4, %v953_v7, -inf  ;;  %v1165_v12 = vsel %vm490_vm5, %v1163_v8, -9e+15  ;;  %v1377_v26 = vsel %vm490_vm5, %v1375_v19, -9e+15 }
 0x262   : > { %750 = vmax.xlane.f32.xlu0 %v749_v9  ;;  %956 = vmax.xlane.f32.xlu1 %v955_v10  ;;  %v1167_v24 = vsel %vm748_vm4, %v1165_v12, -inf  ;;  %v1379_v29 = vsel %vm748_vm4, %v1377_v26, -inf  ;;  %v1382_v32 = vsel %vm748_vm4, %v1378_v30, -inf }
 0x266   : > { %959 = vmax.xlane.f32.xlu0 %v958_v23  ;;  %1168 = vmax.xlane.f32.xlu1 %v1167_v24 }
 0x26a   : > { %1171 = vmax.xlane.f32.xlu0 %v1170_v28  ;;  %1380 = vmax.xlane.f32.xlu1 %v1379_v29 }
 0x26e   : > { %1383 = vmax.xlane.f32.xlu0 %v1382_v32 }
 0x27b   : > { %977 = vrot.lane.b32.xlu1 %v5390_v18, %s6299_s30 }
 0x27f   : > { %1189 = vrot.lane.b32.xlu1 %v5390_v18, %s6297_s28 }
 0x283   : > { %1265 = vrot.lane.b32.xlu1 %v5388_v17, %s6297_s28  ;;  %s4466_s28 = sshll.u32 %s6324_s19, 4  ;;  %s6314_s19 = smov 80  }
 0x284   : > { %1053 = vrot.lane.b32.xlu0 %v5388_v17, %s6299_s30  ;;  %s6301_s30 = smov 48  }
 0x2e0   : > { %v754_v34 = vpop.xlane.xlu1 %753 }
 0x2e1   : > { %v756_v36 = vsub.f32 %v5426_v44, %v754_v34 }
 0x2e3   : > { %v759_v37 = vmul.f32 1.442695, %v756_v36 }
 0x2e5   : > { %4965 = vpow2.f32 %v759_v37 }
 0x2eb   : > { %v957_v39 = vpop.xlane.xlu1 %956  ;;  %v751_v40 = vpop.xlane.xlu0 %750 }
 0x2ec   : > { %v961_v41 = vsub.f32 %v953_v7, %v957_v39  ;;  %v755_v43 = vsub.f32 %v746_v6, %v751_v40 }
 0x2ee   : > { %v757_v45 = vmul.f32 1.442695, %v755_v43  ;;  %v963_v46 = vmul.f32 1.442695, %v961_v41 }
 0x2ef   : > { %v1169_v47 = vpop.xlane.xlu1 %1168  ;;  %v960_v48 = vpop.xlane.xlu0 %959 }
 0x2f0   : > { %v1173_v49 = vsub.f32 %v1165_v12, %v1169_v47  ;;  %v962_v51 = vsub.f32 %v954_v11, %v960_v48  ;;  %4967 = vpow2.f32 %v757_v45 }
 0x2f1   : > { %4969 = vpow2.f32 %v963_v46 }
 0x2f2   : > { %v5470_v52 = vpop.eup %4965  ;;  %v965_v53 = vmul.f32 1.442695, %v962_v51  ;;  %v1175_v54 = vmul.f32 1.442695, %v1173_v49 }
 0x2f3   : > { %v1381_v55 = vpop.xlane.xlu1 %1380  ;;  %v1172_v44 = vpop.xlane.xlu0 %1171  ;;  %v764_v56 = vsel %vm748_vm4, %v5470_v52, 0.0 }
 0x2f4   : > { %v1385_v57 = vsub.f32 %v1377_v26, %v1381_v55  ;;  %v1174_v58 = vsub.f32 %v1166_v25, %v1172_v44  ;;  %765 = vadd.xlane.f32.xlu0 %v764_v56  ;;  %4971 = vpow2.f32 %v965_v53  ;;  %v485_v44 = vld [vmem:[%s6288_s6 + $0x38] sm:$0xff] }
 0x2f5   : > { %4973 = vpow2.f32 %v1175_v54 }
 0x2f6   : > { %v1177_v59 = vmul.f32 1.442695, %v1174_v58  ;;  %v1387_v60 = vmul.f32 1.442695, %v1385_v57 }
 0x2f7   : > { %v1384_v61 = vpop.xlane.xlu0 %1383  ;;  %v978_v22 = vpop.permute.xlu1 %977 }
 0x2f8   : > { %v1386_v62 = vsub.f32 %v1378_v30, %v1384_v61  ;;  %4975 = vpow2.f32 %v1177_v59 }
 0x2f9   : > { %4977 = vpow2.f32 %v1387_v60 }
 0x2fa   : > { %v1389_v63 = vmul.f32 1.442695, %v1386_v62 }
 0x2fb   : > { %v1054_v0 = vpop.permute.xlu0 %1053  ;;  %v1190_v23 = vpop.permute.xlu1 %1189 }
 0x2fc   : > { %4979 = vpow2.f32 %v1389_v63  ;;  %4658 = vmatpush3.msra.mxu1 %v1054_v0 }
 0x2fd   : > { %4667 = vmatprep.subr.mxu1 %v5205_v14  ;;  %v4968_v1 = vpop.eup %4967 }
 0x2fe   : > { %v761_v2 = vsel %vm748_vm4, %v4968_v1, 0.0  ;;  %v4970_v3 = vpop.eup %4969 }
 0x2ff   : > { %762 = vadd.xlane.f32.xlu1 %v761_v2  ;;  %v967_v5 = vsel %vm748_vm4, %v4970_v3, 0.0  ;;  %v1266_v24 = vpop.permute.xlu1 %1265 }
 0x301   : > { %v4972_v4 = vpop.eup %4971 }
 0x302   : > { %v970_v6 = vsel %vm748_vm4, %v4972_v4, 0.0  ;;  %v5478_v7 = vpop.eup %4973 }
 0x303   : > { %968 = vadd.xlane.f32.xlu1 %v967_v5  ;;  %971 = vadd.xlane.f32.xlu0 %v970_v6  ;;  %v1179_v9 = vsel %vm748_vm4, %v5478_v7, 0.0 }
 0x305   : > { %v4976_v8 = vpop.eup %4975 }
 0x306   : > { %v1182_v10 = vsel %vm748_vm4, %v4976_v8, 0.0  ;;  %v5483_v11 = vpop.eup %4977 }
 0x307   : > { %1180 = vadd.xlane.f32.xlu1 %v1179_v9  ;;  %1183 = vadd.xlane.f32.xlu0 %v1182_v10  ;;  %v1391_v19 = vsel %vm748_vm4, %v5483_v11, 0.0 }
 0x309   : > { %v5485_v12 = vpop.eup %4979 }
 0x30a   : > { %v1394_v13 = vsel %vm748_vm4, %v5485_v12, 0.0 }
 0x30b   : > { %1392 = vadd.xlane.f32.xlu1 %v1391_v19  ;;  %1395 = vadd.xlane.f32.xlu0 %v1394_v13  ;;  %v484_v13 = vld [vmem:[%s6288_s6 + $0x30] sm:$0xff]  ;;  %v483_v19 = vld [vmem:[%s6288_s6 + $0x28] sm:$0xff] }
 0x31c   : > { %1477 = vrot.lane.b32.xlu1 %v5388_v17, %s6295_s15 }
 0x321   : > { %1401 = vrot.lane.b32.xlu0 %v5390_v18, %s6295_s15  ;;  %s6305_s15 = smov 16  }
 0x37d   : > { %v766_v25 = vpop.xlane.xlu0 %765 }
 0x388   : > { %v763_v26 = vpop.xlane.xlu1 %762 }
 0x389   : > { %4981 = vrcp.f32 %v763_v26 }
 0x38a   : > { %4983 = vrcp.f32 %v766_v25 }
 0x38c   : > { %v969_v27 = vpop.xlane.xlu1 %968  ;;  %v972_v28 = vpop.xlane.xlu0 %971 }
 0x38d   : > { %4985 = vrcp.f32 %v972_v28  ;;  %v482_v28 = vld [vmem:[%s6288_s6 + $0x20] sm:$0xff] }
 0x38e   : > { %4987 = vrcp.f32 %v969_v27 }
 0x390   : > { %v1181_v29 = vpop.xlane.xlu1 %1180  ;;  %v1184_v30 = vpop.xlane.xlu0 %1183 }
 0x391   : > { %4989 = vrcp.f32 %v1184_v30 }
 0x392   : > { %4991 = vrcp.f32 %v1181_v29  ;;  %v481_v29 = vld [vmem:[%s6288_s6 + $0x18] sm:$0xff] }
 0x394   : > { %v1393_v32 = vpop.xlane.xlu1 %1392  ;;  %v1396_v34 = vpop.xlane.xlu0 %1395 }
 0x395   : > { %4993 = vrcp.f32 %v1396_v34  ;;  %v479_v34 = vld [vmem:[%s6288_s6 + $0x8] sm:$0xff] }
 0x396   : > { %v4982_v36 = vpop.eup %4981  ;;  %4995 = vrcp.f32 %v1393_v32  ;;  %v480_v32 = vld [vmem:[%s6288_s6 + $0x10] sm:$0xff] }
 0x397   : > { %v769_v18 = vmul.f32 %v4982_v36, %v4968_v1  ;;  %v4984_v37 = vpop.eup %4983 }
 0x398   : > { %v770_v40 = vmul.f32 %v4984_v37, %v5470_v52  ;;  %v1478_v48 = vpop.permute.xlu1 %1477  ;;  %v1402_v54 = vpop.permute.xlu0 %1401  ;;  %v478_v37 = vld [vmem:[%s6288_s6] sm:$0xff] }
 0x399   : > { %4645 = vmatmul.mubr.msk.f32.vlgmr.msra.gmra.mxu0 %vm748_vm4, %v769_v18 }
 0x39a   : > { %4648 = vmatpush3.msra.mxu0 %v5388_v17  ;;  %4649 = vmatprep.mubr.msk.f32.mxu0 %vm5212_vm13, %v5205_v14  ;;  %v4986_v39 = vpop.eup %4985 }
 0x39b   : > { %4652 = vmatprep.subr.mxu0 %v5205_v14  ;;  %v4988_v41 = vpop.eup %4987  ;;  %v976_v43 = vmul.f32 %v4986_v39, %v4972_v4 }
 0x39c   : > { %v975_v17 = vmul.f32 %v4988_v41, %v4970_v3 }
 0x39d   : > { %4650 = vmatmul.mubr.msk.f32.vlgmr.msra.gmra.mxu0 %vm748_vm4, %v770_v40  ;;  %4660 = vmatmul.mubr.msk.f32.vlgmr.msra.gmra.mxu1 %vm748_vm4, %v976_v43 }
 0x39e   : > { %4653 = vmatpush3.msra.mxu0 %v978_v22  ;;  %v4990_v45 = vpop.eup %4989  ;;  %4668 = vmatpush3.msra.mxu1 %v1266_v24 }
 0x39f   : > { %4654 = vmatprep.mubr.msk.f32.mxu0 %vm5212_vm13, %v5205_v14  ;;  %v4992_v46 = vpop.eup %4991  ;;  %4662 = vmatprep.subr.mxu0 %v5205_v14  ;;  %v1188_v47 = vmul.f32 %v4990_v45, %v4976_v8  ;;  %v489_v45 = vld [vmem:[%s6289_s7 + $0x18] sm:$0xff] }
 0x3a0   : > { %4669 = vmatprep.mubr.msk.f32.mxu1 %vm5212_vm13, %v5205_v14  ;;  %4677 = vmatprep.subr.mxu1 %v5205_v14  ;;  %v1187_v51 = vmul.f32 %v4992_v46, %v5478_v7 }
 0x3a1   : > { %4655 = vmatmul.mubr.msk.f32.vlgmr.msra.gmra.mxu0 %vm748_vm4, %v975_v17  ;;  %4670 = vmatmul.mubr.msk.f32.vlgmr.msra.gmra.mxu1 %vm748_vm4, %v1188_v47  ;;  %v488_v17 = vld [vmem:[%s6289_s7 + $0x10] sm:$0xff] }
 0x3a2   : > { %4663 = vmatpush3.msra.mxu0 %v1190_v23  ;;  %v4994_v49 = vpop.eup %4993  ;;  %4678 = vmatpush3.msra.mxu1 %v1478_v48  ;;  %v487_v48 = vld [vmem:[%s6289_s7 + $0x8] sm:$0xff] }
 0x3a3   : > { %4664 = vmatprep.mubr.msk.f32.mxu0 %vm5212_vm13, %v5205_v14  ;;  %v4996_v52 = vpop.eup %4995  ;;  %4672 = vmatprep.subr.mxu0 %v5205_v14  ;;  %v1400_v53 = vmul.f32 %v4994_v49, %v5485_v12 }
 0x3a4   : > { %4679 = vmatprep.mubr.msk.f32.mxu1 %vm5212_vm13, %v5205_v14  ;;  %v1399_v55 = vmul.f32 %v4996_v52, %v5483_v11  ;;  %4701 = vmatprep.subr.mxu1 %v489_v45 }
 0x3a5   : > { %4665 = vmatmul.mubr.msk.f32.vlgmr.msra.gmra.mxu0 %vm748_vm4, %v1187_v51  ;;  %4680 = vmatmul.mubr.msk.f32.vlgmr.msra.gmra.mxu1 %vm748_vm4, %v1400_v53 }
 0x3a6   : > { %4673 = vmatpush3.msra.mxu0 %v1402_v54  ;;  %4674 = vmatprep.mubr.msk.f32.mxu0 %vm5212_vm13, %v5205_v14 }
 0x3a7   : > { %4682 = vmatprep.subr.mxu0 %v485_v44  ;;  %4702 = vmatpush3.msra.mxu1 %v489_v45 }
 0x3a8   : > { %4703 = vmatprep.subr.mxu1 %v488_v17 }
 0x3a9   : > { %4675 = vmatmul.mubr.msk.f32.vlgmr.msra.gmra.mxu0 %vm748_vm4, %v1399_v55  ;;  %4704 = vmatpush3.msra.mxu1 %v488_v17 }
 0x3aa   : > { %4683 = vmatpush3.msra.mxu0 %v485_v44  ;;  %4705 = vmatprep.subr.mxu1 %v487_v48 }
 0x3ab   : > { %4684 = vmatprep.subr.mxu0 %v484_v13  ;;  %4706 = vmatpush3.msra.mxu1 %v487_v48 }
 0x3ac   : > { %4685 = vmatpush3.msra.mxu0 %v484_v13 }
 0x3ad   : > { %4686 = vmatprep.subr.mxu0 %v483_v19 }
 0x3ae   : > { %4687 = vmatpush3.msra.mxu0 %v483_v19 }
 0x3af   : > { %4688 = vmatprep.subr.mxu0 %v482_v28 }
 0x3b0   : > { %4689 = vmatpush3.msra.mxu0 %v482_v28 }
 0x3b1   : > { %4690 = vmatprep.subr.mxu0 %v481_v29 }
 0x3b2   : > { %4691 = vmatpush3.msra.mxu0 %v481_v29 }
 0x3b3   : > { %4692 = vmatprep.subr.mxu0 %v480_v32 }
 0x3b4   : > { %4693 = vmatpush3.msra.mxu0 %v480_v32 }
 0x3b5   : > { %4694 = vmatprep.subr.mxu0 %v479_v34 }
 0x3b6   : > { %4695 = vmatpush3.msra.mxu0 %v479_v34 }
 0x3b7   : > { %4696 = vmatprep.subr.mxu0 %v478_v37 }
 0x3b8   : > { %4697 = vmatpush3.msra.mxu0 %v478_v37 }
 0x459   : > { %v5531_v56 = vpop.f32.mrf.mxu0 }
 0x45a   : > { %vm917_vm9 = vcmp.gt.f32.partialorder %v5531_v56, 0.0 }
 0x45b   : > { %v4646_v57 = vpop.f32.mrf.mxu0 }
 0x45d   : > { %v5533_v58 = vpop.f32.mrf.mxu0  ;;  %v1125_v59 = vpop.f32.mrf.mxu1 }
 0x45e   : > { %v1132_v60 = vmin.f32 %v1125_v59, 0.0  ;;  %vm1130_vm14 = vcmp.gt.f32.partialorder %v1125_v59, 0.0  ;;  %vm918_vm11 = vcmp.gt.f32.partialorder %v5533_v58, 0.0 }
 0x45f   : > { %v4651_v61 = vpop.f32.mrf.mxu0  ;;  %v4661_v62 = vpop.f32.mrf.mxu1 }
 0x460   : > { %v1135_v63 = vmul.f32 1.442695, %v1132_v60  ;;  %v919_v61 = vmin.f32 %v5531_v56, 0.0  ;;  %v920_v62 = vmin.f32 %v5533_v58, 0.0 }
 0x461   : > { %v5535_v0 = vpop.f32.mrf.mxu0  ;;  %v5538_v2 = vpop.f32.mrf.mxu1 }
 0x462   : > { %v1131_v1 = vmin.f32 %v5535_v0, 0.0  ;;  %4997 = vpow2.f32 %v1135_v63  ;;  %v1344_v3 = vmin.f32 %v5538_v2, 0.0  ;;  %vm1129_vm15 = vcmp.gt.f32.partialorder %v5535_v0, 0.0 }
 0x463   : > { %v4656_v4 = vpop.f32.mrf.mxu0  ;;  %v4671_v6 = vpop.f32.mrf.mxu1  ;;  %vm1342_vm3 = vcmp.gt.f32.partialorder %v5538_v2, 0.0  ;;  %v921_v63 = vmul.f32 1.442695, %v919_v61 }
 0x464   : > { %v1133_v5 = vmul.f32 1.442695, %v1131_v1  ;;  %v1347_v7 = vmul.f32 1.442695, %v1344_v3 }
 0x465   : > { %v5541_v8 = vpop.f32.mrf.mxu0  ;;  %v5544_v10 = vpop.f32.mrf.mxu1 }
 0x466   : > { %4999 = vpow2.f32 %v1133_v5  ;;  %v1343_v9 = vmin.f32 %v5541_v8, 0.0  ;;  %v1556_v11 = vmin.f32 %v5544_v10, 0.0  ;;  %vm1341_vm6 = vcmp.gt.f32.partialorder %v5541_v8, 0.0 }
 0x467   : > { %5001 = vpow2.f32 %v1347_v7  ;;  %v4666_v12 = vpop.f32.mrf.mxu0  ;;  %v4681_v23 = vpop.f32.mrf.mxu1  ;;  %vm1554_vm7 = vcmp.gt.f32.partialorder %v5544_v10, 0.0 }
 0x468   : > { %v1345_v22 = vmul.f32 1.442695, %v1343_v9  ;;  %v1559_v24 = vmul.f32 1.442695, %v1556_v11 }
 0x469   : > { %v5553_v25 = vpop.f32.mrf.mxu0 }
 0x46a   : > { %5003 = vpow2.f32 %v1345_v22  ;;  %v1555_v26 = vmin.f32 %v5553_v25, 0.0  ;;  %vm1553_vm8 = vcmp.gt.f32.partialorder %v5553_v25, 0.0 }
 0x46b   : > { %5005 = vpow2.f32 %v1559_v24  ;;  %v4676_v27 = vpop.f32.mrf.mxu0 }
 0x46c   : > { %v1557_v30 = vmul.f32 1.442695, %v1555_v26 }
 0x46e   : > { %5007 = vpow2.f32 %v1557_v30 }
 0x46f   : > { %v4998_v36 = vpop.eup %4997  ;;  %5009 = vpow2.f32 %v921_v63 }
 0x470   : > { %v4360_v18 = vadd.f32 -1.0, %v4998_v36 }
 0x472   : > { %v1140_v40 = vsel %vm1130_vm14, %v1125_v59, %v4360_v18 }
 0x473   : > { %v5000_v39 = vpop.eup %4999  ;;  %1569 = vrot.lane.b32.xlu1 %v1140_v40, %s6305_s15 }
 0x474   : > { %v5002_v41 = vpop.eup %5001  ;;  %v4359_v43 = vadd.f32 -1.0, %v5000_v39 }
 0x475   : > { %v4364_v46 = vadd.f32 -1.0, %v5002_v41 }
 0x476   : > { %v1139_v47 = vsel %vm1129_vm15, %v5535_v0, %v4359_v43  ;;  %v923_v0 = vmul.f32 1.442695, %v920_v62 }
 0x477   : > { %v5004_v49 = vpop.eup %5003  ;;  %1567 = vrot.lane.b32.xlu0 %v1139_v47, %s6305_s15  ;;  %v1352_v51 = vsel %vm1342_vm3, %v5538_v2, %v4364_v46  ;;  %s5751_s15 = scalar_lea.vmem %s6284_s2, %s4466_s28  ;;  %s439_s28 = sand.u32 1, %s5195_s22  }
 0x478   : > { %v5006_v52 = vpop.eup %5005  ;;  %1577 = vrot.lane.b32.xlu1 %v1352_v51, %s6303_s18  ;;  %v4363_v53 = vadd.f32 -1.0, %v5004_v49  ;;  %5011 = vpow2.f32 %v923_v0 }
 0x479   : > { %v4368_v54 = vadd.f32 -1.0, %v5006_v52 }
 0x47a   : > { %v1351_v55 = vsel %vm1341_vm6, %v5541_v8, %v4363_v53 }
 0x47b   : > { %v5008_v44 = vpop.eup %5007  ;;  %1575 = vrot.lane.b32.xlu0 %v1351_v55, %s6303_s18  ;;  %v1564_v57 = vsel %vm1554_vm7, %v5544_v10, %v4368_v54  ;;  %s6315_s18 = smov 16  }
 0x47c   : > { %1585 = vrot.lane.b32.xlu1 %v1564_v57, %s6301_s30  ;;  %v4367_v59 = vadd.f32 -1.0, %v5008_v44  ;;  %v5010_v2 = vpop.eup %5009 }
 0x47d   : > { %v4355_v6 = vadd.f32 -1.0, %v5010_v2  ;;  %v4379_v2 = vld [vmem:[%s6286_s4 + $0x30] sm:$0xff] }
 0x47e   : > { %v1563_v60 = vsel %vm1553_vm8, %v5553_v25, %v4367_v59 }
 0x47f   : > { %1583 = vrot.lane.b32.xlu0 %v1563_v60, %s6301_s30  ;;  %v927_v9 = vsel %vm917_vm9, %v5531_v56, %v4355_v6  ;;  %v486_v56 = vld [vmem:[%s6289_s7] sm:$0xff]  ;;  %v4386_v6 = vld [vmem:[%s6287_s5 + $0x68] sm:$0xff]  ;;  %s6317_s30 = smov 48  }
 0x480   : > { %4707 = vmatprep.subr.mxu1 %v486_v56 }
 0x481   : > { %4708 = vmatpush3.msra.mxu1 %v486_v56 }
 0x482   : > { %4712 = vmatprep.subr.mxu1 %v5205_v14 }
 0x485   : > { %v5012_v3 = vpop.eup %5011 }
 0x486   : > { %v4356_v7 = vadd.f32 -1.0, %v5012_v3  ;;  %v4378_v3 = vld [vmem:[%s6286_s4 + $0x28] sm:$0xff] }
 0x488   : > { %v928_v10 = vsel %vm918_vm11, %v5533_v58, %v4356_v7  ;;  %v4385_v7 = vld [vmem:[%s6287_s5 + $0x60] sm:$0xff] }
 0x4e5   : > { %v1570_v1 = vpop.permute.xlu1 %1569 }
 0x4e6   : > { %v1591_v13 = vsel %vm1589_vm10, %v928_v10, %v1570_v1  ;;  %v4380_v1 = vld [vmem:[%s6286_s4 + $0x38] sm:$0xff] }
 0x4e7   : > { %4722 = vmatprep.subr.mxu0 %v4380_v1 }
 0x4e9   : > { %v1568_v4 = vpop.permute.xlu0 %1567 }
 0x4ea   : > { %v1578_v5 = vpop.permute.xlu1 %1577  ;;  %v1590_v11 = vsel %vm1589_vm10, %v927_v9, %v1568_v4  ;;  %v4388_v4 = vld [vmem:[%s6287_s5 + $0x78] sm:$0xff]  ;;  %v4383_v9 = vld [vmem:[%s6287_s5 + $0x50] sm:$0xff] }
 0x4eb   : > { %v1593_v23 = vsel %vm492_vm0, %v1591_v13, %v1578_v5  ;;  %v4387_v5 = vld [vmem:[%s6287_s5 + $0x70] sm:$0xff] }
 0x4ed   : > { %v1576_v8 = vpop.permute.xlu0 %1575 }
 0x4ee   : > { %v1586_v12 = vpop.permute.xlu1 %1585  ;;  %v1592_v19 = vsel %vm492_vm0, %v1590_v11, %v1576_v8  ;;  %v4384_v8 = vld [vmem:[%s6287_s5 + $0x58] sm:$0xff] }
 0x4ef   : > { %v1596_v25 = vsel %vm1594_vm12, %v1593_v23, %v1586_v12 }
 0x4f1   : > { %v1584_v22 = vpop.permute.xlu0 %1583 }
 0x4f2   : > { %v1595_v24 = vsel %vm1594_vm12, %v1592_v19, %v1584_v22 }
 0x4f3   : > { %4698 = vmatprep.mubr.msk.f32.mxu0 %vm574_vm1, %v1595_v24 }
 0x4f4   : > { %4699 = vmatmul.mubr.msk.f32.vlgmr.msra.gmra.mxu0 %vm574_vm1, %v1596_v25 }
 0x4f5   : > { %4723 = vmatpush3.msra.mxu0 %v4380_v1 }
 0x4f6   : > { %4724 = vmatprep.subr.mxu0 %v4379_v2 }
 0x4f7   : > { %4725 = vmatpush3.msra.mxu0 %v4379_v2  ;;  %v5758_v2 = vld [vmem:[%s5751_s15 + $0x8] sm:$0xff] }
 0x4f8   : > { %4726 = vmatprep.subr.mxu0 %v4378_v3 }
 0x4f9   : > { %4727 = vmatpush3.msra.mxu0 %v4378_v3  ;;  %v5761_v3 = vld [vmem:[%s5751_s15] sm:$0xff] }
 0x5b4   : > { %v4700_v58 = vpop.f32.mrf.mxu0 }
 0x5b6   : > { %v1669_v26 = vpop.f32.mrf.mxu0 }
 0x5b7   : > { %4709 = vmatprep.mubr.msk.f32.mxu1 %vm492_vm0, %v1669_v26 }
 0x5b8   : > { %4710 = vmatmul.mubr.msk.f32.vlgmr.msra.gmra.mxu1 %vm492_vm0, %v4700_v58 }
 0x5b9   : > { %4713 = vmatpush3.msra.mxu1 %v1669_v26  ;;  %4714 = vmatprep.mubr.msk.f32.mxu1 %vm5212_vm13, %v5205_v14 }
 0x5ba   : > { %4717 = vmatprep.subr.mxu1 %v5205_v14 }
 0x678   : > { %v4711_v27 = vpop.f32.mrf.mxu1 }
 0x679   : > { %1830 = vperm.xlu1 %4947, %v4711_v27  }
 0x67a   : > { %v1750_v28 = vpop.f32.mrf.mxu1 }
 0x67b   : > { %1825 = vperm.xlu0 %4948, %v1750_v28  }
 0x699   : > { %1791 = vxpose.xlu0.b32.start.end [1/1] (short) (narrow) %v4711_v27, 8  ;;  %v5141_v27 = vld [vmem:[%s5363_s29] sm:$0xff] }
 0x6a2   : > { %1759 = vxpose.xlu1.b32.start.end [1/1] (short) (narrow) %v1750_v28, 8 }
 0x6c2   : > { %4949 = vset.pattern.permute.xlu0 %v5206_v15 }
 0x6f4   : > { %v1831_v34 = vpop.permute.xlu1 %1830 }
 0x6f6   : > { %v1826_v29 = vpop.permute.xlu0 %1825 }
 0x715   : > { %v1807_v30 = vpop.trf.xlu0 }
 0x716   : > { %v1840_v32 = vrot.slane %v1807_v30, %v5406_v31 }
 0x718   : > { %v1842_v36 = vadd.f32 %v1840_v32, %v1831_v34  ;;  %v5142_v34 = vld [vmem:[%s5363_s29 + $0x8] sm:$0xff]  ;;  %s6312_s29 = smov 112  }
 0x71a   : > { %vm1844_vm14 = vcmp.gt.f32.partialorder %v1842_v36, 0.0  ;;  %v1846_v18 = vmul.f32 0.2, %v1842_v36 }
 0x71c   : > { %v1848_v37 = vsel %vm1844_vm14, %v1842_v36, %v1846_v18  ;;  %v4382_v18 = vld [vmem:[%s6287_s5 + $0x48] sm:$0xff] }
 0x71d   : > { %v1850_v39 = vsel %vm491_vm2, %v1848_v37, -9e+15  ;;  %v4381_v37 = vld [vmem:[%s6287_s5 + $0x40] sm:$0xff] }
 0x71e   : > { %v1775_v40 = vpop.trf.xlu1  ;;  %v1854_v41 = vsel %vm748_vm4, %v1850_v39, -inf }
 0x71f   : > { %v1836_v43 = vrot.slane %v1775_v40, %v5406_v31  ;;  %1855 = vmax.xlane.f32.xlu1 %v1854_v41 }
 0x721   : > { %v1841_v45 = vadd.f32 %v1836_v43, %v1826_v29  ;;  %v2033_v29 = vld [vmem:[%s6285_s3] sm:$0xff] }
 0x723   : > { %vm1843_vm15 = vcmp.gt.f32.partialorder %v1841_v45, 0.0  ;;  %v1845_v17 = vmul.f32 0.2, %v1841_v45 }
 0x725   : > { %v1847_v46 = vsel %vm1843_vm15, %v1841_v45, %v1845_v17 }
 0x726   : > { %v1849_v47 = vsel %vm490_vm5, %v1847_v46, -9e+15  ;;  %vm2067_vm5 = vcmp.gt.f32.partialorder %v5758_v2, 0.0 }
 0x727   : > { %v1851_v48 = vsel %vm748_vm4, %v1849_v47, -inf }
 0x728   : > { %1852 = vmax.xlane.f32.xlu0 %v1851_v48 }
 0x7a8   : > { %v1856_v49 = vpop.xlane.xlu1 %1855 }
 0x7a9   : > { %v1858_v51 = vsub.f32 %v1850_v39, %v1856_v49 }
 0x7ab   : > { %v1861_v33 = vmul.f32 1.442695, %v1858_v51 }
 0x7ad   : > { %5013 = vpow2.f32 %v1861_v33 }
 0x7b1   : > { %v1853_v52 = vpop.xlane.xlu0 %1852 }
 0x7b2   : > { %v1857_v53 = vsub.f32 %v1849_v47, %v1853_v52 }
 0x7b4   : > { %v1859_v54 = vmul.f32 1.442695, %v1857_v53 }
 0x7b6   : > { %5015 = vpow2.f32 %v1859_v54 }
 0x7ba   : > { %v5014_v55 = vpop.eup %5013 }
 0x7bb   : > { %v1866_v44 = vsel %vm748_vm4, %v5014_v55, 0.0 }
 0x7bc   : > { %1867 = vadd.xlane.f32.xlu1 %v1866_v44 }
 0x7c3   : > { %v5016_v57 = vpop.eup %5015 }
 0x7c4   : > { %v1863_v59 = vsel %vm748_vm4, %v5016_v57, 0.0 }
 0x7c5   : > { %1864 = vadd.xlane.f32.xlu0 %v1863_v59 }
 0x845   : > { %v1868_v50 = vpop.xlane.xlu1 %1867 }
 0x84e   : > { %v1865_v60 = vpop.xlane.xlu0 %1864 }
 0x84f   : > { %5017 = vrcp.f32 %v1865_v60 }
 0x850   : > { %5019 = vrcp.f32 %v1868_v50 }
 0x85c   : > { %v5018_v61 = vpop.eup %5017 }
 0x85d   : > { %v1871_v62 = vmul.f32 %v5018_v61, %v5016_v57  ;;  %v5020_v63 = vpop.eup %5019 }
 0x85e   : > { %v1872_v0 = vmul.f32 %v5020_v63, %v5014_v55 }
 0x85f   : > { %4715 = vmatmul.mubr.msk.f32.vlgmr.msra.gmra.mxu1 %vm748_vm4, %v1871_v62 }
 0x860   : > { %4718 = vmatpush3.msra.mxu1 %v4700_v58  ;;  %4719 = vmatprep.mubr.msk.f32.mxu1 %vm5212_vm13, %v5205_v14  ;;  %v4377_v14 = vld [vmem:[%s6286_s4 + $0x20] sm:$0xff]  ;;  %vm2066_vm13 = vcmp.gt.f32.partialorder %v5761_v3, 0.0 }
 0x861   : > { %4728 = vmatprep.subr.mxu0 %v4377_v14  ;;  %4736 = vmatprep.subr.mxu1 %v4388_v4 }
 0x862   : > { %4729 = vmatpush3.msra.mxu0 %v4377_v14 }
 0x863   : > { %4720 = vmatmul.mubr.msk.f32.vlgmr.msra.gmra.mxu1 %vm748_vm4, %v1872_v0 }
 0x864   : > { %4737 = vmatpush3.msra.mxu1 %v4388_v4 }
 0x865   : > { %4738 = vmatprep.subr.mxu1 %v4387_v5 }
 0x866   : > { %4739 = vmatpush3.msra.mxu1 %v4387_v5 }
 0x867   : > { %4740 = vmatprep.subr.mxu1 %v4386_v6 }
 0x868   : > { %4741 = vmatpush3.msra.mxu1 %v4386_v6 }
 0x869   : > { %4742 = vmatprep.subr.mxu1 %v4385_v7 }
 0x86a   : > { %4743 = vmatpush3.msra.mxu1 %v4385_v7 }
 0x86b   : > { %4744 = vmatprep.subr.mxu1 %v4384_v8 }
 0x86c   : > { %4745 = vmatpush3.msra.mxu1 %v4384_v8 }
 0x86d   : > { %4746 = vmatprep.subr.mxu1 %v4383_v9 }
 0x86e   : > { %4747 = vmatpush3.msra.mxu1 %v4383_v9 }
 0x86f   : > { %4748 = vmatprep.subr.mxu1 %v4382_v18 }
 0x870   : > { %4749 = vmatpush3.msra.mxu1 %v4382_v18 }
 0x871   : > { %4750 = vmatprep.subr.mxu1 %v4381_v37 }
 0x872   : > { %4751 = vmatpush3.msra.mxu1 %v4381_v37 }
 0x91f   : > { %v1942_v10 = vpop.f32.mrf.mxu1 }
 0x920   : > { %v2021_v11 = vmin.f32 %v1942_v10, 0.0  ;;  %vm2019_vm2 = vcmp.gt.f32.partialorder %v1942_v10, 0.0 }
 0x921   : > { %v4716_v12 = vpop.f32.mrf.mxu1 }
 0x922   : > { %v2023_v13 = vmul.f32 1.442695, %v2021_v11 }
 0x923   : > { %v2015_v19 = vpop.f32.mrf.mxu1 }
 0x924   : > { %5021 = vpow2.f32 %v2023_v13  ;;  %v2022_v22 = vmin.f32 %v2015_v19, 0.0  ;;  %vm2020_vm4 = vcmp.gt.f32.partialorder %v2015_v19, 0.0 }
 0x925   : > { %v4721_v23 = vpop.f32.mrf.mxu1 }
 0x926   : > { %v2025_v24 = vmul.f32 1.442695, %v2022_v22 }
 0x928   : > { %5023 = vpow2.f32 %v2025_v24 }
 0x931   : > { %v5022_v25 = vpop.eup %5021 }
 0x932   : > { %v4375_v56 = vadd.f32 -1.0, %v5022_v25 }
 0x934   : > { %v2029_v58 = vsel %vm2019_vm2, %v1942_v10, %v4375_v56 }
 0x935   : > { %v5024_v26 = vpop.eup %5023  ;;  %v5665_v28 = vadd.f32 %v5141_v27, %v2029_v58 }
 0x936   : > { %v4376_v30 = vadd.f32 -1.0, %v5024_v26 }
 0x937   : > { %4730 = vmatprep.mubr.msk.f32.mxu0 %vm492_vm0, %v5665_v28 }
 0x938   : > { %v2030_v32 = vsel %vm2020_vm4, %v2015_v19, %v4376_v30  ;;  %4731 = vmatmul.mubr.msk.f32.vlgmr.msra.gmra.mxu0 %vm492_vm0, %v2033_v29 }
 0x939   : > { %v5674_v36 = vadd.f32 %v5142_v34, %v2030_v32 }
 0x93b   : > { %4733 = vmatprep.mubr.msk.f32.mxu0 %vm492_vm0, %v5674_v36 }
 0x93c   : > { %4734 = vmatmul.mubr.msk.f32.gmra.mxu0 %vm492_vm0, %v2033_v29 }
 0x9f8   : > { %v5685_v39 = vpop.f32.mrf.mxu0 }
 0x9f9   : > { %2693 = vrot.lane.b32.xlu1 %v5685_v39, %s6312_s29  ;;  %4758 = vmatprep.subr.mxu0 %v5685_v39 }
 0x9fa   : > { %v5690_v40 = vpop.f32.mrf.mxu0  ;;  %4759 = vmatpush3.msra.mxu0 %v5685_v39 }
 0x9fb   : > { %2691 = vrot.lane.b32.xlu0 %v5690_v40, %s6312_s29  ;;  %4752 = vmatprep.mubr.msk.f32.mxu1 %vm574_vm1, %v5690_v40 }
 0x9fc   : > { %4760 = vmatprep.subr.mxu0 %v5690_v40  ;;  %4753 = vmatmul.mubr.msk.f32.vlgmr.msra.gmra.mxu1 %vm574_vm1, %v5685_v39  ;;  %v5700_v41 = vpop.f32.mrf.mxu0 }
 0x9fd   : > { %4761 = vmatpush3.msra.mxu0 %v5690_v40  ;;  %2979 = vrot.lane.b32.xlu1 %v5685_v39, %s6313_s17 }
 0x9fe   : > { %v5705_v43 = vpop.f32.mrf.mxu0  ;;  %4765 = vmatprep.subr.mxu0 %v5700_v41 }
 0x9ff   : > { %4755 = vmatprep.mubr.msk.f32.mxu1 %vm574_vm1, %v5705_v43  ;;  %2778 = vrot.lane.b32.xlu0 %v5705_v43, %s6312_s29 }
 0xa00   : > { %4756 = vmatmul.mubr.msk.f32.gmra.mxu1 %vm574_vm1, %v5700_v41 }
 0xa01   : > { %2977 = vrot.lane.b32.xlu1 %v5690_v40, %s6313_s17 }
 0xa05   : > { %2780 = vrot.lane.b32.xlu1 %v5700_v41, %s6312_s29 }
 0xa6b   : > { %v5718_v45 = vpop.permute.xlu1 %2693 }
 0xa6d   : > { %v5722_v46 = vpop.permute.xlu0 %2691 }
 0xa6f   : > { %v5720_v17 = vpop.permute.xlu1 %2979 }
 0xa71   : > { %v2779_v49 = vpop.permute.xlu0 %2778 }
 0xa73   : > { %v5724_v47 = vpop.permute.xlu1 %2977 }
 0xa77   : > { %v2781_v48 = vpop.permute.xlu1 %2780 }
 0xa78   : > { %4779 = vmatprep.subr.mxu1 %v2781_v48 }
 0xa79   : > { %4780 = vmatpush3.msra.mxu1 %v2781_v48 }
 0xa7a   : > { %4781 = vmatprep.subr.mxu1 %v2779_v49 }
 0xa7b   : > { %4782 = vmatpush3.msra.mxu1 %v2779_v49 }
 0xabc   : > { %v4754_v51 = vpop.f32.mrf.mxu1 }
 0xabd   : > { %2608 = vperm.xlu0 %4949, %v4754_v51   ;;  %2332 = vperm.xlu1 %4947, %v4754_v51  }
 0xabe   : > { %v2242_v33 = vpop.f32.mrf.mxu1 }
 0xac0   : > { %v4757_v52 = vpop.f32.mrf.mxu1 }
 0xac1   : > { %4951 = vset.pattern.permute.xlu0 %v5209_v21  ;;  %4950 = vset.pattern.permute.xlu1 %v5208_v20 }
 0xac2   : > { %3180 = vperm.xlu0 %4951, %v4754_v51   ;;  %2894 = vperm.xlu1 %4950, %v4754_v51   ;;  %v2252_v53 = vpop.f32.mrf.mxu1 }
 0xac6   : > { %4952 = vset.pattern.permute.xlu0 %v5207_v16  ;;  %4953 = vset.pattern.permute.xlu1 %v5206_v15 }
 0xac7   : > { %2604 = vperm.xlu1 %4953, %v2242_v33   ;;  %2327 = vperm.xlu0 %4952, %v2242_v33  }
 0xacb   : > { %4954 = vset.pattern.permute.xlu1 %v5208_v20  ;;  %2342 = vperm.xlu0 %4952, %v4757_v52  }
 0xacc   : > { %2890 = vperm.xlu1 %4954, %v2242_v33  }
 0xacf   : > { %4956 = vset.pattern.permute.xlu0 %v5206_v15 }
 0xad0   : > { %4955 = vset.pattern.permute.xlu1 %v5209_v21  ;;  %2616 = vperm.xlu0 %4956, %v4757_v52  }
 0xad1   : > { %3176 = vperm.xlu1 %4955, %v2242_v33  }
 0xad4   : > { %4961 = vset.pattern.permute.xlu0 %v5208_v20 }
 0xad5   : > { %4957 = vset.pattern.permute.xlu1 %v5208_v20  ;;  %2898 = vperm.xlu0 %4961, %v2252_v53  }
 0xad6   : > { %2902 = vperm.xlu1 %4957, %v4757_v52  }
 0xada   : > { %4958 = vset.pattern.permute.xlu1 %v5209_v21 }
 0xadb   : > { %3188 = vperm.xlu1 %4958, %v4757_v52  }
 0xadf   : > { %4959 = vset.pattern.permute.xlu1 %v5207_v16 }
 0xae0   : > { %2337 = vperm.xlu1 %4959, %v2252_v53  }
 0xae4   : > { %4960 = vset.pattern.permute.xlu1 %v5206_v15 }
 0xae5   : > { %2612 = vperm.xlu1 %4960, %v2252_v53  }
 0xae9   : > { %4962 = vset.pattern.permute.xlu1 %v5209_v21 }
 0xaea   : > { %3184 = vperm.xlu1 %4962, %v2252_v53  }
 0xaf3   : > { %2261 = vxpose.xlu0.b32.start [1/2] (short) (narrow) %v2242_v33, 8 }
 0xaf7   : > { %2262 = vxpose.xlu0.b32.end [2/2] (short) (narrow) %v4754_v51, 8 }
 0xb13   : > { %2293 = vxpose.xlu1.b32.start [1/2] (short) (narrow) %v2252_v53, 8 }
 0xb17   : > { %2294 = vxpose.xlu1.b32.end [2/2] (short) (narrow) %v4757_v52, 8 }
 0xb20   : > { %4964 = vset.pattern.permute.xlu0 %v5207_v16 }
 0xb35   : > { %4963 = vset.pattern.permute.xlu1 %v5207_v16 }
 0xb38   : > { %v2609_v20 = vpop.permute.xlu0 %2608  ;;  %v2333_v55 = vpop.permute.xlu1 %2332 }
 0xb3d   : > { %v3181_v54 = vpop.permute.xlu0 %3180  ;;  %v2895_v57 = vpop.permute.xlu1 %2894 }
 0xb42   : > { %v2328_v44 = vpop.permute.xlu0 %2327  ;;  %v2605_v15 = vpop.permute.xlu1 %2604 }
 0xb46   : > { %v5741_v59 = vpop.permute.xlu0 %2342 }
 0xb47   : > { %v2891_v21 = vpop.permute.xlu1 %2890 }
 0xb4b   : > { %v5743_v50 = vpop.permute.xlu0 %2616 }
 0xb4c   : > { %v3177_v16 = vpop.permute.xlu1 %3176 }
 0xb50   : > { %v5746_v60 = vpop.permute.xlu0 %2898 }
 0xb51   : > { %v5763_v7 = vpop.permute.xlu1 %2902 }
 0xb56   : > { %v3189_v29 = vpop.permute.xlu1 %3188 }
 0xb6f   : > { %v2277_v61 = vpop.trf.xlu0 }
 0xb70   : > { %v2348_v62 = vrot.slane %v2277_v61, %v5406_v31  ;;  %v2622_v63 = vrot.slane %v2277_v61, %v5415_v35  ;;  %v2908_v0 = vrot.slane %v2277_v61, %v5419_v38  ;;  %v3194_v1 = vrot.slane %v2277_v61, %v5422_v42 }
 0xb72   : > { %v2628_v14 = vadd.f32 %v2622_v63, %v2609_v20  ;;  %v2354_v4 = vadd.f32 %v2348_v62, %v2333_v55  ;;  %v2914_v5 = vadd.f32 %v2908_v0, %v2895_v57  ;;  %v2627_v6 = vadd.f32 %v2622_v63, %v2605_v15  ;;  %v2338_v20 = vpop.permute.xlu1 %2337 }
 0xb73   : > { %v3200_v8 = vadd.f32 %v3194_v1, %v3181_v54  ;;  %v2353_v9 = vadd.f32 %v2348_v62, %v2328_v44  ;;  %v2913_v37 = vadd.f32 %v2908_v0, %v2891_v21  ;;  %v3199_v53 = vadd.f32 %v3194_v1, %v3177_v16 }
 0xb74   : > { %vm2632_vm3 = vcmp.gt.f32.partialorder %v2628_v14, 0.0  ;;  %v2636_v10 = vmul.f32 0.2, %v2628_v14  ;;  %vm2358_vm6 = vcmp.gt.f32.partialorder %v2354_v4, 0.0  ;;  %v2362_v11 = vmul.f32 0.2, %v2354_v4 }
 0xb75   : > { %vm2918_vm7 = vcmp.gt.f32.partialorder %v2914_v5, 0.0  ;;  %v2922_v12 = vmul.f32 0.2, %v2914_v5  ;;  %vm2631_vm8 = vcmp.gt.f32.partialorder %v2627_v6, 0.0  ;;  %v2635_v13 = vmul.f32 0.2, %v2627_v6 }
 0xb76   : > { %v2640_v19 = vsel %vm2632_vm3, %v2628_v14, %v2636_v10  ;;  %v2366_v22 = vsel %vm2358_vm6, %v2354_v4, %v2362_v11  ;;  %vm3204_vm9 = vcmp.gt.f32.partialorder %v3200_v8, 0.0  ;;  %v3208_v23 = vmul.f32 0.2, %v3200_v8  ;;  %v2613_v21 = vpop.permute.xlu1 %2612 }
 0xb77   : > { %v5769_v24 = vsel %vm2067_vm5, %v2640_v19, -9e+15  ;;  %v5773_v25 = vsel %vm2067_vm5, %v2366_v22, -9e+15  ;;  %v2926_v56 = vsel %vm2918_vm7, %v2914_v5, %v2922_v12  ;;  %v2639_v58 = vsel %vm2631_vm8, %v2627_v6, %v2635_v13 }
 0xb78   : > { %v2650_v26 = vsel %vm1589_vm10, %v5769_v24, -inf  ;;  %v2376_v27 = vsel %vm1589_vm10, %v5773_v25, -inf  ;;  %v5781_v30 = vsel %vm2067_vm5, %v2926_v56, -9e+15  ;;  %v5785_v32 = vsel %vm2066_vm13, %v2639_v58, -9e+15 }
 0xb79   : > { %2651 = vmax.xlane.f32.xlu0 %v2650_v26  ;;  %2377 = vmax.xlane.f32.xlu1 %v2376_v27  ;;  %v3212_v34 = vsel %vm3204_vm9, %v3200_v8, %v3208_v23  ;;  %v2361_v18 = vmul.f32 0.2, %v2353_v9  ;;  %vm2357_vm11 = vcmp.gt.f32.partialorder %v2353_v9, 0.0  ;;  %v2936_v48 = vsel %vm1589_vm10, %v5781_v30, -inf  ;;  %v5835_v27 = vld [vmem:[%s5751_s15 + $0x10] sm:$0xff] }
 0xb7a   : > { %v2647_v49 = vsel %vm1589_vm10, %v5785_v32, -inf  ;;  %v5793_v51 = vsel %vm2067_vm5, %v3212_v34, -9e+15  ;;  %v2921_v52 = vmul.f32 0.2, %v2913_v37  ;;  %vm2917_vm14 = vcmp.gt.f32.partialorder %v2913_v37, 0.0  ;;  %v3185_v0 = vpop.permute.xlu1 %3184 }
 0xb7b   : > { %v2365_v33 = vsel %vm2357_vm11, %v2353_v9, %v2361_v18  ;;  %v3222_v54 = vsel %vm1589_vm10, %v5793_v51, -inf  ;;  %v3207_v57 = vmul.f32 0.2, %v3199_v53  ;;  %vm3203_vm15 = vcmp.gt.f32.partialorder %v3199_v53, 0.0  ;;  %v5820_v9 = vld [vmem:[%s5751_s15 + $0x18] sm:$0xff]  ;;  %s5147_s15 = sshll.u32 %s5217_s25, 4  ;;  %s5148_s15 = int_to_ptr.vmem [resolvable:$false] %s5147_s15 }
 0xb7c   : > { %v5799_v55 = vsel %vm2066_vm13, %v2365_v33, -9e+15  ;;  %v2925_v44 = vsel %vm2917_vm14, %v2913_v37, %v2921_v52  ;;  %vm2069_vm2 = vcmp.gt.f32.partialorder %v5820_v9, 0.0  ;;  %vm2068_vm9 = vcmp.gt.f32.partialorder %v5835_v27, 0.0  ;;  %s5149_s0 = scalar_lea.vmem %s5148_s15, 512 }
 0xb7d   : > { %2937 = vmax.xlane.f32.xlu0 %v2936_v48  ;;  %2648 = vmax.xlane.f32.xlu1 %v2647_v49  ;;  %v2373_v15 = vsel %vm1589_vm10, %v5799_v55, -inf  ;;  %v5805_v16 = vsel %vm2066_vm13, %v2925_v44, -9e+15  ;;  %v3211_v61 = vsel %vm3203_vm15, %v3199_v53, %v3207_v57 }
 0xb7e   : > { %v2933_v62 = vsel %vm1589_vm10, %v5805_v16, -inf  ;;  %v5811_v63 = vsel %vm2066_vm13, %v3211_v61, -9e+15 }
 0xb7f   : > { %v3219_v1 = vsel %vm1589_vm10, %v5811_v63, -inf }
 0xb81   : > { %3223 = vmax.xlane.f32.xlu0 %v3222_v54 }
 0xb85   : > { %2374 = vmax.xlane.f32.xlu0 %v2373_v15 }
 0xb89   : > { %2934 = vmax.xlane.f32.xlu0 %v2933_v62 }
 0xb8d   : > { %3220 = vmax.xlane.f32.xlu0 %v3219_v1 }
 0xb8f   : > { %v2309_v14 = vpop.trf.xlu1 }
 0xb90   : > { %v2352_v4 = vrot.slane %v2309_v14, %v5406_v31  ;;  %v2626_v5 = vrot.slane %v2309_v14, %v5415_v35  ;;  %v2912_v6 = vrot.slane %v2309_v14, %v5419_v38  ;;  %v3198_v8 = vrot.slane %v2309_v14, %v5422_v42 }
 0xb92   : > { %v2630_v10 = vadd.f32 %v2626_v5, %v5743_v50  ;;  %v2356_v11 = vadd.f32 %v2352_v4, %v5741_v59  ;;  %v2916_v12 = vadd.f32 %v2912_v6, %v5763_v7  ;;  %v3202_v13 = vadd.f32 %v3198_v8, %v3189_v29 }
 0xb93   : > { %v2355_v19 = vadd.f32 %v2352_v4, %v2338_v20  ;;  %v2629_v20 = vadd.f32 %v2626_v5, %v2613_v21  ;;  %v2915_v44 = vadd.f32 %v2912_v6, %v5746_v60  ;;  %v3201_v61 = vadd.f32 %v3198_v8, %v3185_v0 }
 0xb94   : > { %vm2634_vm4 = vcmp.gt.f32.partialorder %v2630_v10, 0.0  ;;  %v2638_v22 = vmul.f32 0.2, %v2630_v10  ;;  %vm2360_vm3 = vcmp.gt.f32.partialorder %v2356_v11, 0.0  ;;  %v2364_v35 = vmul.f32 0.2, %v2356_v11 }
 0xb95   : > { %vm2920_vm6 = vcmp.gt.f32.partialorder %v2916_v12, 0.0  ;;  %v2924_v38 = vmul.f32 0.2, %v2916_v12  ;;  %vm3206_vm7 = vcmp.gt.f32.partialorder %v3202_v13, 0.0  ;;  %v3210_v42 = vmul.f32 0.2, %v3202_v13 }
 0xb96   : > { %v2642_v23 = vsel %vm2634_vm4, %v2630_v10, %v2638_v22  ;;  %v2368_v56 = vsel %vm2360_vm3, %v2356_v11, %v2364_v35  ;;  %vm2359_vm8 = vcmp.gt.f32.partialorder %v2355_v19, 0.0  ;;  %v2363_v50 = vmul.f32 0.2, %v2355_v19 }
 0xb97   : > { %v5828_v59 = vsel %vm2069_vm2, %v2642_v23, -9e+15  ;;  %v5832_v7 = vsel %vm2069_vm2, %v2368_v56, -9e+15  ;;  %v2928_v58 = vsel %vm2920_vm6, %v2916_v12, %v2924_v38  ;;  %v3214_v26 = vsel %vm3206_vm7, %v3202_v13, %v3210_v42 }
 0xb98   : > { %v2656_v29 = vsel %vm1589_vm10, %v5828_v59, -inf  ;;  %v2382_v34 = vsel %vm1589_vm10, %v5832_v7, -inf  ;;  %v5843_v18 = vsel %vm2069_vm2, %v2928_v58, -9e+15  ;;  %v5847_v37 = vsel %vm2069_vm2, %v3214_v26, -9e+15 }
 0xb99   : > { %2657 = vmax.xlane.f32.xlu1 %v2656_v29  ;;  %2383 = vmax.xlane.f32.xlu0 %v2382_v34  ;;  %v2367_v48 = vsel %vm2359_vm8, %v2355_v19, %v2363_v50  ;;  %v2942_v49 = vsel %vm1589_vm10, %v5843_v18, -inf  ;;  %v3228_v33 = vsel %vm1589_vm10, %v5847_v37, -inf  ;;  %v2637_v54 = vmul.f32 0.2, %v2629_v20 }
 0xb9a   : > { %v5856_v52 = vsel %vm2068_vm9, %v2367_v48, -9e+15  ;;  %vm2633_vm11 = vcmp.gt.f32.partialorder %v2629_v20, 0.0  ;;  %v2923_v15 = vmul.f32 0.2, %v2915_v44  ;;  %vm2919_vm14 = vcmp.gt.f32.partialorder %v2915_v44, 0.0 }
 0xb9b   : > { %v2379_v53 = vsel %vm1589_vm10, %v5856_v52, -inf  ;;  %v2641_v57 = vsel %vm2633_vm11, %v2629_v20, %v2637_v54  ;;  %v3209_v14 = vmul.f32 0.2, %v3201_v61  ;;  %vm3205_vm15 = vcmp.gt.f32.partialorder %v3201_v61, 0.0 }
 0xb9c   : > { %v5867_v62 = vsel %vm2068_vm9, %v2641_v57, -9e+15  ;;  %v2927_v1 = vsel %vm2919_vm14, %v2915_v44, %v2923_v15 }
 0xb9d   : > { %2943 = vmax.xlane.f32.xlu1 %v2942_v49  ;;  %3229 = vmax.xlane.f32.xlu0 %v3228_v33  ;;  %v5873_v21 = vsel %vm2068_vm9, %v2927_v1, -9e+15  ;;  %v3213_v60 = vsel %vm3205_vm15, %v3201_v61, %v3209_v14 }
 0xb9e   : > { %v2939_v0 = vsel %vm1589_vm10, %v5873_v21, -inf  ;;  %v5879_v4 = vsel %vm2068_vm9, %v3213_v60, -9e+15 }
 0xb9f   : > { %v3225_v5 = vsel %vm1589_vm10, %v5879_v4, -inf }
 0xba1   : > { %2380 = vmax.xlane.f32.xlu0 %v2379_v53 }
 0xbae   : > { %3265 = vrot.lane.b32.xlu1 %v5685_v39, %s6314_s19  ;;  %v2653_v39 = vsel %vm1589_vm10, %v5867_v62, -inf }
 0xbb7   : > { %3066 = vrot.lane.b32.xlu0 %v5700_v41, %s6313_s17 }
 0xbd2   : > { %2654 = vmax.xlane.f32.xlu1 %v2653_v39 }
 0xbd6   : > { %2940 = vmax.xlane.f32.xlu1 %v2939_v0 }
 0xbda   : > { %3226 = vmax.xlane.f32.xlu1 %v3225_v5 }
 0xc02   : > { %v2652_v6 = vpop.xlane.xlu0 %2651  ;;  %v2378_v8 = vpop.xlane.xlu1 %2377 }
 0xc03   : > { %v2660_v10 = vsub.f32 %v5769_v24, %v2652_v6  ;;  %v2386_v11 = vsub.f32 %v5773_v25, %v2378_v8 }
 0xc05   : > { %v2391_v12 = vmul.f32 1.442695, %v2386_v11  ;;  %v2665_v13 = vmul.f32 1.442695, %v2660_v10 }
 0xc06   : > { %v2938_v19 = vpop.xlane.xlu0 %2937  ;;  %v2649_v38 = vpop.xlane.xlu1 %2648 }
 0xc07   : > { %v2946_v22 = vsub.f32 %v5781_v30, %v2938_v19  ;;  %5025 = vpow2.f32 %v2391_v12  ;;  %v2659_v56 = vsub.f32 %v5785_v32, %v2649_v38 }
 0xc08   : > { %5027 = vpow2.f32 %v2665_v13 }
 0xc09   : > { %v2951_v35 = vmul.f32 1.442695, %v2946_v22  ;;  %v2663_v25 = vmul.f32 1.442695, %v2659_v56 }
 0xc0a   : > { %v3224_v42 = vpop.xlane.xlu0 %3223 }
 0xc0b   : > { %v3232_v23 = vsub.f32 %v5793_v51, %v3224_v42  ;;  %5029 = vpow2.f32 %v2951_v35 }
 0xc0d   : > { %v3237_v50 = vmul.f32 1.442695, %v3232_v23 }
 0xc0e   : > { %v2375_v58 = vpop.xlane.xlu0 %2374 }
 0xc0f   : > { %v2385_v24 = vsub.f32 %v5799_v55, %v2375_v58  ;;  %5031 = vpow2.f32 %v3237_v50 }
 0xc11   : > { %v2389_v26 = vmul.f32 1.442695, %v2385_v24 }
 0xc12   : > { %v2935_v29 = vpop.xlane.xlu0 %2934 }
 0xc13   : > { %5033 = vpow2.f32 %v2389_v26  ;;  %v2945_v30 = vsub.f32 %v5805_v16, %v2935_v29 }
 0xc14   : > { %v5890_v34 = vpop.eup %5025  ;;  %5035 = vpow2.f32 %v2663_v25 }
 0xc15   : > { %v2949_v48 = vmul.f32 1.442695, %v2945_v30  ;;  %v2400_v32 = vsel %vm1589_vm10, %v5890_v34, 0.0  ;;  %v5894_v51 = vpop.eup %5027 }
 0xc16   : > { %v3221_v49 = vpop.xlane.xlu0 %3220  ;;  %2401 = vadd.xlane.f32.xlu0 %v2400_v32  ;;  %v2674_v53 = vsel %vm1589_vm10, %v5894_v51, 0.0 }
 0xc17   : > { %5037 = vpow2.f32 %v2949_v48  ;;  %v3231_v55 = vsub.f32 %v5811_v63, %v3221_v49 }
 0xc18   : > { %v5899_v20 = vpop.eup %5029 }
 0xc19   : > { %v3235_v33 = vmul.f32 1.442695, %v3231_v55  ;;  %v2960_v16 = vsel %vm1589_vm10, %v5899_v20, 0.0 }
 0xc1a   : > { %2675 = vadd.xlane.f32.xlu0 %v2674_v53 }
 0xc1b   : > { %5039 = vpow2.f32 %v3235_v33 }
 0xc1c   : > { %v5903_v54 = vpop.eup %5031 }
 0xc1d   : > { %v3246_v61 = vsel %vm1589_vm10, %v5903_v54, 0.0 }
 0xc1e   : > { %2961 = vadd.xlane.f32.xlu0 %v2960_v16 }
 0xc20   : > { %v5905_v44 = vpop.eup %5033 }
 0xc21   : > { %v2397_v63 = vsel %vm1589_vm10, %v5905_v44, 0.0  ;;  %v5909_v57 = vpop.eup %5035 }
 0xc22   : > { %2398 = vadd.xlane.f32.xlu1 %v2397_v63  ;;  %v2384_v15 = vpop.xlane.xlu0 %2383  ;;  %3247 = vadd.xlane.f32.xlu0 %v3246_v61  ;;  %v2671_v0 = vsel %vm1589_vm10, %v5909_v57, 0.0  ;;  %v2658_v13 = vpop.xlane.xlu1 %2657 }
 0xc23   : > { %v2388_v1 = vsub.f32 %v5832_v7, %v2384_v15  ;;  %v2662_v19 = vsub.f32 %v5828_v59, %v2658_v13 }
 0xc24   : > { %v5914_v14 = vpop.eup %5037 }
 0xc25   : > { %v2395_v39 = vmul.f32 1.442695, %v2388_v1  ;;  %v2957_v60 = vsel %vm1589_vm10, %v5914_v14, 0.0  ;;  %v2669_v35 = vmul.f32 1.442695, %v2662_v19 }
 0xc26   : > { %v3230_v5 = vpop.xlane.xlu0 %3229  ;;  %2672 = vadd.xlane.f32.xlu1 %v2671_v0  ;;  %2958 = vadd.xlane.f32.xlu0 %v2957_v60  ;;  %v2944_v22 = vpop.xlane.xlu1 %2943 }
 0xc27   : > { %5041 = vpow2.f32 %v2395_v39  ;;  %v2948_v38 = vsub.f32 %v5843_v18, %v2944_v22  ;;  %v3234_v50 = vsub.f32 %v5847_v37, %v3230_v5 }
 0xc28   : > { %v5920_v6 = vpop.eup %5039  ;;  %5043 = vpow2.f32 %v2669_v35 }
 0xc29   : > { %v3243_v8 = vsel %vm1589_vm10, %v5920_v6, 0.0  ;;  %v2955_v42 = vmul.f32 1.442695, %v2948_v38 }
 0xc2a   : > { %v2381_v7 = vpop.xlane.xlu0 %2380  ;;  %3244 = vadd.xlane.f32.xlu0 %v3243_v8  ;;  %v5941_v59 = vpop.permute.xlu1 %3265 }
 0xc2b   : > { %v2387_v23 = vsub.f32 %v5856_v52, %v2381_v7  ;;  %5045 = vpow2.f32 %v2955_v42 }
 0xc2d   : > { %v2393_v56 = vmul.f32 1.442695, %v2387_v23 }
 0xc2e   : > { %v5924_v10 = vpop.permute.xlu0 %3066 }
 0xc2f   : > { %4793 = vmatprep.subr.mxu1 %v5924_v10  ;;  %5047 = vpow2.f32 %v2393_v56 }
 0xc34   : > { %v5927_v11 = vpop.eup %5041 }
 0xc35   : > { %v2406_v12 = vsel %vm1589_vm10, %v5927_v11, 0.0  ;;  %v5939_v58 = vpop.eup %5043 }
 0xc36   : > { %2407 = vadd.xlane.f32.xlu0 %v2406_v12  ;;  %v2680_v18 = vsel %vm1589_vm10, %v5939_v58, 0.0 }
 0xc37   : > { %3263 = vrot.lane.b32.xlu1 %v5690_v40, %s6314_s19  ;;  %v3241_v40 = vmul.f32 1.442695, %v3234_v50 }
 0xc38   : > { %v5945_v24 = vpop.eup %5045 }
 0xc39   : > { %5049 = vpow2.f32 %v3241_v40  ;;  %v2966_v37 = vsel %vm1589_vm10, %v5945_v24, 0.0 }
 0xc3c   : > { %v5950_v29 = vpop.eup %5047 }
 0xc3d   : > { %v2403_v32 = vsel %vm1589_vm10, %v5950_v29, 0.0 }
 0xc46   : > { %v5956_v53 = vpop.eup %5049 }
 0xc47   : > { %v3252_v16 = vsel %vm1589_vm10, %v5956_v53, 0.0 }
 0xc4c   : > { %3064 = vrot.lane.b32.xlu0 %v5705_v43, %s6313_s17  ;;  %s6240_s17 = scalar_lea.hbm %s6294_s12, %s4467_s26 }
 0xc5b   : > { %2681 = vadd.xlane.f32.xlu1 %v2680_v18  ;;  %v2655_v52 = vpop.xlane.xlu1 %2654 }
 0xc5c   : > { %v2661_v25 = vsub.f32 %v5867_v62, %v2655_v52 }
 0xc5e   : > { %v2667_v26 = vmul.f32 1.442695, %v2661_v25 }
 0xc5f   : > { %2967 = vadd.xlane.f32.xlu1 %v2966_v37  ;;  %v2941_v30 = vpop.xlane.xlu1 %2940 }
 0xc60   : > { %5051 = vpow2.f32 %v2667_v26  ;;  %v2947_v48 = vsub.f32 %v5873_v21, %v2941_v30 }
 0xc62   : > { %v2953_v49 = vmul.f32 1.442695, %v2947_v48 }
 0xc63   : > { %2404 = vadd.xlane.f32.xlu1 %v2403_v32  ;;  %v3227_v55 = vpop.xlane.xlu1 %3226 }
 0xc64   : > { %5053 = vpow2.f32 %v2953_v49  ;;  %v3233_v62 = vsub.f32 %v5879_v4, %v3227_v55 }
 0xc66   : > { %v3239_v33 = vmul.f32 1.442695, %v3233_v62 }
 0xc68   : > { %5055 = vpow2.f32 %v3239_v33 }
 0xc6b   : > { %3253 = vadd.xlane.f32.xlu0 %v3252_v16 }
 0xc6d   : > { %v5960_v63 = vpop.eup %5051 }
 0xc6e   : > { %v2677_v21 = vsel %vm1589_vm10, %v5960_v63, 0.0 }
 0xc6f   : > { %2678 = vadd.xlane.f32.xlu1 %v2677_v21 }
 0xc71   : > { %v5964_v15 = vpop.eup %5053 }
 0xc72   : > { %v2963_v61 = vsel %vm1589_vm10, %v5964_v15, 0.0 }
 0xc73   : > { %2964 = vadd.xlane.f32.xlu1 %v2963_v61 }
 0xc75   : > { %v5968_v4 = vpop.eup %5055 }
 0xc76   : > { %v3249_v1 = vsel %vm1589_vm10, %v5968_v4, 0.0 }
 0xc77   : > { %3250 = vadd.xlane.f32.xlu1 %v3249_v1 }
 0xc81   : > { %3352 = vrot.lane.b32.xlu0 %v5700_v41, %s6314_s19 }
 0xc88   : > { %3350 = vrot.lane.b32.xlu1 %v5705_v43, %s6314_s19 }
 0xc9f   : > { %v2402_v39 = vpop.xlane.xlu0 %2401 }
 0xca0   : > { %5057 = vrcp.f32 %v2402_v39 }
 0xca3   : > { %v2676_v12 = vpop.xlane.xlu0 %2675 }
 0xca7   : > { %v2962_v13 = vpop.xlane.xlu0 %2961 }
 0xcab   : > { %v2399_v60 = vpop.xlane.xlu1 %2398  ;;  %v3248_v19 = vpop.xlane.xlu0 %3247 }
 0xcac   : > { %5059 = vrcp.f32 %v2399_v60 }
 0xcad   : > { %v5058_v0 = vpop.eup %5057 }
 0xcae   : > { %v2414_v7 = vmul.f32 %v5058_v0, %v5890_v34 }
 0xcaf   : > { %v2673_v22 = vpop.xlane.xlu1 %2672  ;;  %v2959_v35 = vpop.xlane.xlu0 %2958 }
 0xcb0   : > { %5061 = vrcp.f32 %v2673_v22 }
 0xcb3   : > { %v3245_v34 = vpop.xlane.xlu0 %3244 }
 0xcb9   : > { %v5060_v5 = vpop.eup %5059 }
 0xcba   : > { %v2413_v8 = vmul.f32 %v5060_v5, %v5905_v44  ;;  %v3264_v44 = vpop.permute.xlu1 %3263 }
 0xcbc   : > { %4762 = vmatprep.mubr.msk.f32.mxu0 %vm1589_vm10, %v2413_v8 }
 0xcbd   : > { %4763 = vmatmul.mubr.msk.f32.vlgmr.msra.gmra.mxu0 %vm1589_vm10, %v2414_v7 }
 0xcbe   : > { %4766 = vmatpush3.msra.mxu0 %v5700_v41  ;;  %v5062_v41 = vpop.eup %5061 }
 0xcbf   : > { %4767 = vmatprep.subr.mxu0 %v5705_v43  ;;  %v2408_v23 = vpop.xlane.xlu0 %2407  ;;  %v2687_v48 = vmul.f32 %v5062_v41, %v5909_v57 }
 0xcc0   : > { %4768 = vmatpush3.msra.mxu0 %v5705_v43  ;;  %5063 = vrcp.f32 %v2408_v23 }
 0xcc1   : > { %4772 = vmatprep.subr.mxu0 %v5718_v45 }
 0xcc3   : > { %v3065_v40 = vpop.permute.xlu0 %3064 }
 0xccd   : > { %v5064_v50 = vpop.eup %5063 }
 0xcce   : > { %v2416_v26 = vmul.f32 %v5064_v50, %v5927_v11 }
 0xce4   : > { %v2682_v38 = vpop.xlane.xlu1 %2681 }
 0xce8   : > { %v2968_v42 = vpop.xlane.xlu1 %2967 }
 0xcec   : > { %v2405_v56 = vpop.xlane.xlu1 %2404 }
 0xced   : > { %5065 = vrcp.f32 %v2405_v56 }
 0xcee   : > { %5067 = vrcp.f32 %v2676_v12 }
 0xcef   : > { %5069 = vrcp.f32 %v2959_v35 }
 0xcf0   : > { %5071 = vrcp.f32 %v2962_v13 }
 0xcf1   : > { %5073 = vrcp.f32 %v3245_v34 }
 0xcf2   : > { %5075 = vrcp.f32 %v3248_v19 }
 0xcf3   : > { %5077 = vrcp.f32 %v2682_v38 }
 0xcf4   : > { %v3254_v30 = vpop.xlane.xlu0 %3253 }
 0xcf8   : > { %v2679_v43 = vpop.xlane.xlu1 %2678 }
 0xcf9   : > { %5079 = vrcp.f32 %v2679_v43 }
 0xcfa   : > { %v5066_v18 = vpop.eup %5065  ;;  %5081 = vrcp.f32 %v2968_v42 }
 0xcfb   : > { %v2415_v52 = vmul.f32 %v5066_v18, %v5950_v29  ;;  %v5068_v37 = vpop.eup %5067 }
 0xcfc   : > { %v2965_v25 = vpop.xlane.xlu1 %2964  ;;  %v5070_v49 = vpop.eup %5069  ;;  %v2688_v11 = vmul.f32 %v5068_v37, %v5894_v51 }
 0xcfd   : > { %5083 = vrcp.f32 %v2965_v25  ;;  %4769 = vmatprep.mubr.msk.f32.mxu0 %vm1589_vm10, %v2415_v52  ;;  %v5072_v32 = vpop.eup %5071  ;;  %v2973_v55 = vmul.f32 %v5070_v49, %v5914_v14 }
 0xcfe   : > { %4770 = vmatmul.mubr.msk.f32.vlgmr.msra.gmra.mxu0 %vm1589_vm10, %v2416_v26  ;;  %5085 = vrcp.f32 %v3254_v30  ;;  %v5074_v57 = vpop.eup %5073  ;;  %v2974_v51 = vmul.f32 %v5072_v32, %v5899_v20  ;;  %v4396_v32 = vld [vmem:[%s6288_s6 + $0x78] sm:$0xff] }
 0xcff   : > { %4773 = vmatpush3.msra.mxu0 %v5718_v45  ;;  %4776 = vmatprep.mubr.msk.f32.mxu0 %vm1589_vm10, %v2687_v48  ;;  %v5076_v45 = vpop.eup %5075 }
 0xd00   : > { %4774 = vmatprep.subr.mxu0 %v5722_v46  ;;  %v3251_v29 = vpop.xlane.xlu1 %3250  ;;  %v5078_v62 = vpop.eup %5077  ;;  %v3260_v20 = vmul.f32 %v5076_v45, %v5903_v54  ;;  %v4395_v45 = vld [vmem:[%s6288_s6 + $0x70] sm:$0xff] }
 0xd01   : > { %4775 = vmatpush3.msra.mxu0 %v5722_v46  ;;  %5087 = vrcp.f32 %v3251_v29  ;;  %v3259_v46 = vmul.f32 %v5074_v57, %v5920_v6  ;;  %v2690_v33 = vmul.f32 %v5078_v62, %v5939_v58 }
 0xd02   : > { %4786 = vmatprep.subr.mxu0 %v5720_v17  ;;  %4777 = vmatmul.mubr.msk.f32.vlgmr.msra.gmra.mxu0 %vm1589_vm10, %v2688_v11 }
 0xd03   : > { %4787 = vmatpush3.msra.mxu0 %v5720_v17  ;;  %4790 = vmatprep.mubr.msk.f32.mxu0 %vm1589_vm10, %v2973_v55 }
 0xd04   : > { %4788 = vmatprep.subr.mxu0 %v5724_v47  ;;  %v3351_v21 = vpop.permute.xlu1 %3350 }
 0xd05   : > { %4789 = vmatpush3.msra.mxu0 %v5724_v47 }
 0xd06   : > { %v5080_v14 = vpop.eup %5079  ;;  %4800 = vmatprep.subr.mxu0 %v5941_v59  ;;  %4791 = vmatmul.mubr.msk.f32.vlgmr.msra.gmra.mxu0 %vm1589_vm10, %v2974_v51 }
 0xd07   : > { %4801 = vmatpush3.msra.mxu0 %v5941_v59  ;;  %4804 = vmatprep.mubr.msk.f32.mxu0 %vm1589_vm10, %v3259_v46  ;;  %v2689_v17 = vmul.f32 %v5080_v14, %v5960_v63  ;;  %v5082_v16 = vpop.eup %5081  ;;  %v3353_v63 = vpop.permute.xlu0 %3352  ;;  %v4394_v46 = vld [vmem:[%s6288_s6 + $0x68] sm:$0xff] }
 0xd08   : > { %4802 = vmatprep.subr.mxu0 %v3264_v44  ;;  %v2976_v59 = vmul.f32 %v5082_v16, %v5945_v24  ;;  %v4393_v16 = vld [vmem:[%s6288_s6 + $0x60] sm:$0xff] }
 0xd09   : > { %4803 = vmatpush3.msra.mxu0 %v3264_v44  ;;  %4783 = vmatprep.mubr.msk.f32.mxu1 %vm1589_vm10, %v2689_v17 }
 0xd0a   : > { %v5084_v47 = vpop.eup %5083  ;;  %4784 = vmatmul.mubr.msk.f32.vlgmr.msra.gmra.mxu1 %vm1589_vm10, %v2690_v33  ;;  %4805 = vmatmul.mubr.msk.f32.vlgmr.msra.gmra.mxu0 %vm1589_vm10, %v3260_v20 }
 0xd0b   : > { %4794 = vmatpush3.msra.mxu1 %v5924_v10  ;;  %v2975_v6 = vmul.f32 %v5084_v47, %v5964_v15  ;;  %v5086_v58 = vpop.eup %5085  ;;  %4814 = vmatprep.subr.mxu0 %v4396_v32 }
 0xd0c   : > { %4795 = vmatprep.subr.mxu1 %v3065_v40  ;;  %v3262_v10 = vmul.f32 %v5086_v58, %v5956_v53  ;;  %4815 = vmatpush3.msra.mxu0 %v4396_v32 }
 0xd0d   : > { %4796 = vmatpush3.msra.mxu1 %v3065_v40  ;;  %4797 = vmatprep.mubr.msk.f32.mxu1 %vm1589_vm10, %v2975_v6 }
 0xd0e   : > { %v5088_v54 = vpop.eup %5087  ;;  %4807 = vmatprep.subr.mxu1 %v3353_v63  ;;  %4798 = vmatmul.mubr.msk.f32.vlgmr.msra.gmra.mxu1 %vm1589_vm10, %v2976_v59 }
 0xd0f   : > { %4808 = vmatpush3.msra.mxu1 %v3353_v63  ;;  %v3261_v61 = vmul.f32 %v5088_v54, %v5968_v4  ;;  %4816 = vmatprep.subr.mxu0 %v4395_v45  ;;  %v4392_v63 = vld [vmem:[%s6288_s6 + $0x58] sm:$0xff] }
 0xd10   : > { %4809 = vmatprep.subr.mxu1 %v3351_v21  ;;  %4817 = vmatpush3.msra.mxu0 %v4395_v45 }
 0xd11   : > { %4810 = vmatpush3.msra.mxu1 %v3351_v21  ;;  %4811 = vmatprep.mubr.msk.f32.mxu1 %vm1589_vm10, %v3261_v61 }
 0xd12   : > { %4812 = vmatmul.mubr.msk.f32.vlgmr.msra.gmra.mxu1 %vm1589_vm10, %v3262_v10  ;;  %4818 = vmatprep.subr.mxu0 %v4394_v46  ;;  %v4391_v10 = vld [vmem:[%s6288_s6 + $0x50] sm:$0xff] }
 0xd13   : > { %4819 = vmatpush3.msra.mxu0 %v4394_v46 }
 0xd14   : > { %4820 = vmatprep.subr.mxu0 %v4393_v16 }
 0xd15   : > { %4821 = vmatpush3.msra.mxu0 %v4393_v16 }
 0xd16   : > { %4822 = vmatprep.subr.mxu0 %v4392_v63 }
 0xd17   : > { %4823 = vmatpush3.msra.mxu0 %v4392_v63 }
 0xd18   : > { %4824 = vmatprep.subr.mxu0 %v4391_v10 }
 0xd19   : > { %4825 = vmatpush3.msra.mxu0 %v4391_v10 }
 0xd7d   : > { %v6022_v24 = vpop.f32.mrf.mxu0 }
 0xd7f   : > { %v6024_v15 = vpop.f32.mrf.mxu0 }
 0xdbe   : > { %v6026_v1 = vpop.f32.mrf.mxu0 }
 0xdbf   : > { %v2586_v46 = vmin.f32 %v6026_v1, 0.0 }
 0xdc0   : > { %v6028_v39 = vpop.f32.mrf.mxu0 }
 0xdc2   : > { %v6030_v60 = vpop.f32.mrf.mxu0 }
 0xdc3   : > { %v2870_v4 = vmin.f32 %v6030_v60, 0.0  ;;  %vm2866_vm6 = vcmp.gt.f32.partialorder %v6030_v60, 0.0 }
 0xdc4   : > { %v6032_v0 = vpop.f32.mrf.mxu0 }
 0xdc5   : > { %v2869_v5 = vmin.f32 %v6032_v0, 0.0  ;;  %v2875_v8 = vmul.f32 1.442695, %v2870_v4  ;;  %vm2865_vm7 = vcmp.gt.f32.partialorder %v6032_v0, 0.0 }
 0xdc6   : > { %v6035_v53 = vpop.f32.mrf.mxu0 }
 0xdc7   : > { %v2873_v19 = vmul.f32 1.442695, %v2869_v5  ;;  %5089 = vpow2.f32 %v2875_v8  ;;  %v3156_v42 = vmin.f32 %v6035_v53, 0.0  ;;  %vm3152_vm14 = vcmp.gt.f32.partialorder %v6035_v53, 0.0 }
 0xdc8   : > { %v6038_v7 = vpop.f32.mrf.mxu0 }
 0xdc9   : > { %v3155_v43 = vmin.f32 %v6038_v7, 0.0  ;;  %v3161_v25 = vmul.f32 1.442695, %v3156_v42  ;;  %vm3151_vm15 = vcmp.gt.f32.partialorder %v6038_v7, 0.0 }
 0xdca   : > { %v4785_v12 = vpop.f32.mrf.mxu1  ;;  %v6043_v38 = vpop.f32.mrf.mxu0 }
 0xdcb   : > { %v2872_v13 = vmin.f32 %v4785_v12, 0.0  ;;  %v3442_v26 = vmin.f32 %v6043_v38, 0.0  ;;  %v3159_v30 = vmul.f32 1.442695, %v3155_v43  ;;  %vm2868_vm4 = vcmp.gt.f32.partialorder %v4785_v12, 0.0 }
 0xdcc   : > { %v6040_v22 = vpop.f32.mrf.mxu1  ;;  %v6052_v40 = vpop.f32.mrf.mxu0 }
 0xdcd   : > { %v2879_v35 = vmul.f32 1.442695, %v2872_v13  ;;  %v2871_v44 = vmin.f32 %v6040_v22, 0.0  ;;  %v3441_v48 = vmin.f32 %v6052_v40, 0.0  ;;  %v3447_v29 = vmul.f32 1.442695, %v3442_v26 }
 0xdce   : > { %v6045_v34 = vpop.f32.mrf.mxu1  ;;  %vm2867_vm3 = vcmp.gt.f32.partialorder %v6040_v22, 0.0 }
 0xdcf   : > { %5091 = vpow2.f32 %v2879_v35  ;;  %v2877_v23 = vmul.f32 1.442695, %v2871_v44  ;;  %v3158_v56 = vmin.f32 %v6045_v34, 0.0  ;;  %v3445_v55 = vmul.f32 1.442695, %v3441_v48 }
 0xdd0   : > { %5093 = vpow2.f32 %v2873_v19  ;;  %v6049_v41 = vpop.f32.mrf.mxu1  ;;  %vm3154_vm8 = vcmp.gt.f32.partialorder %v6045_v34, 0.0 }
 0xdd1   : > { %5095 = vpow2.f32 %v2877_v23  ;;  %v3165_v50 = vmul.f32 1.442695, %v3158_v56  ;;  %v3157_v18 = vmin.f32 %v6049_v41, 0.0  ;;  %vm3153_vm11 = vcmp.gt.f32.partialorder %v6049_v41, 0.0 }
 0xdd2   : > { %v6055_v52 = vpop.f32.mrf.mxu1 }
 0xdd3   : > { %5097 = vpow2.f32 %v3165_v50  ;;  %v3163_v37 = vmul.f32 1.442695, %v3157_v18  ;;  %v3444_v11 = vmin.f32 %v6055_v52, 0.0 }
 0xdd4   : > { %v6059_v49 = vpop.f32.mrf.mxu1  ;;  %v5090_v51 = vpop.eup %5089 }
 0xdd5   : > { %5099 = vpow2.f32 %v3163_v37  ;;  %v3443_v57 = vmin.f32 %v6059_v49, 0.0  ;;  %v3451_v62 = vmul.f32 1.442695, %v3444_v11  ;;  %v4422_v58 = vadd.f32 -1.0, %v5090_v51 }
 0xdd6   : > { %5101 = vpow2.f32 %v3161_v25  ;;  %v4399_v25 = vld [vmem:[%s6289_s7 + $0x30] sm:$0xff]  ;;  %v2585_v51 = vmin.f32 %v6028_v39, 0.0 }
 0xdd7   : > { %5103 = vpow2.f32 %v3159_v30  ;;  %v3449_v33 = vmul.f32 1.442695, %v3443_v57  ;;  %v2886_v5 = vsel %vm2866_vm6, %v6030_v60, %v4422_v58  ;;  %v4389_v60 = vld [vmem:[%s6288_s6 + $0x40] sm:$0xff]  ;;  %vm3440_vm6 = vcmp.gt.f32.partialorder %v6055_v52, 0.0 }
 0xdd8   : > { %5105 = vpow2.f32 %v3447_v29  ;;  %v2584_v57 = vmin.f32 %v6022_v24, 0.0 }
 0xdd9   : > { %5107 = vpow2.f32 %v3445_v55 }
 0xdda   : > { %5109 = vpow2.f32 %v3451_v62  ;;  %v2589_v62 = vmul.f32 1.442695, %v2584_v57 }
 0xddb   : > { %5111 = vpow2.f32 %v3449_v33 }
 0xddc   : > { %v5092_v14 = vpop.eup %5091 }
 0xddd   : > { %v5094_v17 = vpop.eup %5093  ;;  %v4424_v20 = vadd.f32 -1.0, %v5092_v14  ;;  %v2593_v14 = vmul.f32 1.442695, %v2586_v46 }
 0xdde   : > { %v5096_v47 = vpop.eup %5095  ;;  %v4421_v61 = vadd.f32 -1.0, %v5094_v17 }
 0xddf   : > { %v2888_v6 = vsel %vm2868_vm4, %v4785_v12, %v4424_v20  ;;  %v4423_v59 = vadd.f32 -1.0, %v5096_v47  ;;  %v4390_v12 = vld [vmem:[%s6288_s6 + $0x48] sm:$0xff]  ;;  %vm3438_vm4 = vcmp.gt.f32.partialorder %v6043_v38, 0.0 }
 0xde0   : > { %v5098_v54 = vpop.eup %5097  ;;  %3471 = vrot.lane.b32.xlu1 %v2888_v6, %s6315_s18  ;;  %4826 = vmatprep.subr.mxu0 %v4390_v12  ;;  %v2885_v19 = vsel %vm2865_vm7, %v6032_v0, %v4421_v61  ;;  %vm3439_vm7 = vcmp.gt.f32.partialorder %v6059_v49, 0.0 }
 0xde1   : > { %v2887_v21 = vsel %vm2867_vm3, %v6040_v22, %v4423_v59  ;;  %v4432_v8 = vadd.f32 -1.0, %v5098_v54  ;;  %4827 = vmatpush3.msra.mxu0 %v4390_v12  ;;  %vm3437_vm3 = vcmp.gt.f32.partialorder %v6052_v40, 0.0 }
 0xde2   : > { %3469 = vrot.lane.b32.xlu0 %v2887_v21, %s6315_s18  ;;  %v5100_v4 = vpop.eup %5099  ;;  %4828 = vmatprep.subr.mxu0 %v4389_v60 }
 0xde3   : > { %v5102_v13 = vpop.eup %5101  ;;  %v4431_v22 = vadd.f32 -1.0, %v5100_v4  ;;  %v3174_v44 = vsel %vm3154_vm8, %v6045_v34, %v4432_v8  ;;  %4829 = vmatpush3.msra.mxu0 %v4389_v60  ;;  %v4400_v34 = vld [vmem:[%s6289_s7 + $0x38] sm:$0xff]  ;;  %vm2579_vm8 = vcmp.gt.f32.partialorder %v6024_v15, 0.0 }
 0xde4   : > { %3467 = vrot.lane.b32.xlu1 %v2886_v5, %s6315_s18  ;;  %v5104_v35 = vpop.eup %5103  ;;  %v4430_v42 = vadd.f32 -1.0, %v5102_v13  ;;  %4836 = vmatprep.subr.mxu1 %v4400_v34 }
 0xde5   : > { %v5106_v23 = vpop.eup %5105  ;;  %v3173_v0 = vsel %vm3153_vm11, %v6049_v41, %v4431_v22  ;;  %v4429_v56 = vadd.f32 -1.0, %v5104_v35  ;;  %4837 = vmatpush3.msra.mxu1 %v4400_v34  ;;  %vm2580_vm11 = vcmp.gt.f32.partialorder %v6022_v24, 0.0 }
 0xde6   : > { %3465 = vrot.lane.b32.xlu0 %v2885_v19, %s6315_s18  ;;  %v5108_v43 = vpop.eup %5107  ;;  %v3172_v50 = vsel %vm3152_vm14, %v6035_v53, %v4430_v42  ;;  %v4438_v18 = vadd.f32 -1.0, %v5106_v23  ;;  %v4398_v53 = vld [vmem:[%s6289_s7 + $0x28] sm:$0xff]  ;;  %4838 = vmatprep.subr.mxu1 %v4399_v25  ;;  %vm2581_vm14 = vcmp.gt.f32.partialorder %v6028_v39, 0.0 }
 0xde7   : > { %v5110_v26 = vpop.eup %5109  ;;  %v3171_v41 = vsel %vm3151_vm15, %v6038_v7, %v4429_v56  ;;  %v4437_v37 = vadd.f32 -1.0, %v5108_v43  ;;  %4839 = vmatpush3.msra.mxu1 %v4399_v25  ;;  %v4397_v7 = vld [vmem:[%s6289_s7 + $0x20] sm:$0xff]  ;;  %vm2582_vm15 = vcmp.gt.f32.partialorder %v6026_v1, 0.0 }
 0xde8   : > { %3487 = vrot.lane.b32.xlu1 %v3174_v44, %s6316_s20  ;;  %v5112_v30 = vpop.eup %5111  ;;  %v3458_v48 = vsel %vm3438_vm4, %v6043_v38, %v4438_v18  ;;  %v4440_v29 = vadd.f32 -1.0, %v5110_v26  ;;  %4840 = vmatprep.subr.mxu1 %v4398_v53 }
 0xde9   : > { %v3457_v11 = vsel %vm3437_vm3, %v6052_v40, %v4437_v37  ;;  %v4439_v32 = vadd.f32 -1.0, %v5112_v30  ;;  %4841 = vmatpush3.msra.mxu1 %v4398_v53  ;;  %v2583_v40 = vmin.f32 %v6024_v15, 0.0 }
 0xdea   : > { %3485 = vrot.lane.b32.xlu0 %v3173_v0, %s6316_s20  ;;  %4842 = vmatprep.subr.mxu1 %v4397_v7  ;;  %v3460_v38 = vsel %vm3440_vm6, %v6055_v52, %v4440_v29  ;;  %v2591_v52 = vmul.f32 1.442695, %v2585_v51 }
 0xdeb   : > { %4843 = vmatpush3.msra.mxu1 %v4397_v7  ;;  %v3459_v55 = vsel %vm3439_vm7, %v6059_v49, %v4439_v32  ;;  %v2587_v45 = vmul.f32 1.442695, %v2583_v40 }
 0xdec   : > { %3483 = vrot.lane.b32.xlu1 %v3172_v50, %s6316_s20 }
 0xded   : > { %5113 = vpow2.f32 %v2587_v45 }
 0xdee   : > { %3481 = vrot.lane.b32.xlu0 %v3171_v41, %s6316_s20  ;;  %5115 = vpow2.f32 %v2589_v62  ;;  %s6242_s20 = scalar_lea.sflag [#allocation3], %s439_s28 }
 0xdef   : > { %5117 = vpow2.f32 %v2591_v52 }
 0xdf0   : > { %3499 = vrot.lane.b32.xlu1 %v3458_v48, %s6317_s30  ;;  %5119 = vpow2.f32 %v2593_v14 }
 0xdf2   : > { %3497 = vrot.lane.b32.xlu0 %v3457_v11, %s6317_s30 }
 0xdf4   : > { %3503 = vrot.lane.b32.xlu1 %v3460_v38, %s6317_s30 }
 0xdf6   : > { %3501 = vrot.lane.b32.xlu0 %v3459_v55, %s6317_s30  ;;  %s4341_s30 = sshll.u32 %s439_s28, 4 }
 0xdf7   : > { %s441_s19 = scalar_lea.vmem [#allocation2], %s4341_s30 }
 0xdf8   : > { %s4251_s18 = sshll.u32 %s441_s19, 4  ;;  %s6235_s18 = int_to_ptr.vmem [resolvable:$true] %s4251_s18 }
 0xdf9   : > { %s5143_s30 = scalar_lea.vmem %s6235_s18, 256  ;;  %p5150_p0 = scmp.lt.s32.totalorder %s6235_s18, %s5148_s15 }
 0xdfa   : > { %v5114_v47 = vpop.eup %5113  ;;  %p5144_p11 = scmp.ne.s32.totalorder %s6235_s18, %s5143_s30  ;;  %p5151_p1 = scmp.lt.s32.totalorder %s5149_s0, %s5143_s30 }
 0xdfb   : > { %v5116_v6 = vpop.eup %5115  ;;  %v4413_v58 = vadd.f32 -1.0, %v5114_v47 }
 0xdfc   : > { %v5118_v54 = vpop.eup %5117  ;;  %v4414_v21 = vadd.f32 -1.0, %v5116_v6  ;;  %p5145_p12 = pnand %p5144_p11, %p5323_p5  ;;  %p5152_p2 = por %p5151_p1, %p5150_p0 }
 0xdfd   : > { %v5120_v61 = vpop.eup %5119  ;;  %v2599_v4 = vsel %vm2579_vm8, %v6024_v15, %v4413_v58  ;;  %v4415_v5 = vadd.f32 -1.0, %v5118_v54 }
 0xdfe   : > { %v2600_v12 = vsel %vm2580_vm11, %v6022_v24, %v4414_v21  ;;  %v4416_v13 = vadd.f32 -1.0, %v5120_v61  ;;  %p5146_p13 = pneg %p5145_p12 }
 0xdff   : > { %v2601_v15 = vsel %vm2581_vm14, %v6028_v39, %v4415_v5 }
 0xe00   : > { %v2602_v23 = vsel %vm2582_vm15, %v6026_v1, %v4416_v13  ;;  %p5153_p3 = pnand %p5152_p2, %p5146_p13 }
 0xe52   : > { %v3472_v17 = vpop.permute.xlu1 %3471 }
 0xe53   : > { %v3512_v43 = vsel %vm1589_vm10, %v2602_v23, %v3472_v17 }
 0xe54   : > { %v3470_v49 = vpop.permute.xlu0 %3469 }
 0xe55   : > { %v3511_v0 = vsel %vm1589_vm10, %v2601_v15, %v3470_v49 }
 0xe56   : > { %v3468_v33 = vpop.permute.xlu1 %3467 }
 0xe57   : > { %v3510_v22 = vsel %vm1589_vm10, %v2600_v12, %v3468_v33 }
 0xe58   : > { %v3466_v20 = vpop.permute.xlu0 %3465 }
 0xe59   : > { %v3509_v19 = vsel %vm1589_vm10, %v2599_v4, %v3466_v20 }
 0xe5a   : > { %v3488_v16 = vpop.permute.xlu1 %3487 }
 0xe5b   : > { %v3516_v34 = vsel %vm492_vm0, %v3512_v43, %v3488_v16 }
 0xe5c   : > { %v3486_v59 = vpop.permute.xlu0 %3485 }
 0xe5d   : > { %v3515_v50 = vsel %vm492_vm0, %v3511_v0, %v3486_v59 }
 0xe5e   : > { %v3484_v63 = vpop.permute.xlu1 %3483 }
 0xe5f   : > { %v3514_v44 = vsel %vm492_vm0, %v3510_v22, %v3484_v63 }
 0xe60   : > { %v3482_v10 = vpop.permute.xlu0 %3481 }
 0xe61   : > { %v3513_v60 = vsel %vm492_vm0, %v3509_v19, %v3482_v10 }
 0xe62   : > { %v3500_v8 = vpop.permute.xlu1 %3499 }
 0xe63   : > { %v3518_v24 = vsel %vm1594_vm12, %v3514_v44, %v3500_v8 }
 0xe64   : > { %v3498_v35 = vpop.permute.xlu0 %3497 }
 0xe65   : > { %v3517_v42 = vsel %vm1594_vm12, %v3513_v60, %v3498_v35 }
 0xe66   : > { %4830 = vmatprep.mubr.msk.f32.mxu0 %vm574_vm1, %v3517_v42  ;;  %v3504_v56 = vpop.permute.xlu1 %3503 }
 0xe67   : > { %4831 = vmatmul.mubr.msk.f32.vlgmr.msra.gmra.mxu0 %vm574_vm1, %v3518_v24  ;;  %v3520_v25 = vsel %vm1594_vm12, %v3516_v34, %v3504_v56 }
 0xe68   : > { %v3502_v18 = vpop.permute.xlu0 %3501 }
 0xe69   : > { %v3519_v39 = vsel %vm1594_vm12, %v3515_v50, %v3502_v18 }
 0xe6a   : > { %4833 = vmatprep.mubr.msk.f32.mxu0 %vm574_vm1, %v3519_v39 }
 0xe6b   : > { %4834 = vmatmul.mubr.msk.f32.gmra.mxu0 %vm574_vm1, %v3520_v25 }
 0xf27   : > { %v4832_v1 = vpop.f32.mrf.mxu0 }
 0xf28   : > { %4850 = vmatprep.subr.mxu1 %v4832_v1 }
 0xf29   : > { %v3599_v26 = vpop.f32.mrf.mxu0 }
 0xf2a   : > { %4844 = vmatprep.mubr.msk.f32.mxu1 %vm492_vm0, %v3599_v26 }
 0xf2b   : > { %v6162_v41 = vpop.f32.mrf.mxu0  ;;  %4845 = vmatmul.mubr.msk.f32.vlgmr.msra.gmra.mxu1 %vm492_vm0, %v4832_v1 }
 0xf2c   : > { %4851 = vmatpush3.msra.mxu1 %v4832_v1 }
 0xf2d   : > { %4852 = vmatprep.subr.mxu1 %v3599_v26  ;;  %v6165_v37 = vpop.f32.mrf.mxu0 }
 0xf2e   : > { %4853 = vmatpush3.msra.mxu1 %v3599_v26  ;;  %4847 = vmatprep.mubr.msk.f32.mxu1 %vm492_vm0, %v6165_v37 }
 0xf2f   : > { %4857 = vmatprep.subr.mxu1 %v6162_v41  ;;  %4848 = vmatmul.mubr.msk.f32.gmra.mxu1 %vm492_vm0, %v6162_v41 }
 0xfeb   : > { %v4846_v53 = vpop.f32.mrf.mxu1 }
 0xfec   : > { %3786 = vperm.xlu1 %4963, %v4846_v53  }
 0xfed   : > { %v3696_v30 = vpop.f32.mrf.mxu1 }
 0xfee   : > { %3781 = vperm.xlu0 %4964, %v3696_v30  }
 0xfef   : > { %v4849_v48 = vpop.f32.mrf.mxu1 }
 0xff1   : > { %v3706_v29 = vpop.f32.mrf.mxu1 }
 0xff2   : > { %3796 = vperm.xlu0 %4964, %v4849_v48   ;;  %3791 = vperm.xlu1 %4963, %v3706_v29  }
0x1010   : > { %3747 = vxpose.xlu0.b32.start [1/2] (short) (narrow) %v3706_v29, 8 }
0x1014   : > { %3748 = vxpose.xlu0.b32.end [2/2] (short) (narrow) %v4849_v48, 8 }
0x101b   : > { %3715 = vxpose.xlu1.b32.start [1/2] (short) (narrow) %v3696_v30, 8 }
0x101f   : > { %3716 = vxpose.xlu1.b32.end [2/2] (short) (narrow) %v4846_v53, 8 }
0x1067   : > { %v3787_v32 = vpop.permute.xlu1 %3786 }
0x1069   : > { %v3782_v7 = vpop.permute.xlu0 %3781 }
0x106d   : > { %v3797_v11 = vpop.permute.xlu0 %3796  ;;  %v3792_v40 = vpop.permute.xlu1 %3791 }
0x108c   : > { %v3763_v38 = vpop.trf.xlu0 }
0x108d   : > { %v3806_v55 = vrot.slane %v3763_v38, %v5406_v31 }
0x108f   : > { %v3809_v57 = vadd.f32 %v3806_v55, %v3792_v40  ;;  %v3810_v45 = vadd.f32 %v3806_v55, %v3797_v11  ;;  %v4047_v11 = vld [vmem:[%s6290_s8 + $0x10] sm:$0xff] }
0x1091   : > { %v3817_v46 = vmul.f32 0.2, %v3809_v57  ;;  %v3818_v52 = vmul.f32 0.2, %v3810_v45  ;;  %vm3814_vm1 = vcmp.gt.f32.partialorder %v3810_v45, 0.0  ;;  %vm3813_vm12 = vcmp.gt.f32.partialorder %v3809_v57, 0.0 }
0x1093   : > { %v3822_v47 = vsel %vm3814_vm1, %v3810_v45, %v3818_v52  ;;  %v3821_v6 = vsel %vm3813_vm12, %v3809_v57, %v3817_v46 }
0x1094   : > { %v3826_v54 = vsel %vm2069_vm2, %v3822_v47, -9e+15  ;;  %v3825_v21 = vsel %vm2068_vm9, %v3821_v6, -9e+15  ;;  %v4146_v47 = vld [vmem:[%s6292_s10 + $0x18] sm:$0xff]  ;;  %v4145_v6 = vld [vmem:[%s6292_s10 + $0x10] sm:$0xff] }
0x1095   : > { %v3836_v61 = vsel %vm1589_vm10, %v3826_v54, -inf  ;;  %v3833_v2 = vsel %vm1589_vm10, %v3825_v21, -inf }
0x1097   : > { %v3731_v51 = vpop.trf.xlu1 }
0x1098   : > { %v3802_v62 = vrot.slane %v3731_v51, %v5406_v31 }
0x109a   : > { %v3807_v14 = vadd.f32 %v3802_v62, %v3782_v7  ;;  %v3808_v17 = vadd.f32 %v3802_v62, %v3787_v32  ;;  %v4048_v7 = vld [vmem:[%s6290_s8 + $0x18] sm:$0xff] }
0x109b   : > { %4864 = vmatprep.subr.mxu0 %v4048_v7 }
0x109c   : > { %v3815_v49 = vmul.f32 0.2, %v3807_v14  ;;  %v3816_v33 = vmul.f32 0.2, %v3808_v17  ;;  %vm3812_vm4 = vcmp.gt.f32.partialorder %v3808_v17, 0.0  ;;  %vm3811_vm3 = vcmp.gt.f32.partialorder %v3807_v14, 0.0  ;;  %4865 = vmatpush3.msra.mxu0 %v4048_v7 }
0x109d   : > { %4866 = vmatprep.subr.mxu0 %v4047_v11 }
0x109e   : > { %v3820_v20 = vsel %vm3812_vm4, %v3808_v17, %v3816_v33  ;;  %v3819_v16 = vsel %vm3811_vm3, %v3807_v14, %v3815_v49  ;;  %4867 = vmatpush3.msra.mxu0 %v4047_v11 }
0x109f   : > { %v3824_v59 = vsel %vm2067_vm5, %v3820_v20, -9e+15  ;;  %v3823_v31 = vsel %vm2066_vm13, %v3819_v16, -9e+15 }
0x10a0   : > { %v3830_v58 = vsel %vm1589_vm10, %v3824_v59, -inf  ;;  %v3827_v63 = vsel %vm1589_vm10, %v3823_v31, -inf }
0x10a1   : > { %3831 = vmax.xlane.f32.xlu1 %v3830_v58  ;;  %3828 = vmax.xlane.f32.xlu0 %v3827_v63 }
0x10a5   : > { %3837 = vmax.xlane.f32.xlu1 %v3836_v61  ;;  %3834 = vmax.xlane.f32.xlu0 %v3833_v2 }
0x112a   : > { %v3832_v3 = vpop.xlane.xlu1 %3831  ;;  %v3829_v10 = vpop.xlane.xlu0 %3828 }
0x112b   : > { %v3840_v4 = vsub.f32 %v3824_v59, %v3832_v3  ;;  %v3839_v5 = vsub.f32 %v3823_v31, %v3829_v10  ;;  %v4455_v59 = vld [vmem:[%s6291_s9] ss:$0 sm:$0xff] }
0x112c   : > { %v4458_v10 = vld [vmem:[%s6293_s11] ss:$0 sm:$0xff] }
0x112d   : > { %v3845_v8 = vmul.f32 1.442695, %v3840_v4  ;;  %v3843_v12 = vmul.f32 1.442695, %v3839_v5 }
0x112e   : > { %v3838_v13 = vpop.xlane.xlu1 %3837  ;;  %v3835_v19 = vpop.xlane.xlu0 %3834 }
0x112f   : > { %5121 = vpow2.f32 %v3845_v8  ;;  %v3842_v9 = vsub.f32 %v3826_v54, %v3838_v13  ;;  %v3841_v22 = vsub.f32 %v3825_v21, %v3835_v19 }
0x1130   : > { %5123 = vpow2.f32 %v3843_v12 }
0x1131   : > { %v3849_v27 = vmul.f32 1.442695, %v3842_v9  ;;  %v3847_v60 = vmul.f32 1.442695, %v3841_v22 }
0x1133   : > { %5125 = vpow2.f32 %v3849_v27 }
0x1134   : > { %5127 = vpow2.f32 %v3847_v60 }
0x113c   : > { %v5122_v35 = vpop.eup %5121 }
0x113d   : > { %v5124_v44 = vpop.eup %5123  ;;  %v3854_v42 = vsel %vm1589_vm10, %v5122_v35, 0.0 }
0x113e   : > { %3855 = vadd.xlane.f32.xlu1 %v3854_v42  ;;  %v3851_v15 = vsel %vm1589_vm10, %v5124_v44, 0.0 }
0x113f   : > { %3852 = vadd.xlane.f32.xlu0 %v3851_v15 }
0x1140   : > { %v5126_v24 = vpop.eup %5125 }
0x1141   : > { %v5128_v23 = vpop.eup %5127  ;;  %v3860_v0 = vsel %vm1589_vm10, %v5126_v24, 0.0 }
0x1142   : > { %3861 = vadd.xlane.f32.xlu1 %v3860_v0  ;;  %v3857_v56 = vsel %vm1589_vm10, %v5128_v23, 0.0 }
0x1143   : > { %3858 = vadd.xlane.f32.xlu0 %v3857_v56 }
0x11c7   : > { %v3856_v43 = vpop.xlane.xlu1 %3855 }
0x11c8   : > { %5129 = vrcp.f32 %v3856_v43  ;;  %v3853_v50 = vpop.xlane.xlu0 %3852 }
0x11c9   : > { %5131 = vrcp.f32 %v3853_v50 }
0x11cb   : > { %v3862_v18 = vpop.xlane.xlu1 %3861 }
0x11cc   : > { %5133 = vrcp.f32 %v3862_v18  ;;  %v3859_v34 = vpop.xlane.xlu0 %3858 }
0x11cd   : > { %5135 = vrcp.f32 %v3859_v34 }
0x11d5   : > { %v5130_v39 = vpop.eup %5129 }
0x11d6   : > { %v5132_v25 = vpop.eup %5131  ;;  %v3868_v1 = vmul.f32 %v5130_v39, %v5122_v35 }
0x11d7   : > { %v3867_v26 = vmul.f32 %v5132_v25, %v5124_v44 }
0x11d9   : > { %v5134_v53 = vpop.eup %5133  ;;  %4854 = vmatprep.mubr.msk.f32.mxu1 %vm1589_vm10, %v3867_v26 }
0x11da   : > { %v5136_v30 = vpop.eup %5135  ;;  %4855 = vmatmul.mubr.msk.f32.vlgmr.msra.gmra.mxu1 %vm1589_vm10, %v3868_v1  ;;  %v3870_v48 = vmul.f32 %v5134_v53, %v5126_v24 }
0x11db   : > { %4858 = vmatpush3.msra.mxu1 %v6162_v41  ;;  %v3869_v29 = vmul.f32 %v5136_v30, %v5128_v23  ;;  %v4046_v41 = vld [vmem:[%s6290_s8 + $0x8] sm:$0xff] }
0x11dc   : > { %4859 = vmatprep.subr.mxu1 %v6165_v37  ;;  %4868 = vmatprep.subr.mxu0 %v4046_v41 }
0x11dd   : > { %4860 = vmatpush3.msra.mxu1 %v6165_v37  ;;  %4861 = vmatprep.mubr.msk.f32.mxu1 %vm1589_vm10, %v3869_v29  ;;  %v4045_v37 = vld [vmem:[%s6290_s8] sm:$0xff] }
0x11de   : > { %4862 = vmatmul.mubr.msk.f32.vlgmr.msra.gmra.mxu1 %vm1589_vm10, %v3870_v48  ;;  %4869 = vmatpush3.msra.mxu0 %v4046_v41 }
0x11df   : > { %4870 = vmatprep.subr.mxu0 %v4045_v37  ;;  %4875 = vmatprep.subr.mxu1 %v4146_v47 }
0x11e0   : > { %4871 = vmatpush3.msra.mxu0 %v4045_v37  ;;  %4876 = vmatpush3.msra.mxu1 %v4146_v47 }
0x11e1   : > { %4877 = vmatprep.subr.mxu1 %v4145_v6 }
0x11e2   : > { %4878 = vmatpush3.msra.mxu1 %v4145_v6 }
0x129a   : > { %v4856_v32 = vpop.f32.mrf.mxu1 }
0x129c   : > { %v3943_v38 = vpop.f32.mrf.mxu1 }
0x129d   : > { %v4033_v55 = vmin.f32 %v3943_v38, 0.0  ;;  %vm4031_vm10 = vcmp.gt.f32.partialorder %v3943_v38, 0.0 }
0x129e   : > { %v4863_v40 = vpop.f32.mrf.mxu1 }
0x129f   : > { %v4035_v57 = vmul.f32 1.442695, %v4033_v55 }
0x12a0   : > { %v4023_v45 = vpop.f32.mrf.mxu1 }
0x12a1   : > { %5137 = vpow2.f32 %v4035_v57  ;;  %v4034_v51 = vmin.f32 %v4023_v45, 0.0  ;;  %vm4032_vm5 = vcmp.gt.f32.partialorder %v4023_v45, 0.0 }
0x12a3   : > { %v4037_v62 = vmul.f32 1.442695, %v4034_v51 }
0x12a5   : > { %5139 = vpow2.f32 %v4037_v62 }
0x12ae   : > { %v5138_v46 = vpop.eup %5137 }
0x12af   : > { %v4453_v52 = vadd.f32 -1.0, %v5138_v46 }
0x12b1   : > { %v4041_v14 = vsel %vm4031_vm10, %v3943_v38, %v4453_v52 }
0x12b2   : > { %v5140_v17 = vpop.eup %5139  ;;  %v4043_v49 = vadd.f32 %v4041_v14, %v5665_v28  ;;  %v4144_v28 = vld [vmem:[%s6292_s10 + $0x8] sm:$0xff] }
0x12b3   : > { %v4454_v33 = vadd.f32 -1.0, %v5140_v17  ;;  %4879 = vmatprep.subr.mxu1 %v4144_v28 }
0x12b4   : > { %4872 = vmatprep.mubr.msk.f32.mxu0 %vm492_vm0, %v4043_v49  ;;  %4880 = vmatpush3.msra.mxu1 %v4144_v28 }
0x12b5   : > { %v4042_v20 = vsel %vm4032_vm5, %v4023_v45, %v4454_v33 }
0x12b6   : > { %v4044_v16 = vadd.f32 %v4042_v20, %v5674_v36  ;;  %v4143_v36 = vld [vmem:[%s6292_s10] sm:$0xff] }
0x12b7   : > { %4881 = vmatprep.subr.mxu1 %v4143_v36 }
0x12b8   : > { %4873 = vmatmul.mubr.msk.f32.vlgmr.msra.gmra.mxu0 %vm492_vm0, %v4044_v16  ;;  %4882 = vmatpush3.msra.mxu1 %v4143_v36 }
0x1378   : > { %v4874_v31 = vpop.f32.mrf.mxu0 }
0x1379   : > { %v4134_v58 = vadd.f32 %v4874_v31, %v4455_v59 }
0x137a   : > { %v4128_v63 = vpop.f32.mrf.mxu0 }
0x137b   : > { %v4129_v54 = vadd.f32 %v4455_v59, %v4128_v63  ;;  %v4140_v21 = vmul.f32 0.2, %v4134_v58  ;;  %vm4138_vm13 = vcmp.gt.f32.partialorder %v4134_v58, 0.0 }
0x137d   : > { %vm4137_vm2 = vcmp.gt.f32.partialorder %v4129_v54, 0.0  ;;  %v4139_v61 = vmul.f32 0.2, %v4129_v54  ;;  %v4142_v3 = vsel %vm4138_vm13, %v4134_v58, %v4140_v21 }
0x137f   : > { %v4141_v2 = vsel %vm4137_vm2, %v4129_v54, %v4139_v61 }
0x1380   : > { %4883 = vmatprep.mubr.msk.f32.mxu1 %vm492_vm0, %v4141_v2 }
0x1381   : > { %4884 = vmatmul.mubr.msk.f32.vlgmr.msra.gmra.mxu1 %vm492_vm0, %v4142_v3 }
0x1441   : > { %v4885_v4 = vpop.f32.mrf.mxu1 }
0x1442   : > { %v4232_v5 = vadd.f32 %v4885_v4, %v4458_v10 }
0x1443   : > { %v4226_v8 = vpop.f32.mrf.mxu1 }
0x1444   : > { %4236 = vst [vmem:[%s441_s19 + $0x8] sm:$0xff] %v4232_v5  ;;  %v4227_v12 = vadd.f32 %v4458_v10, %v4226_v8 }
0x1446   : > { %4235 = vst [vmem:[%s441_s19] sm:$0xff] %v4227_v12 }
0x1447   : > { %5156 = shalt.err (!%p5153_p3)
}
0x1448   : > { %s5157_s28 = scalar_lea.hbm %s6240_s17, 256  ;;  %s5161_s16 = scalar_lea.hbm %s6294_s12, 512 }
0x1449   : > { %p5158_p4 = scmp.ne.s32.totalorder %s6240_s17, %s5157_s28  ;;  %p5162_p9 = scmp.lt.s32.totalorder %s6240_s17, %s6294_s12 }
0x144a   : > { %p5163_p10 = scmp.lt.s32.totalorder %s5161_s16, %s5157_s28 }
0x144b   : > { %p5159_p7 = pnand %p5158_p4, %p5323_p5 }
0x144c   : > { %p5164_p11 = por %p5163_p10, %p5162_p9 }
0x144d   : > { %p5160_p8 = pneg %p5159_p7 }
0x144f   : > { %p5165_p12 = pnand %p5164_p11, %p5160_p8 }
0x1451   : > { %5168 = shalt.err (!%p5165_p12)
}
0x1452   : > { %s5218_s0 = smov 128   ;;  %s5219_s30 = smov 8  }
0x1453   : > { %4886 = dma.vmem_to_hbm [thread:$0]  (%p5323_p5), %s6235_s18, 256, %s6240_s17, %s6242_s20, %s5218_s0, %s5218_s0, %s5219_s30  }
0x1454 PF: > { %p4892_p13 = scmp.ge.s32.totalorder %s5203_s24, 2  ;;  %s4266_s15 = sand.u32 1, %s5191_s21  }
0x1455   : > { %s4267_s28 = scalar_lea.sflag [#allocation3], %s4266_s15 }
0x1456   : > { %p4889_p0 = pnand %p4892_p13, %p5327_p6 }
0x1458   : > { %p4890_p1 = pneg %p4889_p0 }
0x145a   : > { %5186 = dma.done.wait (%p4890_p1), %s4267_s28, 256  }
0x145b   : > { %5188 = vsyncadd (%p4890_p1), %s4267_s28, 4294967040  ;;  %s6318_s19 = sld [smem:[#allocation5_spill]]  ;;  %p22_p2 = scmp.ge.s32.totalorder %s5310_s27, 4  }
0x145c   : > { %s6319_s21 = smov %s5195_s22  ;;  %s6320_s22 = smov %s5199_s23 }
0x145d   : > { %s6322_s24 = smov %s5310_s27  ;;  %24 = sbr.rel (!%p22_p2) target bundleno = 5 (0x5), region = 113 }
0x1461   : > { %s6321_s23 = smov %s6318_s19 }
0x1462   :  { %4272 = vsyncpa [#allocation3], 1 }
0x1463   :  { %4274 = vsyncpa [#allocation3 + $0x1], 1 }

</bundles_post_ra>
